<compile_context>
chip_gen: v6e
topology: v6e:2x2x1
jax: 0.10.0
libtpu: 0.0.40
codegen_flags: <defaults>
</compile_context>

<pallas_src>
import functools
import math

import jax
import jax.numpy as jnp
from jax.experimental import pallas as pl
from jax.experimental.pallas import tpu as pltpu

# ---------------------------------------------------------------------------
# Small-model hyperparameters (scaled-down QETransformer)
# ---------------------------------------------------------------------------
VOCAB = 64
HIDDEN = 128            # hidden_size
INTER = 256             # intermediate_size
N_HEADS = 4
HEAD_DIM = HIDDEN // N_HEADS
N_LAYERS = 2
MAX_LAYER = 1           # layers 0..MAX_LAYER are run (matches `if layer_n > max_layer: break`)
N_LAYERS_RUN = min(N_LAYERS, MAX_LAYER + 1)
N_CLASSES = 6
BATCH = 2
SEQ = 8
MAX_POS = 16
LN_EPS = 1e-5
HEAD_OUT = 8            # 1 (reg) + N_CLASSES (cls) padded to 8 lanes for the fused head matmul


# ---------------------------------------------------------------------------
# In-kernel helpers (all f32 elementwise math — see v5e note above)
# ---------------------------------------------------------------------------
def _layer_norm(x, gamma, beta, eps=LN_EPS):
    mu = jnp.mean(x, axis=-1, keepdims=True)
    var = jnp.mean((x - mu) ** 2, axis=-1, keepdims=True)
    return (x - mu) * jax.lax.rsqrt(var + eps) * gamma + beta


def _softmax_lastdim(x):
    # exp / rowsum with the divide routed to the EUP slot (otherwise idle in these bundles).
    # approx reciprocal => ~1e-3 relative error vs exact; fine for this forward path.
    m = jnp.max(x, axis=-1, keepdims=True)
    e = jnp.exp(x - m)
    return e * pl.reciprocal(jnp.sum(e, axis=-1, keepdims=True), approx=True)


# ---------------------------------------------------------------------------
# Fused forward kernel: encoder stack + heads, single invocation (no grid)
# ---------------------------------------------------------------------------
def fused_forward_kernel(hs_ref, mask_ref,
                         wqkv_ref, bqkv_ref, wo_ref, bo_ref,
                         ln1g_ref, ln1b_ref,
                         w1_ref, b1_ref, w2_ref, b2_ref,
                         ln2g_ref, ln2b_ref,
                         wm_ref, bm_ref, wrc_ref, brc_ref,
                         enc_ref, head_ref,
                         *, n_layers, n_heads, head_dim, batch, seq, hidden):
    bs = batch * seq
    scale = 1.0 / math.sqrt(head_dim)
    bf16 = jnp.bfloat16

    # ---- hoisted: additive attention mask, broadcast ONCE to (B, S, S) (f32) ----
    neg = jnp.broadcast_to((1.0 - mask_ref[...]) * (-1e9), (batch, seq, seq))

    # ---- hoisted: constant per-head lane masks (B, S, H), built once from an iota ----
    lane = jax.lax.broadcasted_iota(jnp.int32, (1, 1, hidden), 2)
    head_masks = []
    for h in range(n_heads):
        m = ((lane >= h * head_dim) & (lane < (h + 1) * head_dim)).astype(jnp.float32)
        head_masks.append(jnp.broadcast_to(m, (batch, seq, hidden)))

    # whole batch flattened to (B*S, H) for every dense matmul
    # (at B*S = 16 the MXU rows are mostly idle; fill M by batching more sequences per call
    #  before doing any further matmul-side tuning)
    x = hs_ref[...].reshape(bs, hidden)                       # f32

    for l in range(n_layers):                                 # static unroll over run layers
        # ---- fused QKV projection: one MXU push, bf16 operands / f32 accumulate ----
        qkv = jnp.dot(x.astype(bf16), wqkv_ref[l],
                      preferred_element_type=jnp.float32) + bqkv_ref[l]
        q3 = qkv[:, :hidden].reshape(batch, seq, hidden)      # f32 (B, S, H)
        k3 = qkv[:, hidden:2 * hidden].reshape(batch, seq, hidden)
        v3 = qkv[:, 2 * hidden:].reshape(batch, seq, hidden)
        k_bf = k3.astype(bf16)                                # cast once, reused by all heads

        # ---- all-head attention: heads isolated via constant lane masks (no slices),
        #      contexts accumulate into one full-width buffer -> single K=128 W_o matmul ----
        ctx = jnp.zeros((batch, seq, hidden), jnp.float32)
        for h in range(n_heads):                              # static unroll over heads
            m = head_masks[h]
            qm = (q3 * m).astype(bf16)                        # non-head lanes are zero
            s = jnp.einsum('bqd,bkd->bqk', qm, k_bf,
                           preferred_element_type=jnp.float32) * scale + neg
            p = _softmax_lastdim(s)                           # f32 (B, S, S)
            vm = (v3 * m).astype(bf16)                        # head-h lanes only
            ctx = ctx + jnp.einsum('bqk,bkd->bqd', p.astype(bf16), vm,
                                   preferred_element_type=jnp.float32)

        attn = jnp.dot(ctx.reshape(bs, hidden).astype(bf16), wo_ref[l],
                       preferred_element_type=jnp.float32) + bo_ref[l]
        x1 = _layer_norm(x + attn, ln1g_ref[l], ln1b_ref[l])

        # ---- FFN (bf16 matmul operands, f32 elementwise) ----
        h1 = jnp.dot(x1.astype(bf16), w1_ref[l],
                     preferred_element_type=jnp.float32) + b1_ref[l]
        h1 = jax.nn.gelu(h1, approximate=True)   # tanh GELU (EUP); slight diff vs erf GELU
        ff = jnp.dot(h1.astype(bf16), w2_ref[l],
                     preferred_element_type=jnp.float32) + b2_ref[l]
        x = _layer_norm(x1 + ff, ln2g_ref[l], ln2b_ref[l])

    x3 = x.reshape(batch, seq, hidden)
    enc_ref[...] = x3

    # ---- heads on the VMEM-resident CLS token (max_layer != -1 path) ----
    cls_tok = x3[:, 0, :]                                     # (B, H)
    # mlp = Linear(H, 4H) -> ReLU -> Dropout(0.1)  (dropout is identity in eval mode)
    hmlp = jnp.maximum(
        jnp.dot(cls_tok.astype(bf16), wm_ref[...],
                preferred_element_type=jnp.float32) + bm_ref[...], 0.0)
    # fused [reg_head | cls_head | pad] matmul; raw logits only (argmax is softmax-invariant)
    head = jnp.dot(hmlp.astype(bf16), wrc_ref[...],
                   preferred_element_type=jnp.float32) + brc_ref[...]
    head_ref[...] = head          # col 0 = reg score, cols 1..6 = class logits, col 7 = pad


# ---------------------------------------------------------------------------
# Wrapper
# ---------------------------------------------------------------------------
def run_fused_forward(hs, mask3, stacked, head_params):
    B, S, H = hs.shape
    kernel = functools.partial(
        fused_forward_kernel,
        n_layers=N_LAYERS_RUN, n_heads=N_HEADS, head_dim=HEAD_DIM,
        batch=B, seq=S, hidden=H)
    args = (hs, mask3,
            stacked["wqkv"], stacked["bqkv"], stacked["wo"], stacked["bo"],
            stacked["ln1g"], stacked["ln1b"],
            stacked["w1"], stacked["b1"], stacked["w2"], stacked["b2"],
            stacked["ln2g"], stacked["ln2b"],
            head_params["wm"], head_params["bm"], head_params["wrc"], head_params["brc"])
    # No grid: single invocation; full arrays live as VMEM blocks (resident footprint < 2 MiB,
    # well inside the default scoped VMEM limit on v5e/v6e/v7x). Explicit specs keep the
    # buffering auditable for the future layer-streaming / v7x parallel-grid variants.
    in_specs = [pl.BlockSpec(memory_space=pltpu.MemorySpace.VMEM) for _ in args]
    out_specs = (pl.BlockSpec(memory_space=pltpu.MemorySpace.VMEM),
                 pl.BlockSpec(memory_space=pltpu.MemorySpace.VMEM))
    return pl.pallas_call(
        kernel,
        out_shape=(jax.ShapeDtypeStruct((B, S, H), jnp.float32),
                   jax.ShapeDtypeStruct((B, HEAD_OUT), jnp.float32)),
        in_specs=in_specs,
        out_specs=out_specs,
    )(*args)


def qe_transformer_forward(input_ids, attention_mask, special_tokens_mask, params):
    del special_tokens_mask  # unused in the regression forward path (as in the PyTorch module)
    emb = params["emb"]
    # ---- embeddings (gather glue in plain JAX) ----
    x = emb["word"][input_ids] + emb["pos"][:input_ids.shape[1]][None] + emb["type"][None]
    mu = jnp.mean(x, axis=-1, keepdims=True)
    var = jnp.mean((x - mu) ** 2, axis=-1, keepdims=True)
    hs = (x - mu) * jax.lax.rsqrt(var + LN_EPS) * emb["ln_g"] + emb["ln_b"]

    mask3 = attention_mask.astype(jnp.float32).reshape(attention_mask.shape[0], 1, -1)

    # ---- fused encoder stack + heads (single Pallas kernel) ----
    enc_last, head_out = run_fused_forward(hs, mask3, params["layers_stacked"],
                                           params["head"])
    scores = head_out[:, 0]                         # reg_head output, squeezed
    logits = head_out[:, 1:1 + N_CLASSES]           # cls_head raw logits
    return {
        "qe_scores": scores,
        "qe_cls": jnp.argmax(logits, axis=-1),      # argmax(softmax(x)) == argmax(x)
        "encoder_last": enc_last,
    }


# ---------------------------------------------------------------------------
# Deterministic parameter init.  Matmul weights are stored in bf16 (MXU operands);
# biases / LayerNorm params stay f32 (added after the f32 accumulation).
# ---------------------------------------------------------------------------
def init_params(key):
    def nrm(k, shape, scale=0.02):
        return scale * jax.random.normal(k, shape, dtype=jnp.float32)

    keys = jax.random.split(key, 8 + N_LAYERS)
    emb = {
        "word": nrm(keys[0], (VOCAB, HIDDEN)),
        "pos": nrm(keys[1], (MAX_POS, HIDDEN)),
        "type": nrm(keys[2], (HIDDEN,)),
        "ln_g": jnp.ones((HIDDEN,), jnp.float32),
        "ln_b": jnp.zeros((HIDDEN,), jnp.float32),
    }
    layers = []
    for i in range(N_LAYERS):
        lk = jax.random.split(keys[3 + i], 6)
        layers.append({
            "wq": nrm(lk[0], (HIDDEN, HIDDEN)), "bq": jnp.zeros((1, HIDDEN), jnp.float32),
            "wk": nrm(lk[1], (HIDDEN, HIDDEN)), "bk": jnp.zeros((1, HIDDEN), jnp.float32),
            "wv": nrm(lk[2], (HIDDEN, HIDDEN)), "bv": jnp.zeros((1, HIDDEN), jnp.float32),
            "wo": nrm(lk[3], (HIDDEN, HIDDEN)), "bo": jnp.zeros((1, HIDDEN), jnp.float32),
            "ln1g": jnp.ones((1, HIDDEN), jnp.float32), "ln1b": jnp.zeros((1, HIDDEN), jnp.float32),
            "w1": nrm(lk[4], (HIDDEN, INTER)), "b1": jnp.zeros((1, INTER), jnp.float32),
            "w2": nrm(lk[5], (INTER, HIDDEN)), "b2": jnp.zeros((1, HIDDEN), jnp.float32),
            "ln2g": jnp.ones((1, HIDDEN), jnp.float32), "ln2b": jnp.zeros((1, HIDDEN), jnp.float32),
        })

    # stack the layers that are actually run (0..MAX_LAYER), fuse QKV weights, cast to bf16
    run = layers[:N_LAYERS_RUN]
    bf = jnp.bfloat16
    stacked = {
        "wqkv": jnp.stack([jnp.concatenate([p["wq"], p["wk"], p["wv"]], axis=1)
                           for p in run]).astype(bf),
        "bqkv": jnp.stack([jnp.concatenate([p["bq"], p["bk"], p["bv"]], axis=1) for p in run]),
        "wo":   jnp.stack([p["wo"] for p in run]).astype(bf),
        "bo":   jnp.stack([p["bo"] for p in run]),
        "ln1g": jnp.stack([p["ln1g"] for p in run]),
        "ln1b": jnp.stack([p["ln1b"] for p in run]),
        "w1":   jnp.stack([p["w1"] for p in run]).astype(bf),
        "b1":   jnp.stack([p["b1"] for p in run]),
        "w2":   jnp.stack([p["w2"] for p in run]).astype(bf),
        "b2":   jnp.stack([p["b2"] for p in run]),
        "ln2g": jnp.stack([p["ln2g"] for p in run]),
        "ln2b": jnp.stack([p["ln2b"] for p in run]),
    }

    hk = jax.random.split(keys[3 + N_LAYERS], 3)
    wr = nrm(hk[1], (4 * HIDDEN, 1))
    wc = nrm(hk[2], (4 * HIDDEN, N_CLASSES))
    head = {
        "wm": nrm(hk[0], (HIDDEN, 4 * HIDDEN)).astype(bf),
        "bm": jnp.zeros((1, 4 * HIDDEN), jnp.float32),
        # fused [reg_head | cls_head | pad] weight, padded to HEAD_OUT=8 lanes
        "wrc": jnp.concatenate(
            [wr, wc, jnp.zeros((4 * HIDDEN, HEAD_OUT - 1 - N_CLASSES), jnp.float32)],
            axis=1).astype(bf),
        "brc": jnp.zeros((1, HEAD_OUT), jnp.float32),
    }
    return {"emb": emb, "layers_stacked": stacked, "head": head}


# ---------------------------------------------------------------------------
if __name__ == "__main__":
    root = jax.random.PRNGKey(0)
    k_params, k_ids = jax.random.split(root)
    params = init_params(k_params)

    input_ids = jax.random.randint(k_ids, (BATCH, SEQ), 0, VOCAB, dtype=jnp.int32)
    attention_mask = jnp.ones((BATCH, SEQ), jnp.int32).at[1, 6:].set(0)   # pad tail of sample 1
    special_tokens_mask = jnp.zeros((BATCH, SEQ), jnp.int32)

    outputs = qe_transformer_forward(input_ids, attention_mask, special_tokens_mask, params)
    jax.block_until_ready(outputs)

    assert outputs["qe_scores"].shape == (BATCH,)
    assert outputs["qe_cls"].shape == (BATCH,)
    assert outputs["encoder_last"].shape == (BATCH, SEQ, HIDDEN)
    print("KERNEL_OK")
</pallas_src>

<mosaic_0001>
module attributes {stable_mosaic.version = 11 : i64} {
  func.func @fused_forward_kernel(%arg0: memref<2x8x128xf32, #tpu.memory_space<vmem>>, %arg1: memref<2x1x8xf32, #tpu.memory_space<vmem>>, %arg2: memref<2x128x384xbf16, #tpu.memory_space<vmem>>, %arg3: memref<2x1x384xf32, #tpu.memory_space<vmem>>, %arg4: memref<2x128x128xbf16, #tpu.memory_space<vmem>>, %arg5: memref<2x1x128xf32, #tpu.memory_space<vmem>>, %arg6: memref<2x1x128xf32, #tpu.memory_space<vmem>>, %arg7: memref<2x1x128xf32, #tpu.memory_space<vmem>>, %arg8: memref<2x128x256xbf16, #tpu.memory_space<vmem>>, %arg9: memref<2x1x256xf32, #tpu.memory_space<vmem>>, %arg10: memref<2x256x128xbf16, #tpu.memory_space<vmem>>, %arg11: memref<2x1x128xf32, #tpu.memory_space<vmem>>, %arg12: memref<2x1x128xf32, #tpu.memory_space<vmem>>, %arg13: memref<2x1x128xf32, #tpu.memory_space<vmem>>, %arg14: memref<128x512xbf16, #tpu.memory_space<vmem>>, %arg15: memref<1x512xf32, #tpu.memory_space<vmem>>, %arg16: memref<512x8xbf16, #tpu.memory_space<vmem>>, %arg17: memref<1x8xf32, #tpu.memory_space<vmem>>, %arg18: memref<2x8x128xf32, #tpu.memory_space<vmem>>, %arg19: memref<2x8xf32, #tpu.memory_space<vmem>>) attributes {dimension_semantics = [], scalar_prefetch = 0 : i64, scratch_operands = 0 : i64, tpu.core_type = #tpu.core_type<tc>} {
    %c0 = arith.constant 0 : index
    %c0_0 = arith.constant 0 : index
    %c0_1 = arith.constant 0 : index
    %0 = vector.load %arg1[%c0, %c0_0, %c0_1] : memref<2x1x8xf32, #tpu.memory_space<vmem>>, vector<2x1x8xf32>
    %cst = arith.constant 1.000000e+00 : f32
    %1 = vector.broadcast %cst : f32 to vector<2x1x8xf32>
    %2 = arith.subf %1, %0 : vector<2x1x8xf32>
    %cst_2 = arith.constant -1.000000e+09 : f32
    %3 = vector.broadcast %cst_2 : f32 to vector<2x1x8xf32>
    %4 = arith.mulf %2, %3 : vector<2x1x8xf32>
    %5 = vector.shape_cast %4 : vector<2x1x8xf32> to vector<2x1x8xf32>
    %6 = vector.broadcast %5 : vector<2x1x8xf32> to vector<2x8x8xf32>
    %7 = tpu.iota {dimensions = array<i32: 2>} : vector<1x1x128xi32>
    %c0_i32 = arith.constant 0 : i32
    %8 = vector.broadcast %c0_i32 : i32 to vector<1x1x128xi32>
    %9 = arith.cmpi sge, %7, %8 : vector<1x1x128xi32>
    %c32_i32 = arith.constant 32 : i32
    %10 = vector.broadcast %c32_i32 : i32 to vector<1x1x128xi32>
    %11 = arith.cmpi slt, %7, %10 : vector<1x1x128xi32>
    %12 = arith.andi %9, %11 : vector<1x1x128xi1>
    %13 = arith.extui %12 : vector<1x1x128xi1> to vector<1x1x128xi32>
    %14 = arith.sitofp %13 : vector<1x1x128xi32> to vector<1x1x128xf32>
    %15 = vector.shape_cast %14 : vector<1x1x128xf32> to vector<1x1x128xf32>
    %16 = vector.broadcast %15 : vector<1x1x128xf32> to vector<2x8x128xf32>
    %c32_i32_3 = arith.constant 32 : i32
    %17 = vector.broadcast %c32_i32_3 : i32 to vector<1x1x128xi32>
    %18 = arith.cmpi sge, %7, %17 : vector<1x1x128xi32>
    %c64_i32 = arith.constant 64 : i32
    %19 = vector.broadcast %c64_i32 : i32 to vector<1x1x128xi32>
    %20 = arith.cmpi slt, %7, %19 : vector<1x1x128xi32>
    %21 = arith.andi %18, %20 : vector<1x1x128xi1>
    %22 = arith.extui %21 : vector<1x1x128xi1> to vector<1x1x128xi32>
    %23 = arith.sitofp %22 : vector<1x1x128xi32> to vector<1x1x128xf32>
    %24 = vector.shape_cast %23 : vector<1x1x128xf32> to vector<1x1x128xf32>
    %25 = vector.broadcast %24 : vector<1x1x128xf32> to vector<2x8x128xf32>
    %c64_i32_4 = arith.constant 64 : i32
    %26 = vector.broadcast %c64_i32_4 : i32 to vector<1x1x128xi32>
    %27 = arith.cmpi sge, %7, %26 : vector<1x1x128xi32>
    %c96_i32 = arith.constant 96 : i32
    %28 = vector.broadcast %c96_i32 : i32 to vector<1x1x128xi32>
    %29 = arith.cmpi slt, %7, %28 : vector<1x1x128xi32>
    %30 = arith.andi %27, %29 : vector<1x1x128xi1>
    %31 = arith.extui %30 : vector<1x1x128xi1> to vector<1x1x128xi32>
    %32 = arith.sitofp %31 : vector<1x1x128xi32> to vector<1x1x128xf32>
    %33 = vector.shape_cast %32 : vector<1x1x128xf32> to vector<1x1x128xf32>
    %34 = vector.broadcast %33 : vector<1x1x128xf32> to vector<2x8x128xf32>
    %c96_i32_5 = arith.constant 96 : i32
    %35 = vector.broadcast %c96_i32_5 : i32 to vector<1x1x128xi32>
    %36 = arith.cmpi sge, %7, %35 : vector<1x1x128xi32>
    %c128_i32 = arith.constant 128 : i32
    %37 = vector.broadcast %c128_i32 : i32 to vector<1x1x128xi32>
    %38 = arith.cmpi slt, %7, %37 : vector<1x1x128xi32>
    %39 = arith.andi %36, %38 : vector<1x1x128xi1>
    %40 = arith.extui %39 : vector<1x1x128xi1> to vector<1x1x128xi32>
    %41 = arith.sitofp %40 : vector<1x1x128xi32> to vector<1x1x128xf32>
    %42 = vector.shape_cast %41 : vector<1x1x128xf32> to vector<1x1x128xf32>
    %43 = vector.broadcast %42 : vector<1x1x128xf32> to vector<2x8x128xf32>
    %c0_6 = arith.constant 0 : index
    %c0_7 = arith.constant 0 : index
    %c0_8 = arith.constant 0 : index
    %44 = vector.load %arg0[%c0_6, %c0_7, %c0_8] : memref<2x8x128xf32, #tpu.memory_space<vmem>>, vector<2x8x128xf32>
    %45 = vector.shape_cast %44 : vector<2x8x128xf32> to vector<16x128xf32>
    %46 = arith.truncf %45 : vector<16x128xf32> to vector<16x128xbf16>
    %c0_9 = arith.constant 0 : index
    %c0_10 = arith.constant 0 : index
    %c0_11 = arith.constant 0 : index
    %47 = vector.load %arg2[%c0_9, %c0_10, %c0_11] : memref<2x128x384xbf16, #tpu.memory_space<vmem>>, vector<1x128x384xbf16>
    %48 = vector.shape_cast %47 : vector<1x128x384xbf16> to vector<128x384xbf16>
    %cst_12 = arith.constant dense<0.000000e+00> : vector<16x384xf32>
    %49 = tpu.matmul %46, %48, %cst_12 {dimension_numbers = #tpu.dot_dimension_numbers<[1], [0], [0], [1], [0, 0, 1, 1], [], []>} : vector<16x128xbf16>, vector<128x384xbf16>, vector<16x384xf32> -> vector<16x384xf32>
    %c0_13 = arith.constant 0 : index
    %c0_14 = arith.constant 0 : index
    %c0_15 = arith.constant 0 : index
    %50 = vector.load %arg3[%c0_13, %c0_14, %c0_15] : memref<2x1x384xf32, #tpu.memory_space<vmem>>, vector<1x1x384xf32>
    %51 = vector.shape_cast %50 : vector<1x1x384xf32> to vector<1x384xf32>
    %52 = vector.broadcast %51 : vector<1x384xf32> to vector<16x384xf32>
    %53 = arith.addf %49, %52 : vector<16x384xf32>
    %54 = vector.extract_strided_slice %53 {offsets = [0, 0], sizes = [16, 128], strides = [1, 1]} : vector<16x384xf32> to vector<16x128xf32>
    %55 = vector.shape_cast %54 : vector<16x128xf32> to vector<2x8x128xf32>
    %56 = vector.extract_strided_slice %53 {offsets = [0, 128], sizes = [16, 128], strides = [1, 1]} : vector<16x384xf32> to vector<16x128xf32>
    %57 = vector.shape_cast %56 : vector<16x128xf32> to vector<2x8x128xf32>
    %58 = vector.extract_strided_slice %53 {offsets = [0, 256], sizes = [16, 128], strides = [1, 1]} : vector<16x384xf32> to vector<16x128xf32>
    %59 = vector.shape_cast %58 : vector<16x128xf32> to vector<2x8x128xf32>
    %60 = arith.truncf %57 : vector<2x8x128xf32> to vector<2x8x128xbf16>
    %cst_16 = arith.constant 0.000000e+00 : f32
    %61 = vector.broadcast %cst_16 : f32 to vector<2x8x128xf32>
    %62 = arith.mulf %55, %16 : vector<2x8x128xf32>
    %63 = arith.truncf %62 : vector<2x8x128xf32> to vector<2x8x128xbf16>
    "tpu.trace_start"() <{level = 10 : i32, message = "bqd,bkd->bqk"}> : () -> ()
    %cst_17 = arith.constant dense<0.000000e+00> : vector<2x8x8xf32>
    %64 = tpu.matmul %63, %60, %cst_17 {dimension_numbers = #tpu.dot_dimension_numbers<[2], [2], [1], [1], [0, 0, 0, 1, 1, 1], [0], [0]>} : vector<2x8x128xbf16>, vector<2x8x128xbf16>, vector<2x8x8xf32> -> vector<2x8x8xf32>
    "tpu.trace_stop"() : () -> ()
    %cst_18 = arith.constant 0.176776692 : f32
    %65 = vector.broadcast %cst_18 : f32 to vector<2x8x8xf32>
    %66 = arith.mulf %64, %65 : vector<2x8x8xf32>
    %67 = arith.addf %66, %6 : vector<2x8x8xf32>
    %cst_19 = arith.constant dense<0xFF800000> : vector<2x8xf32>
    %68 = vector.multi_reduction <maximumf>, %67, %cst_19 [2] : vector<2x8x8xf32> to vector<2x8xf32>
    %69 = vector.shape_cast %68 : vector<2x8xf32> to vector<2x8x1xf32>
    %70 = vector.broadcast %69 : vector<2x8x1xf32> to vector<2x8x8xf32>
    %71 = arith.subf %67, %70 : vector<2x8x8xf32>
    %72 = math.exp %71 : vector<2x8x8xf32>
    %cst_20 = arith.constant dense<0.000000e+00> : vector<2x8xf32>
    %73 = vector.multi_reduction <add>, %72, %cst_20 [2] : vector<2x8x8xf32> to vector<2x8xf32>
    %74 = vector.shape_cast %73 : vector<2x8xf32> to vector<2x8x1xf32>
    %75 = tpu.reciprocal %74 {approx = true} : vector<2x8x1xf32> -> vector<2x8x1xf32>
    %76 = vector.broadcast %75 : vector<2x8x1xf32> to vector<2x8x8xf32>
    %77 = arith.mulf %72, %76 : vector<2x8x8xf32>
    %78 = arith.mulf %59, %16 : vector<2x8x128xf32>
    %79 = arith.truncf %78 : vector<2x8x128xf32> to vector<2x8x128xbf16>
    %80 = arith.truncf %77 : vector<2x8x8xf32> to vector<2x8x8xbf16>
    "tpu.trace_start"() <{level = 10 : i32, message = "bqk,bkd->bqd"}> : () -> ()
    %cst_21 = arith.constant dense<0.000000e+00> : vector<2x8x128xf32>
    %81 = tpu.matmul %80, %79, %cst_21 {dimension_numbers = #tpu.dot_dimension_numbers<[2], [1], [1], [2], [0, 0, 0, 1, 1, 2], [0], [0]>} : vector<2x8x8xbf16>, vector<2x8x128xbf16>, vector<2x8x128xf32> -> vector<2x8x128xf32>
    "tpu.trace_stop"() : () -> ()
    %82 = arith.addf %61, %81 : vector<2x8x128xf32>
    %83 = arith.mulf %55, %25 : vector<2x8x128xf32>
    %84 = arith.truncf %83 : vector<2x8x128xf32> to vector<2x8x128xbf16>
    "tpu.trace_start"() <{level = 10 : i32, message = "bqd,bkd->bqk"}> : () -> ()
    %cst_22 = arith.constant dense<0.000000e+00> : vector<2x8x8xf32>
    %85 = tpu.matmul %84, %60, %cst_22 {dimension_numbers = #tpu.dot_dimension_numbers<[2], [2], [1], [1], [0, 0, 0, 1, 1, 1], [0], [0]>} : vector<2x8x128xbf16>, vector<2x8x128xbf16>, vector<2x8x8xf32> -> vector<2x8x8xf32>
    "tpu.trace_stop"() : () -> ()
    %cst_23 = arith.constant 0.176776692 : f32
    %86 = vector.broadcast %cst_23 : f32 to vector<2x8x8xf32>
    %87 = arith.mulf %85, %86 : vector<2x8x8xf32>
    %88 = arith.addf %87, %6 : vector<2x8x8xf32>
    %cst_24 = arith.constant dense<0xFF800000> : vector<2x8xf32>
    %89 = vector.multi_reduction <maximumf>, %88, %cst_24 [2] : vector<2x8x8xf32> to vector<2x8xf32>
    %90 = vector.shape_cast %89 : vector<2x8xf32> to vector<2x8x1xf32>
    %91 = vector.broadcast %90 : vector<2x8x1xf32> to vector<2x8x8xf32>
    %92 = arith.subf %88, %91 : vector<2x8x8xf32>
    %93 = math.exp %92 : vector<2x8x8xf32>
    %cst_25 = arith.constant dense<0.000000e+00> : vector<2x8xf32>
    %94 = vector.multi_reduction <add>, %93, %cst_25 [2] : vector<2x8x8xf32> to vector<2x8xf32>
    %95 = vector.shape_cast %94 : vector<2x8xf32> to vector<2x8x1xf32>
    %96 = tpu.reciprocal %95 {approx = true} : vector<2x8x1xf32> -> vector<2x8x1xf32>
    %97 = vector.broadcast %96 : vector<2x8x1xf32> to vector<2x8x8xf32>
    %98 = arith.mulf %93, %97 : vector<2x8x8xf32>
    %99 = arith.mulf %59, %25 : vector<2x8x128xf32>
    %100 = arith.truncf %99 : vector<2x8x128xf32> to vector<2x8x128xbf16>
    %101 = arith.truncf %98 : vector<2x8x8xf32> to vector<2x8x8xbf16>
    "tpu.trace_start"() <{level = 10 : i32, message = "bqk,bkd->bqd"}> : () -> ()
    %cst_26 = arith.constant dense<0.000000e+00> : vector<2x8x128xf32>
    %102 = tpu.matmul %101, %100, %cst_26 {dimension_numbers = #tpu.dot_dimension_numbers<[2], [1], [1], [2], [0, 0, 0, 1, 1, 2], [0], [0]>} : vector<2x8x8xbf16>, vector<2x8x128xbf16>, vector<2x8x128xf32> -> vector<2x8x128xf32>
    "tpu.trace_stop"() : () -> ()
    %103 = arith.addf %82, %102 : vector<2x8x128xf32>
    %104 = arith.mulf %55, %34 : vector<2x8x128xf32>
    %105 = arith.truncf %104 : vector<2x8x128xf32> to vector<2x8x128xbf16>
    "tpu.trace_start"() <{level = 10 : i32, message = "bqd,bkd->bqk"}> : () -> ()
    %cst_27 = arith.constant dense<0.000000e+00> : vector<2x8x8xf32>
    %106 = tpu.matmul %105, %60, %cst_27 {dimension_numbers = #tpu.dot_dimension_numbers<[2], [2], [1], [1], [0, 0, 0, 1, 1, 1], [0], [0]>} : vector<2x8x128xbf16>, vector<2x8x128xbf16>, vector<2x8x8xf32> -> vector<2x8x8xf32>
    "tpu.trace_stop"() : () -> ()
    %cst_28 = arith.constant 0.176776692 : f32
    %107 = vector.broadcast %cst_28 : f32 to vector<2x8x8xf32>
    %108 = arith.mulf %106, %107 : vector<2x8x8xf32>
    %109 = arith.addf %108, %6 : vector<2x8x8xf32>
    %cst_29 = arith.constant dense<0xFF800000> : vector<2x8xf32>
    %110 = vector.multi_reduction <maximumf>, %109, %cst_29 [2] : vector<2x8x8xf32> to vector<2x8xf32>
    %111 = vector.shape_cast %110 : vector<2x8xf32> to vector<2x8x1xf32>
    %112 = vector.broadcast %111 : vector<2x8x1xf32> to vector<2x8x8xf32>
    %113 = arith.subf %109, %112 : vector<2x8x8xf32>
    %114 = math.exp %113 : vector<2x8x8xf32>
    %cst_30 = arith.constant dense<0.000000e+00> : vector<2x8xf32>
    %115 = vector.multi_reduction <add>, %114, %cst_30 [2] : vector<2x8x8xf32> to vector<2x8xf32>
    %116 = vector.shape_cast %115 : vector<2x8xf32> to vector<2x8x1xf32>
    %117 = tpu.reciprocal %116 {approx = true} : vector<2x8x1xf32> -> vector<2x8x1xf32>
    %118 = vector.broadcast %117 : vector<2x8x1xf32> to vector<2x8x8xf32>
    %119 = arith.mulf %114, %118 : vector<2x8x8xf32>
    %120 = arith.mulf %59, %34 : vector<2x8x128xf32>
    %121 = arith.truncf %120 : vector<2x8x128xf32> to vector<2x8x128xbf16>
    %122 = arith.truncf %119 : vector<2x8x8xf32> to vector<2x8x8xbf16>
    "tpu.trace_start"() <{level = 10 : i32, message = "bqk,bkd->bqd"}> : () -> ()
    %cst_31 = arith.constant dense<0.000000e+00> : vector<2x8x128xf32>
    %123 = tpu.matmul %122, %121, %cst_31 {dimension_numbers = #tpu.dot_dimension_numbers<[2], [1], [1], [2], [0, 0, 0, 1, 1, 2], [0], [0]>} : vector<2x8x8xbf16>, vector<2x8x128xbf16>, vector<2x8x128xf32> -> vector<2x8x128xf32>
    "tpu.trace_stop"() : () -> ()
    %124 = arith.addf %103, %123 : vector<2x8x128xf32>
    %125 = arith.mulf %55, %43 : vector<2x8x128xf32>
    %126 = arith.truncf %125 : vector<2x8x128xf32> to vector<2x8x128xbf16>
    "tpu.trace_start"() <{level = 10 : i32, message = "bqd,bkd->bqk"}> : () -> ()
    %cst_32 = arith.constant dense<0.000000e+00> : vector<2x8x8xf32>
    %127 = tpu.matmul %126, %60, %cst_32 {dimension_numbers = #tpu.dot_dimension_numbers<[2], [2], [1], [1], [0, 0, 0, 1, 1, 1], [0], [0]>} : vector<2x8x128xbf16>, vector<2x8x128xbf16>, vector<2x8x8xf32> -> vector<2x8x8xf32>
    "tpu.trace_stop"() : () -> ()
    %cst_33 = arith.constant 0.176776692 : f32
    %128 = vector.broadcast %cst_33 : f32 to vector<2x8x8xf32>
    %129 = arith.mulf %127, %128 : vector<2x8x8xf32>
    %130 = arith.addf %129, %6 : vector<2x8x8xf32>
    %cst_34 = arith.constant dense<0xFF800000> : vector<2x8xf32>
    %131 = vector.multi_reduction <maximumf>, %130, %cst_34 [2] : vector<2x8x8xf32> to vector<2x8xf32>
    %132 = vector.shape_cast %131 : vector<2x8xf32> to vector<2x8x1xf32>
    %133 = vector.broadcast %132 : vector<2x8x1xf32> to vector<2x8x8xf32>
    %134 = arith.subf %130, %133 : vector<2x8x8xf32>
    %135 = math.exp %134 : vector<2x8x8xf32>
    %cst_35 = arith.constant dense<0.000000e+00> : vector<2x8xf32>
    %136 = vector.multi_reduction <add>, %135, %cst_35 [2] : vector<2x8x8xf32> to vector<2x8xf32>
    %137 = vector.shape_cast %136 : vector<2x8xf32> to vector<2x8x1xf32>
    %138 = tpu.reciprocal %137 {approx = true} : vector<2x8x1xf32> -> vector<2x8x1xf32>
    %139 = vector.broadcast %138 : vector<2x8x1xf32> to vector<2x8x8xf32>
    %140 = arith.mulf %135, %139 : vector<2x8x8xf32>
    %141 = arith.mulf %59, %43 : vector<2x8x128xf32>
    %142 = arith.truncf %141 : vector<2x8x128xf32> to vector<2x8x128xbf16>
    %143 = arith.truncf %140 : vector<2x8x8xf32> to vector<2x8x8xbf16>
    "tpu.trace_start"() <{level = 10 : i32, message = "bqk,bkd->bqd"}> : () -> ()
    %cst_36 = arith.constant dense<0.000000e+00> : vector<2x8x128xf32>
    %144 = tpu.matmul %143, %142, %cst_36 {dimension_numbers = #tpu.dot_dimension_numbers<[2], [1], [1], [2], [0, 0, 0, 1, 1, 2], [0], [0]>} : vector<2x8x8xbf16>, vector<2x8x128xbf16>, vector<2x8x128xf32> -> vector<2x8x128xf32>
    "tpu.trace_stop"() : () -> ()
    %145 = arith.addf %124, %144 : vector<2x8x128xf32>
    %146 = vector.shape_cast %145 : vector<2x8x128xf32> to vector<16x128xf32>
    %147 = arith.truncf %146 : vector<16x128xf32> to vector<16x128xbf16>
    %c0_37 = arith.constant 0 : index
    %c0_38 = arith.constant 0 : index
    %c0_39 = arith.constant 0 : index
    %148 = vector.load %arg4[%c0_37, %c0_38, %c0_39] : memref<2x128x128xbf16, #tpu.memory_space<vmem>>, vector<1x128x128xbf16>
    %149 = vector.shape_cast %148 : vector<1x128x128xbf16> to vector<128x128xbf16>
    %cst_40 = arith.constant dense<0.000000e+00> : vector<16x128xf32>
    %150 = tpu.matmul %147, %149, %cst_40 {dimension_numbers = #tpu.dot_dimension_numbers<[1], [0], [0], [1], [0, 0, 1, 1], [], []>} : vector<16x128xbf16>, vector<128x128xbf16>, vector<16x128xf32> -> vector<16x128xf32>
    %c0_41 = arith.constant 0 : index
    %c0_42 = arith.constant 0 : index
    %c0_43 = arith.constant 0 : index
    %151 = vector.load %arg5[%c0_41, %c0_42, %c0_43] : memref<2x1x128xf32, #tpu.memory_space<vmem>>, vector<1x1x128xf32>
    %152 = vector.shape_cast %151 : vector<1x1x128xf32> to vector<1x128xf32>
    %153 = vector.broadcast %152 : vector<1x128xf32> to vector<16x128xf32>
    %154 = arith.addf %150, %153 : vector<16x128xf32>
    %155 = arith.addf %45, %154 : vector<16x128xf32>
    %c0_44 = arith.constant 0 : index
    %c0_45 = arith.constant 0 : index
    %c0_46 = arith.constant 0 : index
    %156 = vector.load %arg6[%c0_44, %c0_45, %c0_46] : memref<2x1x128xf32, #tpu.memory_space<vmem>>, vector<1x1x128xf32>
    %157 = vector.shape_cast %156 : vector<1x1x128xf32> to vector<1x128xf32>
    %c0_47 = arith.constant 0 : index
    %c0_48 = arith.constant 0 : index
    %c0_49 = arith.constant 0 : index
    %158 = vector.load %arg7[%c0_47, %c0_48, %c0_49] : memref<2x1x128xf32, #tpu.memory_space<vmem>>, vector<1x1x128xf32>
    %159 = vector.shape_cast %158 : vector<1x1x128xf32> to vector<1x128xf32>
    %cst_50 = arith.constant dense<0.000000e+00> : vector<16xf32>
    %160 = vector.multi_reduction <add>, %155, %cst_50 [1] : vector<16x128xf32> to vector<16xf32>
    %161 = vector.shape_cast %160 : vector<16xf32> to vector<16x1xf32>
    %cst_51 = arith.constant 1.280000e+02 : f32
    %162 = vector.broadcast %cst_51 : f32 to vector<16x1xf32>
    %163 = arith.divf %161, %162 : vector<16x1xf32>
    %164 = vector.broadcast %163 : vector<16x1xf32> to vector<16x128xf32>
    %165 = arith.subf %155, %164 : vector<16x128xf32>
    %166 = arith.mulf %165, %165 : vector<16x128xf32>
    %cst_52 = arith.constant dense<0.000000e+00> : vector<16xf32>
    %167 = vector.multi_reduction <add>, %166, %cst_52 [1] : vector<16x128xf32> to vector<16xf32>
    %168 = vector.shape_cast %167 : vector<16xf32> to vector<16x1xf32>
    %cst_53 = arith.constant 1.280000e+02 : f32
    %169 = vector.broadcast %cst_53 : f32 to vector<16x1xf32>
    %170 = arith.divf %168, %169 : vector<16x1xf32>
    %171 = vector.broadcast %163 : vector<16x1xf32> to vector<16x128xf32>
    %172 = arith.subf %155, %171 : vector<16x128xf32>
    %cst_54 = arith.constant 9.99999974E-6 : f32
    %173 = vector.broadcast %cst_54 : f32 to vector<16x1xf32>
    %174 = arith.addf %170, %173 : vector<16x1xf32>
    %175 = math.rsqrt %174 : vector<16x1xf32>
    %176 = vector.broadcast %175 : vector<16x1xf32> to vector<16x128xf32>
    %177 = arith.mulf %172, %176 : vector<16x128xf32>
    %178 = vector.broadcast %157 : vector<1x128xf32> to vector<16x128xf32>
    %179 = arith.mulf %177, %178 : vector<16x128xf32>
    %180 = vector.broadcast %159 : vector<1x128xf32> to vector<16x128xf32>
    %181 = arith.addf %179, %180 : vector<16x128xf32>
    %182 = arith.truncf %181 : vector<16x128xf32> to vector<16x128xbf16>
    %c0_55 = arith.constant 0 : index
    %c0_56 = arith.constant 0 : index
    %c0_57 = arith.constant 0 : index
    %183 = vector.load %arg8[%c0_55, %c0_56, %c0_57] : memref<2x128x256xbf16, #tpu.memory_space<vmem>>, vector<1x128x256xbf16>
    %184 = vector.shape_cast %183 : vector<1x128x256xbf16> to vector<128x256xbf16>
    %cst_58 = arith.constant dense<0.000000e+00> : vector<16x256xf32>
    %185 = tpu.matmul %182, %184, %cst_58 {dimension_numbers = #tpu.dot_dimension_numbers<[1], [0], [0], [1], [0, 0, 1, 1], [], []>} : vector<16x128xbf16>, vector<128x256xbf16>, vector<16x256xf32> -> vector<16x256xf32>
    %c0_59 = arith.constant 0 : index
    %c0_60 = arith.constant 0 : index
    %c0_61 = arith.constant 0 : index
    %186 = vector.load %arg9[%c0_59, %c0_60, %c0_61] : memref<2x1x256xf32, #tpu.memory_space<vmem>>, vector<1x1x256xf32>
    %187 = vector.shape_cast %186 : vector<1x1x256xf32> to vector<1x256xf32>
    %188 = vector.broadcast %187 : vector<1x256xf32> to vector<16x256xf32>
    %189 = arith.addf %185, %188 : vector<16x256xf32>
    %190 = arith.mulf %189, %189 : vector<16x256xf32>
    %191 = arith.mulf %189, %190 : vector<16x256xf32>
    %cst_62 = arith.constant 4.471500e-02 : f32
    %192 = vector.broadcast %cst_62 : f32 to vector<16x256xf32>
    %193 = arith.mulf %192, %191 : vector<16x256xf32>
    %194 = arith.addf %189, %193 : vector<16x256xf32>
    %cst_63 = arith.constant 0.797884583 : f32
    %195 = vector.broadcast %cst_63 : f32 to vector<16x256xf32>
    %196 = arith.mulf %195, %194 : vector<16x256xf32>
    %197 = math.tanh %196 : vector<16x256xf32>
    %cst_64 = arith.constant 1.000000e+00 : f32
    %198 = vector.broadcast %cst_64 : f32 to vector<16x256xf32>
    %199 = arith.addf %198, %197 : vector<16x256xf32>
    %cst_65 = arith.constant 5.000000e-01 : f32
    %200 = vector.broadcast %cst_65 : f32 to vector<16x256xf32>
    %201 = arith.mulf %200, %199 : vector<16x256xf32>
    %202 = arith.mulf %189, %201 : vector<16x256xf32>
    %203 = arith.truncf %202 : vector<16x256xf32> to vector<16x256xbf16>
    %c0_66 = arith.constant 0 : index
    %c0_67 = arith.constant 0 : index
    %c0_68 = arith.constant 0 : index
    %204 = vector.load %arg10[%c0_66, %c0_67, %c0_68] : memref<2x256x128xbf16, #tpu.memory_space<vmem>>, vector<1x256x128xbf16>
    %205 = vector.shape_cast %204 : vector<1x256x128xbf16> to vector<256x128xbf16>
    %cst_69 = arith.constant dense<0.000000e+00> : vector<16x128xf32>
    %206 = tpu.matmul %203, %205, %cst_69 {dimension_numbers = #tpu.dot_dimension_numbers<[1], [0], [0], [1], [0, 0, 1, 1], [], []>} : vector<16x256xbf16>, vector<256x128xbf16>, vector<16x128xf32> -> vector<16x128xf32>
    %c0_70 = arith.constant 0 : index
    %c0_71 = arith.constant 0 : index
    %c0_72 = arith.constant 0 : index
    %207 = vector.load %arg11[%c0_70, %c0_71, %c0_72] : memref<2x1x128xf32, #tpu.memory_space<vmem>>, vector<1x1x128xf32>
    %208 = vector.shape_cast %207 : vector<1x1x128xf32> to vector<1x128xf32>
    %209 = vector.broadcast %208 : vector<1x128xf32> to vector<16x128xf32>
    %210 = arith.addf %206, %209 : vector<16x128xf32>
    %211 = arith.addf %181, %210 : vector<16x128xf32>
    %c0_73 = arith.constant 0 : index
    %c0_74 = arith.constant 0 : index
    %c0_75 = arith.constant 0 : index
    %212 = vector.load %arg12[%c0_73, %c0_74, %c0_75] : memref<2x1x128xf32, #tpu.memory_space<vmem>>, vector<1x1x128xf32>
    %213 = vector.shape_cast %212 : vector<1x1x128xf32> to vector<1x128xf32>
    %c0_76 = arith.constant 0 : index
    %c0_77 = arith.constant 0 : index
    %c0_78 = arith.constant 0 : index
    %214 = vector.load %arg13[%c0_76, %c0_77, %c0_78] : memref<2x1x128xf32, #tpu.memory_space<vmem>>, vector<1x1x128xf32>
    %215 = vector.shape_cast %214 : vector<1x1x128xf32> to vector<1x128xf32>
    %cst_79 = arith.constant dense<0.000000e+00> : vector<16xf32>
    %216 = vector.multi_reduction <add>, %211, %cst_79 [1] : vector<16x128xf32> to vector<16xf32>
    %217 = vector.shape_cast %216 : vector<16xf32> to vector<16x1xf32>
    %cst_80 = arith.constant 1.280000e+02 : f32
    %218 = vector.broadcast %cst_80 : f32 to vector<16x1xf32>
    %219 = arith.divf %217, %218 : vector<16x1xf32>
    %220 = vector.broadcast %219 : vector<16x1xf32> to vector<16x128xf32>
    %221 = arith.subf %211, %220 : vector<16x128xf32>
    %222 = arith.mulf %221, %221 : vector<16x128xf32>
    %cst_81 = arith.constant dense<0.000000e+00> : vector<16xf32>
    %223 = vector.multi_reduction <add>, %222, %cst_81 [1] : vector<16x128xf32> to vector<16xf32>
    %224 = vector.shape_cast %223 : vector<16xf32> to vector<16x1xf32>
    %cst_82 = arith.constant 1.280000e+02 : f32
    %225 = vector.broadcast %cst_82 : f32 to vector<16x1xf32>
    %226 = arith.divf %224, %225 : vector<16x1xf32>
    %227 = vector.broadcast %219 : vector<16x1xf32> to vector<16x128xf32>
    %228 = arith.subf %211, %227 : vector<16x128xf32>
    %cst_83 = arith.constant 9.99999974E-6 : f32
    %229 = vector.broadcast %cst_83 : f32 to vector<16x1xf32>
    %230 = arith.addf %226, %229 : vector<16x1xf32>
    %231 = math.rsqrt %230 : vector<16x1xf32>
    %232 = vector.broadcast %231 : vector<16x1xf32> to vector<16x128xf32>
    %233 = arith.mulf %228, %232 : vector<16x128xf32>
    %234 = vector.broadcast %213 : vector<1x128xf32> to vector<16x128xf32>
    %235 = arith.mulf %233, %234 : vector<16x128xf32>
    %236 = vector.broadcast %215 : vector<1x128xf32> to vector<16x128xf32>
    %237 = arith.addf %235, %236 : vector<16x128xf32>
    %238 = arith.truncf %237 : vector<16x128xf32> to vector<16x128xbf16>
    %c1 = arith.constant 1 : index
    %c0_84 = arith.constant 0 : index
    %c0_85 = arith.constant 0 : index
    %239 = vector.load %arg2[%c1, %c0_84, %c0_85] : memref<2x128x384xbf16, #tpu.memory_space<vmem>>, vector<1x128x384xbf16>
    %240 = vector.shape_cast %239 : vector<1x128x384xbf16> to vector<128x384xbf16>
    %cst_86 = arith.constant dense<0.000000e+00> : vector<16x384xf32>
    %241 = tpu.matmul %238, %240, %cst_86 {dimension_numbers = #tpu.dot_dimension_numbers<[1], [0], [0], [1], [0, 0, 1, 1], [], []>} : vector<16x128xbf16>, vector<128x384xbf16>, vector<16x384xf32> -> vector<16x384xf32>
    %c1_87 = arith.constant 1 : index
    %c0_88 = arith.constant 0 : index
    %c0_89 = arith.constant 0 : index
    %242 = vector.load %arg3[%c1_87, %c0_88, %c0_89] : memref<2x1x384xf32, #tpu.memory_space<vmem>>, vector<1x1x384xf32>
    %243 = vector.shape_cast %242 : vector<1x1x384xf32> to vector<1x384xf32>
    %244 = vector.broadcast %243 : vector<1x384xf32> to vector<16x384xf32>
    %245 = arith.addf %241, %244 : vector<16x384xf32>
    %246 = vector.extract_strided_slice %245 {offsets = [0, 0], sizes = [16, 128], strides = [1, 1]} : vector<16x384xf32> to vector<16x128xf32>
    %247 = vector.shape_cast %246 : vector<16x128xf32> to vector<2x8x128xf32>
    %248 = vector.extract_strided_slice %245 {offsets = [0, 128], sizes = [16, 128], strides = [1, 1]} : vector<16x384xf32> to vector<16x128xf32>
    %249 = vector.shape_cast %248 : vector<16x128xf32> to vector<2x8x128xf32>
    %250 = vector.extract_strided_slice %245 {offsets = [0, 256], sizes = [16, 128], strides = [1, 1]} : vector<16x384xf32> to vector<16x128xf32>
    %251 = vector.shape_cast %250 : vector<16x128xf32> to vector<2x8x128xf32>
    %252 = arith.truncf %249 : vector<2x8x128xf32> to vector<2x8x128xbf16>
    %cst_90 = arith.constant 0.000000e+00 : f32
    %253 = vector.broadcast %cst_90 : f32 to vector<2x8x128xf32>
    %254 = arith.mulf %247, %16 : vector<2x8x128xf32>
    %255 = arith.truncf %254 : vector<2x8x128xf32> to vector<2x8x128xbf16>
    "tpu.trace_start"() <{level = 10 : i32, message = "bqd,bkd->bqk"}> : () -> ()
    %cst_91 = arith.constant dense<0.000000e+00> : vector<2x8x8xf32>
    %256 = tpu.matmul %255, %252, %cst_91 {dimension_numbers = #tpu.dot_dimension_numbers<[2], [2], [1], [1], [0, 0, 0, 1, 1, 1], [0], [0]>} : vector<2x8x128xbf16>, vector<2x8x128xbf16>, vector<2x8x8xf32> -> vector<2x8x8xf32>
    "tpu.trace_stop"() : () -> ()
    %cst_92 = arith.constant 0.176776692 : f32
    %257 = vector.broadcast %cst_92 : f32 to vector<2x8x8xf32>
    %258 = arith.mulf %256, %257 : vector<2x8x8xf32>
    %259 = arith.addf %258, %6 : vector<2x8x8xf32>
    %cst_93 = arith.constant dense<0xFF800000> : vector<2x8xf32>
    %260 = vector.multi_reduction <maximumf>, %259, %cst_93 [2] : vector<2x8x8xf32> to vector<2x8xf32>
    %261 = vector.shape_cast %260 : vector<2x8xf32> to vector<2x8x1xf32>
    %262 = vector.broadcast %261 : vector<2x8x1xf32> to vector<2x8x8xf32>
    %263 = arith.subf %259, %262 : vector<2x8x8xf32>
    %264 = math.exp %263 : vector<2x8x8xf32>
    %cst_94 = arith.constant dense<0.000000e+00> : vector<2x8xf32>
    %265 = vector.multi_reduction <add>, %264, %cst_94 [2] : vector<2x8x8xf32> to vector<2x8xf32>
    %266 = vector.shape_cast %265 : vector<2x8xf32> to vector<2x8x1xf32>
    %267 = tpu.reciprocal %266 {approx = true} : vector<2x8x1xf32> -> vector<2x8x1xf32>
    %268 = vector.broadcast %267 : vector<2x8x1xf32> to vector<2x8x8xf32>
    %269 = arith.mulf %264, %268 : vector<2x8x8xf32>
    %270 = arith.mulf %251, %16 : vector<2x8x128xf32>
    %271 = arith.truncf %270 : vector<2x8x128xf32> to vector<2x8x128xbf16>
    %272 = arith.truncf %269 : vector<2x8x8xf32> to vector<2x8x8xbf16>
    "tpu.trace_start"() <{level = 10 : i32, message = "bqk,bkd->bqd"}> : () -> ()
    %cst_95 = arith.constant dense<0.000000e+00> : vector<2x8x128xf32>
    %273 = tpu.matmul %272, %271, %cst_95 {dimension_numbers = #tpu.dot_dimension_numbers<[2], [1], [1], [2], [0, 0, 0, 1, 1, 2], [0], [0]>} : vector<2x8x8xbf16>, vector<2x8x128xbf16>, vector<2x8x128xf32> -> vector<2x8x128xf32>
    "tpu.trace_stop"() : () -> ()
    %274 = arith.addf %253, %273 : vector<2x8x128xf32>
    %275 = arith.mulf %247, %25 : vector<2x8x128xf32>
    %276 = arith.truncf %275 : vector<2x8x128xf32> to vector<2x8x128xbf16>
    "tpu.trace_start"() <{level = 10 : i32, message = "bqd,bkd->bqk"}> : () -> ()
    %cst_96 = arith.constant dense<0.000000e+00> : vector<2x8x8xf32>
    %277 = tpu.matmul %276, %252, %cst_96 {dimension_numbers = #tpu.dot_dimension_numbers<[2], [2], [1], [1], [0, 0, 0, 1, 1, 1], [0], [0]>} : vector<2x8x128xbf16>, vector<2x8x128xbf16>, vector<2x8x8xf32> -> vector<2x8x8xf32>
    "tpu.trace_stop"() : () -> ()
    %cst_97 = arith.constant 0.176776692 : f32
    %278 = vector.broadcast %cst_97 : f32 to vector<2x8x8xf32>
    %279 = arith.mulf %277, %278 : vector<2x8x8xf32>
    %280 = arith.addf %279, %6 : vector<2x8x8xf32>
    %cst_98 = arith.constant dense<0xFF800000> : vector<2x8xf32>
    %281 = vector.multi_reduction <maximumf>, %280, %cst_98 [2] : vector<2x8x8xf32> to vector<2x8xf32>
    %282 = vector.shape_cast %281 : vector<2x8xf32> to vector<2x8x1xf32>
    %283 = vector.broadcast %282 : vector<2x8x1xf32> to vector<2x8x8xf32>
    %284 = arith.subf %280, %283 : vector<2x8x8xf32>
    %285 = math.exp %284 : vector<2x8x8xf32>
    %cst_99 = arith.constant dense<0.000000e+00> : vector<2x8xf32>
    %286 = vector.multi_reduction <add>, %285, %cst_99 [2] : vector<2x8x8xf32> to vector<2x8xf32>
    %287 = vector.shape_cast %286 : vector<2x8xf32> to vector<2x8x1xf32>
    %288 = tpu.reciprocal %287 {approx = true} : vector<2x8x1xf32> -> vector<2x8x1xf32>
    %289 = vector.broadcast %288 : vector<2x8x1xf32> to vector<2x8x8xf32>
    %290 = arith.mulf %285, %289 : vector<2x8x8xf32>
    %291 = arith.mulf %251, %25 : vector<2x8x128xf32>
    %292 = arith.truncf %291 : vector<2x8x128xf32> to vector<2x8x128xbf16>
    %293 = arith.truncf %290 : vector<2x8x8xf32> to vector<2x8x8xbf16>
    "tpu.trace_start"() <{level = 10 : i32, message = "bqk,bkd->bqd"}> : () -> ()
    %cst_100 = arith.constant dense<0.000000e+00> : vector<2x8x128xf32>
    %294 = tpu.matmul %293, %292, %cst_100 {dimension_numbers = #tpu.dot_dimension_numbers<[2], [1], [1], [2], [0, 0, 0, 1, 1, 2], [0], [0]>} : vector<2x8x8xbf16>, vector<2x8x128xbf16>, vector<2x8x128xf32> -> vector<2x8x128xf32>
    "tpu.trace_stop"() : () -> ()
    %295 = arith.addf %274, %294 : vector<2x8x128xf32>
    %296 = arith.mulf %247, %34 : vector<2x8x128xf32>
    %297 = arith.truncf %296 : vector<2x8x128xf32> to vector<2x8x128xbf16>
    "tpu.trace_start"() <{level = 10 : i32, message = "bqd,bkd->bqk"}> : () -> ()
    %cst_101 = arith.constant dense<0.000000e+00> : vector<2x8x8xf32>
    %298 = tpu.matmul %297, %252, %cst_101 {dimension_numbers = #tpu.dot_dimension_numbers<[2], [2], [1], [1], [0, 0, 0, 1, 1, 1], [0], [0]>} : vector<2x8x128xbf16>, vector<2x8x128xbf16>, vector<2x8x8xf32> -> vector<2x8x8xf32>
    "tpu.trace_stop"() : () -> ()
    %cst_102 = arith.constant 0.176776692 : f32
    %299 = vector.broadcast %cst_102 : f32 to vector<2x8x8xf32>
    %300 = arith.mulf %298, %299 : vector<2x8x8xf32>
    %301 = arith.addf %300, %6 : vector<2x8x8xf32>
    %cst_103 = arith.constant dense<0xFF800000> : vector<2x8xf32>
    %302 = vector.multi_reduction <maximumf>, %301, %cst_103 [2] : vector<2x8x8xf32> to vector<2x8xf32>
    %303 = vector.shape_cast %302 : vector<2x8xf32> to vector<2x8x1xf32>
    %304 = vector.broadcast %303 : vector<2x8x1xf32> to vector<2x8x8xf32>
    %305 = arith.subf %301, %304 : vector<2x8x8xf32>
    %306 = math.exp %305 : vector<2x8x8xf32>
    %cst_104 = arith.constant dense<0.000000e+00> : vector<2x8xf32>
    %307 = vector.multi_reduction <add>, %306, %cst_104 [2] : vector<2x8x8xf32> to vector<2x8xf32>
    %308 = vector.shape_cast %307 : vector<2x8xf32> to vector<2x8x1xf32>
    %309 = tpu.reciprocal %308 {approx = true} : vector<2x8x1xf32> -> vector<2x8x1xf32>
    %310 = vector.broadcast %309 : vector<2x8x1xf32> to vector<2x8x8xf32>
    %311 = arith.mulf %306, %310 : vector<2x8x8xf32>
    %312 = arith.mulf %251, %34 : vector<2x8x128xf32>
    %313 = arith.truncf %312 : vector<2x8x128xf32> to vector<2x8x128xbf16>
    %314 = arith.truncf %311 : vector<2x8x8xf32> to vector<2x8x8xbf16>
    "tpu.trace_start"() <{level = 10 : i32, message = "bqk,bkd->bqd"}> : () -> ()
    %cst_105 = arith.constant dense<0.000000e+00> : vector<2x8x128xf32>
    %315 = tpu.matmul %314, %313, %cst_105 {dimension_numbers = #tpu.dot_dimension_numbers<[2], [1], [1], [2], [0, 0, 0, 1, 1, 2], [0], [0]>} : vector<2x8x8xbf16>, vector<2x8x128xbf16>, vector<2x8x128xf32> -> vector<2x8x128xf32>
    "tpu.trace_stop"() : () -> ()
    %316 = arith.addf %295, %315 : vector<2x8x128xf32>
    %317 = arith.mulf %247, %43 : vector<2x8x128xf32>
    %318 = arith.truncf %317 : vector<2x8x128xf32> to vector<2x8x128xbf16>
    "tpu.trace_start"() <{level = 10 : i32, message = "bqd,bkd->bqk"}> : () -> ()
    %cst_106 = arith.constant dense<0.000000e+00> : vector<2x8x8xf32>
    %319 = tpu.matmul %318, %252, %cst_106 {dimension_numbers = #tpu.dot_dimension_numbers<[2], [2], [1], [1], [0, 0, 0, 1, 1, 1], [0], [0]>} : vector<2x8x128xbf16>, vector<2x8x128xbf16>, vector<2x8x8xf32> -> vector<2x8x8xf32>
    "tpu.trace_stop"() : () -> ()
    %cst_107 = arith.constant 0.176776692 : f32
    %320 = vector.broadcast %cst_107 : f32 to vector<2x8x8xf32>
    %321 = arith.mulf %319, %320 : vector<2x8x8xf32>
    %322 = arith.addf %321, %6 : vector<2x8x8xf32>
    %cst_108 = arith.constant dense<0xFF800000> : vector<2x8xf32>
    %323 = vector.multi_reduction <maximumf>, %322, %cst_108 [2] : vector<2x8x8xf32> to vector<2x8xf32>
    %324 = vector.shape_cast %323 : vector<2x8xf32> to vector<2x8x1xf32>
    %325 = vector.broadcast %324 : vector<2x8x1xf32> to vector<2x8x8xf32>
    %326 = arith.subf %322, %325 : vector<2x8x8xf32>
    %327 = math.exp %326 : vector<2x8x8xf32>
    %cst_109 = arith.constant dense<0.000000e+00> : vector<2x8xf32>
    %328 = vector.multi_reduction <add>, %327, %cst_109 [2] : vector<2x8x8xf32> to vector<2x8xf32>
    %329 = vector.shape_cast %328 : vector<2x8xf32> to vector<2x8x1xf32>
    %330 = tpu.reciprocal %329 {approx = true} : vector<2x8x1xf32> -> vector<2x8x1xf32>
    %331 = vector.broadcast %330 : vector<2x8x1xf32> to vector<2x8x8xf32>
    %332 = arith.mulf %327, %331 : vector<2x8x8xf32>
    %333 = arith.mulf %251, %43 : vector<2x8x128xf32>
    %334 = arith.truncf %333 : vector<2x8x128xf32> to vector<2x8x128xbf16>
    %335 = arith.truncf %332 : vector<2x8x8xf32> to vector<2x8x8xbf16>
    "tpu.trace_start"() <{level = 10 : i32, message = "bqk,bkd->bqd"}> : () -> ()
    %cst_110 = arith.constant dense<0.000000e+00> : vector<2x8x128xf32>
    %336 = tpu.matmul %335, %334, %cst_110 {dimension_numbers = #tpu.dot_dimension_numbers<[2], [1], [1], [2], [0, 0, 0, 1, 1, 2], [0], [0]>} : vector<2x8x8xbf16>, vector<2x8x128xbf16>, vector<2x8x128xf32> -> vector<2x8x128xf32>
    "tpu.trace_stop"() : () -> ()
    %337 = arith.addf %316, %336 : vector<2x8x128xf32>
    %338 = vector.shape_cast %337 : vector<2x8x128xf32> to vector<16x128xf32>
    %339 = arith.truncf %338 : vector<16x128xf32> to vector<16x128xbf16>
    %c1_111 = arith.constant 1 : index
    %c0_112 = arith.constant 0 : index
    %c0_113 = arith.constant 0 : index
    %340 = vector.load %arg4[%c1_111, %c0_112, %c0_113] : memref<2x128x128xbf16, #tpu.memory_space<vmem>>, vector<1x128x128xbf16>
    %341 = vector.shape_cast %340 : vector<1x128x128xbf16> to vector<128x128xbf16>
    %cst_114 = arith.constant dense<0.000000e+00> : vector<16x128xf32>
    %342 = tpu.matmul %339, %341, %cst_114 {dimension_numbers = #tpu.dot_dimension_numbers<[1], [0], [0], [1], [0, 0, 1, 1], [], []>} : vector<16x128xbf16>, vector<128x128xbf16>, vector<16x128xf32> -> vector<16x128xf32>
    %c1_115 = arith.constant 1 : index
    %c0_116 = arith.constant 0 : index
    %c0_117 = arith.constant 0 : index
    %343 = vector.load %arg5[%c1_115, %c0_116, %c0_117] : memref<2x1x128xf32, #tpu.memory_space<vmem>>, vector<1x1x128xf32>
    %344 = vector.shape_cast %343 : vector<1x1x128xf32> to vector<1x128xf32>
    %345 = vector.broadcast %344 : vector<1x128xf32> to vector<16x128xf32>
    %346 = arith.addf %342, %345 : vector<16x128xf32>
    %347 = arith.addf %237, %346 : vector<16x128xf32>
    %c1_118 = arith.constant 1 : index
    %c0_119 = arith.constant 0 : index
    %c0_120 = arith.constant 0 : index
    %348 = vector.load %arg6[%c1_118, %c0_119, %c0_120] : memref<2x1x128xf32, #tpu.memory_space<vmem>>, vector<1x1x128xf32>
    %349 = vector.shape_cast %348 : vector<1x1x128xf32> to vector<1x128xf32>
    %c1_121 = arith.constant 1 : index
    %c0_122 = arith.constant 0 : index
    %c0_123 = arith.constant 0 : index
    %350 = vector.load %arg7[%c1_121, %c0_122, %c0_123] : memref<2x1x128xf32, #tpu.memory_space<vmem>>, vector<1x1x128xf32>
    %351 = vector.shape_cast %350 : vector<1x1x128xf32> to vector<1x128xf32>
    %cst_124 = arith.constant dense<0.000000e+00> : vector<16xf32>
    %352 = vector.multi_reduction <add>, %347, %cst_124 [1] : vector<16x128xf32> to vector<16xf32>
    %353 = vector.shape_cast %352 : vector<16xf32> to vector<16x1xf32>
    %cst_125 = arith.constant 1.280000e+02 : f32
    %354 = vector.broadcast %cst_125 : f32 to vector<16x1xf32>
    %355 = arith.divf %353, %354 : vector<16x1xf32>
    %356 = vector.broadcast %355 : vector<16x1xf32> to vector<16x128xf32>
    %357 = arith.subf %347, %356 : vector<16x128xf32>
    %358 = arith.mulf %357, %357 : vector<16x128xf32>
    %cst_126 = arith.constant dense<0.000000e+00> : vector<16xf32>
    %359 = vector.multi_reduction <add>, %358, %cst_126 [1] : vector<16x128xf32> to vector<16xf32>
    %360 = vector.shape_cast %359 : vector<16xf32> to vector<16x1xf32>
    %cst_127 = arith.constant 1.280000e+02 : f32
    %361 = vector.broadcast %cst_127 : f32 to vector<16x1xf32>
    %362 = arith.divf %360, %361 : vector<16x1xf32>
    %363 = vector.broadcast %355 : vector<16x1xf32> to vector<16x128xf32>
    %364 = arith.subf %347, %363 : vector<16x128xf32>
    %cst_128 = arith.constant 9.99999974E-6 : f32
    %365 = vector.broadcast %cst_128 : f32 to vector<16x1xf32>
    %366 = arith.addf %362, %365 : vector<16x1xf32>
    %367 = math.rsqrt %366 : vector<16x1xf32>
    %368 = vector.broadcast %367 : vector<16x1xf32> to vector<16x128xf32>
    %369 = arith.mulf %364, %368 : vector<16x128xf32>
    %370 = vector.broadcast %349 : vector<1x128xf32> to vector<16x128xf32>
    %371 = arith.mulf %369, %370 : vector<16x128xf32>
    %372 = vector.broadcast %351 : vector<1x128xf32> to vector<16x128xf32>
    %373 = arith.addf %371, %372 : vector<16x128xf32>
    %374 = arith.truncf %373 : vector<16x128xf32> to vector<16x128xbf16>
    %c1_129 = arith.constant 1 : index
    %c0_130 = arith.constant 0 : index
    %c0_131 = arith.constant 0 : index
    %375 = vector.load %arg8[%c1_129, %c0_130, %c0_131] : memref<2x128x256xbf16, #tpu.memory_space<vmem>>, vector<1x128x256xbf16>
    %376 = vector.shape_cast %375 : vector<1x128x256xbf16> to vector<128x256xbf16>
    %cst_132 = arith.constant dense<0.000000e+00> : vector<16x256xf32>
    %377 = tpu.matmul %374, %376, %cst_132 {dimension_numbers = #tpu.dot_dimension_numbers<[1], [0], [0], [1], [0, 0, 1, 1], [], []>} : vector<16x128xbf16>, vector<128x256xbf16>, vector<16x256xf32> -> vector<16x256xf32>
    %c1_133 = arith.constant 1 : index
    %c0_134 = arith.constant 0 : index
    %c0_135 = arith.constant 0 : index
    %378 = vector.load %arg9[%c1_133, %c0_134, %c0_135] : memref<2x1x256xf32, #tpu.memory_space<vmem>>, vector<1x1x256xf32>
    %379 = vector.shape_cast %378 : vector<1x1x256xf32> to vector<1x256xf32>
    %380 = vector.broadcast %379 : vector<1x256xf32> to vector<16x256xf32>
    %381 = arith.addf %377, %380 : vector<16x256xf32>
    %382 = arith.mulf %381, %381 : vector<16x256xf32>
    %383 = arith.mulf %381, %382 : vector<16x256xf32>
    %cst_136 = arith.constant 4.471500e-02 : f32
    %384 = vector.broadcast %cst_136 : f32 to vector<16x256xf32>
    %385 = arith.mulf %384, %383 : vector<16x256xf32>
    %386 = arith.addf %381, %385 : vector<16x256xf32>
    %cst_137 = arith.constant 0.797884583 : f32
    %387 = vector.broadcast %cst_137 : f32 to vector<16x256xf32>
    %388 = arith.mulf %387, %386 : vector<16x256xf32>
    %389 = math.tanh %388 : vector<16x256xf32>
    %cst_138 = arith.constant 1.000000e+00 : f32
    %390 = vector.broadcast %cst_138 : f32 to vector<16x256xf32>
    %391 = arith.addf %390, %389 : vector<16x256xf32>
    %cst_139 = arith.constant 5.000000e-01 : f32
    %392 = vector.broadcast %cst_139 : f32 to vector<16x256xf32>
    %393 = arith.mulf %392, %391 : vector<16x256xf32>
    %394 = arith.mulf %381, %393 : vector<16x256xf32>
    %395 = arith.truncf %394 : vector<16x256xf32> to vector<16x256xbf16>
    %c1_140 = arith.constant 1 : index
    %c0_141 = arith.constant 0 : index
    %c0_142 = arith.constant 0 : index
    %396 = vector.load %arg10[%c1_140, %c0_141, %c0_142] : memref<2x256x128xbf16, #tpu.memory_space<vmem>>, vector<1x256x128xbf16>
    %397 = vector.shape_cast %396 : vector<1x256x128xbf16> to vector<256x128xbf16>
    %cst_143 = arith.constant dense<0.000000e+00> : vector<16x128xf32>
    %398 = tpu.matmul %395, %397, %cst_143 {dimension_numbers = #tpu.dot_dimension_numbers<[1], [0], [0], [1], [0, 0, 1, 1], [], []>} : vector<16x256xbf16>, vector<256x128xbf16>, vector<16x128xf32> -> vector<16x128xf32>
    %c1_144 = arith.constant 1 : index
    %c0_145 = arith.constant 0 : index
    %c0_146 = arith.constant 0 : index
    %399 = vector.load %arg11[%c1_144, %c0_145, %c0_146] : memref<2x1x128xf32, #tpu.memory_space<vmem>>, vector<1x1x128xf32>
    %400 = vector.shape_cast %399 : vector<1x1x128xf32> to vector<1x128xf32>
    %401 = vector.broadcast %400 : vector<1x128xf32> to vector<16x128xf32>
    %402 = arith.addf %398, %401 : vector<16x128xf32>
    %403 = arith.addf %373, %402 : vector<16x128xf32>
    %c1_147 = arith.constant 1 : index
    %c0_148 = arith.constant 0 : index
    %c0_149 = arith.constant 0 : index
    %404 = vector.load %arg12[%c1_147, %c0_148, %c0_149] : memref<2x1x128xf32, #tpu.memory_space<vmem>>, vector<1x1x128xf32>
    %405 = vector.shape_cast %404 : vector<1x1x128xf32> to vector<1x128xf32>
    %c1_150 = arith.constant 1 : index
    %c0_151 = arith.constant 0 : index
    %c0_152 = arith.constant 0 : index
    %406 = vector.load %arg13[%c1_150, %c0_151, %c0_152] : memref<2x1x128xf32, #tpu.memory_space<vmem>>, vector<1x1x128xf32>
    %407 = vector.shape_cast %406 : vector<1x1x128xf32> to vector<1x128xf32>
    %cst_153 = arith.constant dense<0.000000e+00> : vector<16xf32>
    %408 = vector.multi_reduction <add>, %403, %cst_153 [1] : vector<16x128xf32> to vector<16xf32>
    %409 = vector.shape_cast %408 : vector<16xf32> to vector<16x1xf32>
    %cst_154 = arith.constant 1.280000e+02 : f32
    %410 = vector.broadcast %cst_154 : f32 to vector<16x1xf32>
    %411 = arith.divf %409, %410 : vector<16x1xf32>
    %412 = vector.broadcast %411 : vector<16x1xf32> to vector<16x128xf32>
    %413 = arith.subf %403, %412 : vector<16x128xf32>
    %414 = arith.mulf %413, %413 : vector<16x128xf32>
    %cst_155 = arith.constant dense<0.000000e+00> : vector<16xf32>
    %415 = vector.multi_reduction <add>, %414, %cst_155 [1] : vector<16x128xf32> to vector<16xf32>
    %416 = vector.shape_cast %415 : vector<16xf32> to vector<16x1xf32>
    %cst_156 = arith.constant 1.280000e+02 : f32
    %417 = vector.broadcast %cst_156 : f32 to vector<16x1xf32>
    %418 = arith.divf %416, %417 : vector<16x1xf32>
    %419 = vector.broadcast %411 : vector<16x1xf32> to vector<16x128xf32>
    %420 = arith.subf %403, %419 : vector<16x128xf32>
    %cst_157 = arith.constant 9.99999974E-6 : f32
    %421 = vector.broadcast %cst_157 : f32 to vector<16x1xf32>
    %422 = arith.addf %418, %421 : vector<16x1xf32>
    %423 = math.rsqrt %422 : vector<16x1xf32>
    %424 = vector.broadcast %423 : vector<16x1xf32> to vector<16x128xf32>
    %425 = arith.mulf %420, %424 : vector<16x128xf32>
    %426 = vector.broadcast %405 : vector<1x128xf32> to vector<16x128xf32>
    %427 = arith.mulf %425, %426 : vector<16x128xf32>
    %428 = vector.broadcast %407 : vector<1x128xf32> to vector<16x128xf32>
    %429 = arith.addf %427, %428 : vector<16x128xf32>
    %430 = vector.shape_cast %429 : vector<16x128xf32> to vector<2x8x128xf32>
    %c0_158 = arith.constant 0 : index
    %c0_159 = arith.constant 0 : index
    %c0_160 = arith.constant 0 : index
    %431 = vector.load %arg18[%c0_158, %c0_159, %c0_160] : memref<2x8x128xf32, #tpu.memory_space<vmem>>, vector<2x8x128xf32>
    tpu.vector_store %arg18[%c0_158, %c0_159, %c0_160], %430 {strides = array<i32>} : memref<2x8x128xf32, #tpu.memory_space<vmem>>, vector<2x8x128xf32>,
    %432 = vector.extract_strided_slice %430 {offsets = [0, 0, 0], sizes = [2, 1, 128], strides = [1, 1, 1]} : vector<2x8x128xf32> to vector<2x1x128xf32>
    %433 = vector.shape_cast %432 : vector<2x1x128xf32> to vector<2x128xf32>
    %434 = arith.truncf %433 : vector<2x128xf32> to vector<2x128xbf16>
    %c0_161 = arith.constant 0 : index
    %c0_162 = arith.constant 0 : index
    %435 = vector.load %arg14[%c0_161, %c0_162] : memref<128x512xbf16, #tpu.memory_space<vmem>>, vector<128x512xbf16>
    %cst_163 = arith.constant dense<0.000000e+00> : vector<2x512xf32>
    %436 = tpu.matmul %434, %435, %cst_163 {dimension_numbers = #tpu.dot_dimension_numbers<[1], [0], [0], [1], [0, 0, 1, 1], [], []>} : vector<2x128xbf16>, vector<128x512xbf16>, vector<2x512xf32> -> vector<2x512xf32>
    %c0_164 = arith.constant 0 : index
    %c0_165 = arith.constant 0 : index
    %437 = vector.load %arg15[%c0_164, %c0_165] : memref<1x512xf32, #tpu.memory_space<vmem>>, vector<1x512xf32>
    %438 = vector.broadcast %437 : vector<1x512xf32> to vector<2x512xf32>
    %439 = arith.addf %436, %438 : vector<2x512xf32>
    %cst_166 = arith.constant 0.000000e+00 : f32
    %440 = vector.broadcast %cst_166 : f32 to vector<2x512xf32>
    %441 = arith.maximumf %439, %440 : vector<2x512xf32>
    %442 = arith.truncf %441 : vector<2x512xf32> to vector<2x512xbf16>
    %c0_167 = arith.constant 0 : index
    %c0_168 = arith.constant 0 : index
    %443 = vector.load %arg16[%c0_167, %c0_168] : memref<512x8xbf16, #tpu.memory_space<vmem>>, vector<512x8xbf16>
    %cst_169 = arith.constant dense<0.000000e+00> : vector<2x8xf32>
    %444 = tpu.matmul %442, %443, %cst_169 {dimension_numbers = #tpu.dot_dimension_numbers<[1], [0], [0], [1], [0, 0, 1, 1], [], []>} : vector<2x512xbf16>, vector<512x8xbf16>, vector<2x8xf32> -> vector<2x8xf32>
    %c0_170 = arith.constant 0 : index
    %c0_171 = arith.constant 0 : index
    %445 = vector.load %arg17[%c0_170, %c0_171] : memref<1x8xf32, #tpu.memory_space<vmem>>, vector<1x8xf32>
    %446 = vector.broadcast %445 : vector<1x8xf32> to vector<2x8xf32>
    %447 = arith.addf %444, %446 : vector<2x8xf32>
    %c0_172 = arith.constant 0 : index
    %c0_173 = arith.constant 0 : index
    %448 = vector.load %arg19[%c0_172, %c0_173] : memref<2x8xf32, #tpu.memory_space<vmem>>, vector<2x8xf32>
    tpu.vector_store %arg19[%c0_172, %c0_173], %447 {strides = array<i32>} : memref<2x8xf32, #tpu.memory_space<vmem>>, vector<2x8xf32>,
    return
  }
}

</mosaic_0001>

<bundles_post_ra>
// kernel: tpu_custom_call.1
= control target key start
LH: loop header
LB: loop body
LE: loop exit
PB: predicated region body
PF: predicated region fallthrough
CT: control target
= control target key end

     0   :  { %s6487_s0 = inlined_call_operand.vmem [shape: f32[2,8,128], index: 0, kind: input, shape index: {}]   ;;  %s6488_s1 = inlined_call_operand.vmem [shape: f32[2,1,8], index: 1, kind: input, shape index: {}]   ;;  %s6489_s2 = inlined_call_operand.hbm [shape: bf16[2,128,384], index: 2, kind: input, shape index: {}]   ;;  %s6490_s3 = inlined_call_operand.vmem [shape: f32[2,1,384], index: 3, kind: input, shape index: {}]   ;;  %s6491_s4 = inlined_call_operand.hbm [shape: bf16[2,128,128], index: 4, kind: input, shape index: {}]   ;;  %s6492_s5 = inlined_call_operand.hbm [shape: f32[2,1,128], index: 5, kind: input, shape index: {}]   ;;  %s6493_s6 = inlined_call_operand.hbm [shape: f32[2,1,128], index: 6, kind: input, shape index: {}]   ;;  %s6494_s7 = inlined_call_operand.hbm [shape: f32[2,1,128], index: 7, kind: input, shape index: {}]   ;;  %s6495_s8 = inlined_call_operand.vmem [shape: bf16[2,128,256], index: 8, kind: input, shape index: {}]   ;;  %s6496_s9 = inlined_call_operand.vmem [shape: f32[2,1,256], index: 9, kind: input, shape index: {}]   ;;  %s6497_s10 = inlined_call_operand.hbm [shape: bf16[2,256,128], index: 10, kind: input, shape index: {}]   ;;  %s6498_s11 = inlined_call_operand.hbm [shape: f32[2,1,128], index: 11, kind: input, shape index: {}]   ;;  %s6499_s12 = inlined_call_operand.hbm [shape: f32[2,1,128], index: 12, kind: input, shape index: {}]   ;;  %s6500_s13 = inlined_call_operand.hbm [shape: f32[2,1,128], index: 13, kind: input, shape index: {}]   ;;  %s6501_s14 = inlined_call_operand.hbm [shape: bf16[128,512], index: 14, kind: input, shape index: {}]   ;;  %s6502_s15 = inlined_call_operand.hbm [shape: f32[1,512], index: 15, kind: input, shape index: {}]   ;;  %s6503_s16 = inlined_call_operand.vmem [shape: bf16[512,8], index: 16, kind: input, shape index: {}]   ;;  %s6504_s17 = inlined_call_operand.vmem [shape: f32[1,8], index: 17, kind: input, shape index: {}]   ;;  %s6505_s18 = inlined_call_operand.hbm [shape: f32[2,8,128], index: 18, kind: output, shape index: {0}]   ;;  %s6506_s19 = inlined_call_operand.hbm [shape: f32[2,8], index: 19, kind: output, shape index: {1}]  }
   0x1   :  { %6510 = sst [smem:[#allocation31_spill]] %s6487_s0 }
   0x2   :  { %6511 = sst [smem:[#allocation32_spill]] %s6488_s1 }
   0x3   :  { %6512 = sst [smem:[#allocation33_spill]] %s6489_s2 }
   0x4   :  { %6513 = sst [smem:[#allocation34_spill]] %s6490_s3 }
   0x5   :  { %25 = vsyncpa [#allocation3], 0 }
   0x6   :  { %26 = vsyncpa [#allocation6], 0 }
   0x7   :  { %27 = vsyncpa [#allocation9], 0 }
   0x8   :  { %28 = vsyncpa [#allocation12], 0 }
   0x9   :  { %29 = vsyncpa [#allocation15], 0 }
   0xa   :  { %30 = vsyncpa [#allocation18], 0 }
   0xb   :  { %31 = vsyncpa [#allocation4], 0 }
   0xc   :  { %32 = vsyncpa [#allocation22], 0  ;;  %s5634_s0 = smov [#allocation5]  }
   0xd   :  { %s56_s30 = sshll.u32 %s5634_s0, 4  ;;  %s57_s30 = int_to_ptr.vmem [resolvable:$true] %s56_s30 }
   0xe   :  { %s5366_s20 = scalar_lea.vmem %s57_s30, 2048  ;;  %p5371_p1 = scmp.lt.s32.totalorder %s57_s30, %s57_s30 }
   0xf   :  { %p5367_p0 = scmp.ne.s32.totalorder %s57_s30, %s5366_s20  ;;  %p5372_p2 = scmp.lt.s32.totalorder %s5366_s20, %s5366_s20 }
  0x11   :  { %p5373_p3 = por %p5372_p2, %p5371_p1 }
  0x13   :  { %p5374_p4 = pnand %p5373_p3, %p5367_p0 }
  0x15   :  { %5377 = shalt.err (!%p5374_p4)
}
  0x16   :  { %s5635_s21 = smov 64   ;;  %s5636_s1 = smov 4  }
  0x17   :  { %62 = dma.hbm_to_vmem [thread:$0]  %s6491_s4, 2048, %s57_s30, [#allocation6], %s5635_s21, %s5635_s21, %s5636_s1  }
  0x18   :  { %s5637_s23 = smov [#allocation8]   ;;  %s5638_s25 = smov [#allocation11]  }
  0x19   :  { %s80_s24 = sshll.u32 %s5637_s23, 4  ;;  %s108_s3 = sshll.u32 %s5638_s25, 4  ;;  %s81_s24 = int_to_ptr.vmem [resolvable:$true] %s80_s24  ;;  %s109_s3 = int_to_ptr.vmem [resolvable:$true] %s108_s3 }
  0x1a   :  { %s5386_s26 = scalar_lea.vmem %s81_s24, 32  ;;  %p5391_p6 = scmp.lt.s32.totalorder %s81_s24, %s81_s24 }
  0x1b   :  { %p5387_p5 = scmp.ne.s32.totalorder %s81_s24, %s5386_s26  ;;  %p5392_p7 = scmp.lt.s32.totalorder %s5386_s26, %s5386_s26 }
  0x1d   :  { %p5393_p8 = por %p5392_p7, %p5391_p6 }
  0x1f   :  { %p5394_p9 = pnand %p5393_p8, %p5387_p5 }
  0x21   :  { %5397 = shalt.err (!%p5394_p9)
}
  0x22   :  { %s5639_s27 = smov 16   ;;  %s5640_s28 = smov 1  }
  0x23   :  { %86 = dma.hbm_to_vmem [thread:$0]  %s6493_s6, 32, %s81_s24, [#allocation9], %s5639_s27, %s5639_s27, %s5640_s28  }
  0x24   :  { %s5406_s4 = scalar_lea.vmem %s109_s3, 4096  ;;  %p5411_p11 = scmp.lt.s32.totalorder %s109_s3, %s109_s3 }
  0x25   :  { %p5407_p10 = scmp.ne.s32.totalorder %s109_s3, %s5406_s4  ;;  %p5412_p12 = scmp.lt.s32.totalorder %s5406_s4, %s5406_s4 }
  0x27   :  { %p5413_p13 = por %p5412_p12, %p5411_p11 }
  0x29   :  { %p5414_p0 = pnand %p5413_p13, %p5407_p10 }
  0x2b   :  { %5417 = shalt.err (!%p5414_p0)
}
  0x2c   :  { %114 = dma.hbm_to_vmem [thread:$0]  %s6497_s10, 4096, %s109_s3, [#allocation12], %s5635_s21, %s5635_s21, %s5636_s1  }
  0x2d   :  { %s5641_s22 = smov [#allocation14]   ;;  %s5642_s23 = smov [#allocation17]  }
  0x2e   :  { %s132_s2 = sshll.u32 %s5641_s22, 4  ;;  %s156_s25 = sshll.u32 %s5642_s23, 4  ;;  %s133_s2 = int_to_ptr.vmem [resolvable:$true] %s132_s2  ;;  %s157_s25 = int_to_ptr.vmem [resolvable:$true] %s156_s25 }
  0x2f   :  { %s5426_s26 = scalar_lea.vmem %s133_s2, 32  ;;  %p5431_p2 = scmp.lt.s32.totalorder %s133_s2, %s133_s2 }
  0x30   :  { %p5427_p1 = scmp.ne.s32.totalorder %s133_s2, %s5426_s26  ;;  %p5432_p3 = scmp.lt.s32.totalorder %s5426_s26, %s5426_s26 }
  0x32   :  { %p5433_p4 = por %p5432_p3, %p5431_p2 }
  0x34   :  { %p5434_p5 = pnand %p5433_p4, %p5427_p1 }
  0x36   :  { %5437 = shalt.err (!%p5434_p5)
}
  0x37   :  { %138 = dma.hbm_to_vmem [thread:$0]  %s6499_s12, 32, %s133_s2, [#allocation15], %s5639_s27, %s5639_s27, %s5640_s28  }
  0x38   :  { %s5446_s10 = scalar_lea.vmem %s157_s25, 4096  ;;  %p5451_p7 = scmp.lt.s32.totalorder %s157_s25, %s157_s25 }
  0x39   :  { %p5447_p6 = scmp.ne.s32.totalorder %s157_s25, %s5446_s10  ;;  %p5452_p8 = scmp.lt.s32.totalorder %s5446_s10, %s5446_s10 }
  0x3b   :  { %p5453_p9 = por %p5452_p8, %p5451_p7 }
  0x3d   :  { %p5454_p10 = pnand %p5453_p9, %p5447_p6 }
  0x3f   :  { %5457 = shalt.err (!%p5454_p10)
}
  0x40   :  { %s5643_s21 = smov 256   ;;  %s5644_s29 = smov [#allocation2]  }
  0x41   :  { %162 = dma.hbm_to_vmem [thread:$0]  %s6501_s14, 4096, %s157_s25, [#allocation18], %s5643_s21, %s5643_s21, %s5639_s27  }
  0x42   :  { %s42_s0 = sshll.u32 %s5644_s29, 4  ;;  %s43_s0 = int_to_ptr.vmem [resolvable:$true] %s42_s0 }
  0x43   :  { %s5466_s4 = scalar_lea.vmem %s43_s0, 6144  ;;  %p5471_p12 = scmp.lt.s32.totalorder %s43_s0, %s43_s0 }
  0x44   :  { %p5467_p11 = scmp.ne.s32.totalorder %s43_s0, %s5466_s4  ;;  %p5472_p13 = scmp.lt.s32.totalorder %s5466_s4, %s5466_s4 }
  0x46   :  { %p5473_p0 = por %p5472_p13, %p5471_p12 }
  0x48   :  { %p5474_p1 = pnand %p5473_p0, %p5467_p11 }
  0x4a   :  { %5477 = shalt.err (!%p5474_p1)
}
  0x4b   :  { %s5645_s12 = smov 192   ;;  %s5646_s30 = smov 12  }
  0x4c   :  { %s6514_s2 = sld [smem:[#allocation33_spill]]  ;;  %s5647_s23 = smov [#allocation7]  }
  0x4d   :  { %s68_s26 = sshll.u32 %s5647_s23, 4  ;;  %s5648_s14 = smov [#allocation10]   ;;  %s69_s26 = int_to_ptr.vmem [resolvable:$true] %s68_s26 }
  0x4e   :  { %s92_s25 = sshll.u32 %s5648_s14, 4  ;;  %s5486_s6 = scalar_lea.vmem %s69_s26, 32  ;;  %s93_s25 = int_to_ptr.vmem [resolvable:$true] %s92_s25 }
  0x4f   :  { %p5487_p2 = scmp.ne.s32.totalorder %s69_s26, %s5486_s6  ;;  %p5491_p3 = scmp.lt.s32.totalorder %s69_s26, %s69_s26 }
  0x50   :  { %p5492_p4 = scmp.lt.s32.totalorder %s5486_s6, %s5486_s6 }
  0x52   :  { %48 = dma.hbm_to_vmem [thread:$0]  %s6514_s2, 6144, %s43_s0, [#allocation3], %s5645_s12, %s5645_s12, %s5646_s30  }
  0x53   :  { %p5493_p5 = por %p5492_p4, %p5491_p3 }
  0x55   :  { %p5494_p6 = pnand %p5493_p5, %p5487_p2 }
  0x57   :  { %5497 = shalt.err (!%p5494_p6)
}
  0x58   :  { %74 = dma.hbm_to_vmem [thread:$0]  %s6492_s5, 32, %s69_s26, [#allocation6], %s5639_s27, %s5639_s27, %s5640_s28  }
  0x59   :  { %s5506_s21 = scalar_lea.vmem %s93_s25, 32  ;;  %p5511_p8 = scmp.lt.s32.totalorder %s93_s25, %s93_s25 }
  0x5a   :  { %p5507_p7 = scmp.ne.s32.totalorder %s93_s25, %s5506_s21  ;;  %p5512_p9 = scmp.lt.s32.totalorder %s5506_s21, %s5506_s21 }
  0x5c   :  { %p5513_p10 = por %p5512_p9, %p5511_p8 }
  0x5e   :  { %p5514_p11 = pnand %p5513_p10, %p5507_p7 }
  0x60   :  { %5517 = shalt.err (!%p5514_p11)
}
  0x61   :  { %98 = dma.hbm_to_vmem [thread:$0]  %s6494_s7, 32, %s93_s25, [#allocation9], %s5639_s27, %s5639_s27, %s5640_s28  }
  0x62   :  { %s5649_s29 = smov [#allocation13]   ;;  %s5650_s4 = smov [#allocation16]  }
  0x63   :  { %s120_s0 = sshll.u32 %s5649_s29, 4  ;;  %s144_s5 = sshll.u32 %s5650_s4, 4  ;;  %s121_s0 = int_to_ptr.vmem [resolvable:$true] %s120_s0  ;;  %s145_s5 = int_to_ptr.vmem [resolvable:$true] %s144_s5 }
  0x64   :  { %s5526_s12 = scalar_lea.vmem %s121_s0, 32  ;;  %p5531_p13 = scmp.lt.s32.totalorder %s121_s0, %s121_s0 }
  0x65   :  { %p5527_p12 = scmp.ne.s32.totalorder %s121_s0, %s5526_s12  ;;  %p5532_p0 = scmp.lt.s32.totalorder %s5526_s12, %s5526_s12 }
  0x67   :  { %p5533_p1 = por %p5532_p0, %p5531_p13 }
  0x69   :  { %p5534_p2 = pnand %p5533_p1, %p5527_p12 }
  0x6b   :  { %5537 = shalt.err (!%p5534_p2)
}
  0x6c   :  { %126 = dma.hbm_to_vmem [thread:$0]  %s6498_s11, 32, %s121_s0, [#allocation12], %s5639_s27, %s5639_s27, %s5640_s28  }
  0x6d   :  { %s5546_s7 = scalar_lea.vmem %s145_s5, 32  ;;  %p5551_p4 = scmp.lt.s32.totalorder %s145_s5, %s145_s5 }
  0x6e   :  { %p5547_p3 = scmp.ne.s32.totalorder %s145_s5, %s5546_s7  ;;  %p5552_p5 = scmp.lt.s32.totalorder %s5546_s7, %s5546_s7 }
  0x70   :  { %p5553_p6 = por %p5552_p5, %p5551_p4 }
  0x72   :  { %p5554_p7 = pnand %p5553_p6, %p5547_p3 }
  0x74   :  { %5557 = shalt.err (!%p5554_p7)
}
  0x75   :  { %150 = dma.hbm_to_vmem [thread:$0]  %s6500_s13, 32, %s145_s5, [#allocation15], %s5639_s27, %s5639_s27, %s5640_s28  }
  0x76   :  { %s5651_s23 = smov [#allocation19]  }
  0x77   :  { %s169_s26 = sshll.u32 %s5651_s23, 4  ;;  %s170_s26 = int_to_ptr.vmem [resolvable:$true] %s169_s26 }
  0x78   :  { %s5566_s14 = scalar_lea.vmem %s170_s26, 64  ;;  %p5571_p9 = scmp.lt.s32.totalorder %s170_s26, %s170_s26 }
  0x79   :  { %p5567_p8 = scmp.ne.s32.totalorder %s170_s26, %s5566_s14  ;;  %p5572_p10 = scmp.lt.s32.totalorder %s5566_s14, %s5566_s14 }
  0x7b   :  { %p5573_p11 = por %p5572_p10, %p5571_p9 }
  0x7d   :  { %p5574_p12 = pnand %p5573_p11, %p5567_p8 }
  0x7f   :  { %5577 = shalt.err (!%p5574_p12)
}
  0x80   :  { %172 = dma.hbm_to_vmem [thread:$0]  %s6502_s15, 64, %s170_s26, [#allocation18]  }
  0x81   :  { %5618 = dma.done.wait [#allocation3], 6144  }
  0x82   :  { %5619 = vsyncadd [#allocation3], 4294961152 }
  0x83   :  { %5620 = dma.done.wait [#allocation6], 2080  }
  0x84   :  { %5621 = vsyncadd [#allocation6], 4294965216 }
  0x85   :  { %5622 = dma.done.wait [#allocation9], 64  }
  0x86   :  { %5623 = vsyncadd [#allocation9], 4294967232 }
  0x87   :  { %5624 = dma.done.wait [#allocation12], 4128  }
  0x88   :  { %5625 = vsyncadd [#allocation12], 4294963168 }
  0x89   :  { %5626 = dma.done.wait [#allocation15], 64  }
  0x8a   :  { %5627 = vsyncadd [#allocation15], 4294967232 }
  0x8b   :  { %5628 = dma.done.wait [#allocation18], 4160  }
  0x8c   :  { %5629 = vsyncadd [#allocation18], 4294963136  ;;  %v5652_v0 = vmov 0   ;;  %v5653_v1 = vmov 0.0   ;;  %vm5654_vm0 = vmmov 0   ;;  %s6515_s27 = sld [smem:[#allocation31_spill]]  ;;  %v219_v29 = vlaneseq }
  0x8d   :  { %463 = vmatprep.mubr.bf16.mxu0 %v5652_v0  ;;  %4723 = vmatprep.subr.bf16.mxu1 %v5653_v1  ;;  %v5020_v2 = vld [vmem:[#allocation2 + $0xac] ss:$12 sps:$4 sm:$0xff]   ;;  %v5022_v3 = vld [vmem:[#allocation2 + $0xa8] ss:$12 sps:$4 sm:$0xff]   ;;  %v5025_v5 = vld [vmem:[#allocation2 + $0x90] ss:$12 sps:$4 sm:$0xff]  }
  0x8e   :  { %4739 = vmatprep.mubr.msk.bf16.mxu1 %vm5654_vm0, %v5653_v1  ;;  %431 = vmatprep.subr.bf16.mxu0 %v5020_v2  ;;  %v5023_v4 = vld [vmem:[#allocation2 + $0x94] ss:$12 sps:$4 sm:$0xff]   ;;  %v5026_v6 = vld [vmem:[#allocation2 + $0x7c] ss:$12 sps:$4 sm:$0xff]   ;;  %v5028_v7 = vld [vmem:[#allocation2 + $0x78] ss:$12 sps:$4 sm:$0xff]  }
  0x8f   :  { %432 = vmatpush1.bf16.msra.mxu0 %v5022_v3  ;;  %v5029_v8 = vld [vmem:[#allocation2 + $0x64] ss:$12 sps:$4 sm:$0xff]   ;;  %v5031_v9 = vld [vmem:[#allocation2 + $0x60] ss:$12 sps:$4 sm:$0xff]   ;;  %v5034_v13 = vld [vmem:[#allocation2 + $0x48] ss:$12 sps:$4 sm:$0xff]  }
  0x90   :  { %433 = vmatprep.subr.bf16.mxu0 %v5023_v4  ;;  %v5032_v10 = vld [vmem:[#allocation2 + $0x4c] ss:$12 sps:$4 sm:$0xff]   ;;  %v5044_v11 = vld [vmem:[#allocation2 + $0xb0] ss:$12 sps:$4 sm:$0xff]   ;;  %v5035_v14 = vld [vmem:[#allocation2 + $0x34] ss:$12 sps:$4 sm:$0xff]  }
  0x91   :  { %4724 = vmatpush3.bf16.msra.mxu1 %v5044_v11  ;;  %v5045_v12 = vld [vmem:[#allocation2 + $0x98] ss:$12 sps:$4 sm:$0xff]   ;;  %v5046_v15 = vld [vmem:[#allocation2 + $0x80] ss:$12 sps:$4 sm:$0xff]   ;;  %v5037_v16 = vld [vmem:[#allocation2 + $0x30] ss:$12 sps:$4 sm:$0xff]  }
  0x92   :  { %4725 = vmatprep.subr.bf16.mxu1 %v5653_v1  ;;  %v5038_v17 = vld [vmem:[#allocation2 + $0x1c] ss:$12 sps:$4 sm:$0xff]   ;;  %v5040_v19 = vld [vmem:[#allocation2 + $0x18] ss:$12 sps:$4 sm:$0xff]   ;;  %v5043_v22 = vld [vmem:[#allocation2] ss:$12 sps:$4 sm:$0xff]  }
  0x93   :  { %434 = vmatpush1.bf16.msra.mxu0 %v5025_v5  ;;  %v5047_v18 = vld [vmem:[#allocation2 + $0x68] ss:$12 sps:$4 sm:$0xff]   ;;  %v5041_v20 = vld [vmem:[#allocation2 + $0x4] ss:$12 sps:$4 sm:$0xff]   ;;  %v5050_v27 = vld [vmem:[#allocation2 + $0x20] ss:$12 sps:$4 sm:$0xff]  }
  0x94   :  { %435 = vmatprep.subr.bf16.mxu0 %v5026_v6  ;;  %v5048_v21 = vld [vmem:[#allocation2 + $0x50] ss:$12 sps:$4 sm:$0xff]   ;;  %v251_v23 = vld [vmem:[%s6515_s27] sm:$0xff]  ;;  %v252_v24 = vld [vmem:[%s6515_s27 + $0x8] sm:$0xff]  ;;  %v5834_v30 = vshrl.u32 %v219_v29, 7  ;;  %s6516_s21 = sld [smem:[#allocation34_spill]] }
  0x95   :  { %4726 = vmatpush3.bf16.msra.mxu1 %v5045_v12  ;;  %v5049_v25 = vld [vmem:[#allocation2 + $0x38] ss:$12 sps:$4 sm:$0xff]   ;;  %v253_v26 = vpack.c.bf16 %v252_v24, %v251_v23  ;;  %v5051_v28 = vld [vmem:[#allocation2 + $0x8] ss:$12 sps:$4 sm:$0xff]   ;;  %v5845_v34 = vand.u32 127, %v219_v29  ;;  %vm753_vm5 = vcmask 1043456  }
  0x96   :  { %4727 = vmatprep.subr.bf16.mxu1 %v5653_v1  ;;  %v5837_v31 = vsub.s32 1, %v5834_v30  ;;  %v5840_v32 = vsub.s32 0, %v5834_v30  ;;  %v5891_v61 = vsub.s32 2, %v5834_v30  ;;  %s6517_s29 = sld [smem:[#allocation32_spill]]  ;;  %vm605_vm6 = vcmask 64512  }
  0x97   :  { %436 = vmatpush1.bf16.msra.mxu0 %v5028_v7  ;;  %vm232_vm1 = vcmp.lt.s32.totalorder %v5845_v34, 32  ;;  %vm236_vm2 = vcmp.ge.s32.totalorder %v5845_v34, 32  ;;  %vm237_vm3 = vcmp.lt.s32.totalorder %v5845_v34, 64  ;;  %vm241_vm7 = vcmp.ge.s32.totalorder %v5845_v34, 64 }
  0x98   :  { %437 = vmatprep.subr.bf16.mxu0 %v5029_v8  ;;  %v5855_v43 = vsel %vm232_vm1, 1.0, %v5653_v1  ;;  %vm238_vm4 = vmand %vm236_vm2, %vm237_vm3  ;;  %vm242_vm8 = vcmp.lt.s32.totalorder %v5845_v34, 96  ;;  %vm246_vm10 = vcmp.ge.s32.totalorder %v5845_v34, 96  ;;  %vm3657_vm11 = vcmask 1041409  }
  0x99   :  { %4728 = vmatpush3.bf16.msra.mxu1 %v5046_v15  ;;  %v5874_v56 = vsel %vm238_vm4, 1.0, %v5653_v1  ;;  %vm243_vm9 = vmand %vm241_vm7, %vm242_vm8 }
  0x9a   :  { %4729 = vmatprep.subr.bf16.mxu1 %v5653_v1  ;;  %v286_v33 = vld [vmem:[%s6516_s21] sm:$0x7] }
  0x9b   :  { %438 = vmatpush1.bf16.msra.mxu0 %v5031_v9  ;;  %v295_v35 = vrot.slane %v286_v33, %v5837_v31  ;;  %v291_v36 = vrot.slane %v286_v33, %v5840_v32  ;;  %v299_v62 = vrot.slane %v286_v33, %v5891_v61 }
  0x9c   :  { %439 = vmatprep.subr.bf16.mxu0 %v5032_v10  ;;  %v211_v9 = vld [vmem:[%s6517_s29] sm:$0x1]  ;;  %v212_v12 = vld [vmem:[%s6517_s29 + $0x1] sm:$0x1] }
  0x9d   :  { %4730 = vmatpush3.bf16.msra.mxu1 %v5047_v18  ;;  %v213_v10 = vsub.f32 1.0, %v211_v9 }
  0x9e   :  { %4731 = vmatprep.subr.bf16.mxu1 %v5653_v1 }
  0x9f   :  { %440 = vmatpush1.bf16.msra.mxu0 %v5034_v13  ;;  %v215_v11 = vmul.f32 -1e+09, %v213_v10 }
  0xa0   :  { %441 = vmatprep.subr.bf16.mxu0 %v5035_v14  ;;  %v214_v14 = vsub.f32 1.0, %v212_v12 }
  0xa1   :  { %4732 = vmatpush3.bf16.msra.mxu1 %v5048_v21  ;;  %v5913_v13 = vrot.slane %v215_v11, %v5840_v32 }
  0xa2   :  { %4733 = vmatprep.subr.bf16.mxu1 %v5653_v1 }
  0xa3   :  { %442 = vmatpush1.bf16.msra.mxu0 %v5037_v16 }
  0xa4   :  { %443 = vmatprep.subr.bf16.mxu0 %v5038_v17 }
  0xa5   :  { %4734 = vmatpush3.bf16.msra.mxu1 %v5049_v25 }
  0xa6   :  { %4735 = vmatprep.subr.bf16.mxu1 %v5653_v1 }
  0xa7   :  { %444 = vmatpush1.bf16.msra.mxu0 %v5040_v19  ;;  %v216_v19 = vmul.f32 -1e+09, %v214_v14 }
  0xa8   :  { %445 = vmatprep.subr.bf16.mxu0 %v5041_v20 }
  0xa9   :  { %4736 = vmatpush3.bf16.msra.mxu1 %v5050_v27  ;;  %v5918_v23 = vrot.slane %v216_v19, %v5840_v32 }
  0xaa   :  { %4737 = vmatprep.subr.bf16.mxu1 %v5653_v1 }
  0xab   :  { %446 = vmatpush1.bf16.msra.mxu0 %v5043_v22 }
  0xac   :  { %4767 = vmatprep.subr.bf16.mxu0 %v5653_v1 }
  0xad   :  { %4738 = vmatpush3.bf16.msra.mxu1 %v5051_v28 }
  0xae   :  { %464 = vmatmul.mubr.bf16.vlgmr.msra.gmra.mxu0 %v253_v26  ;;  %4743 = vmatprep.subr.bf16.mxu1 %v5653_v1 }
  0xaf   :  { %4769 = vmatprep.mubr.msk.bf16.mxu0 %vm5654_vm0, %v5653_v1 }
  0xb0   :  { %4740 = vmatmul.mubr.bf16.vlgmr.msra.gmra.mxu1 %v253_v26 }
  0xb1   :  { %4745 = vmatprep.mubr.msk.bf16.mxu1 %vm5654_vm0, %v5653_v1 }
 0x16e   :  { %v465_v37 = vpop.f32.mrf.mxu0 }
 0x16f   :  { %v5850_v40 = vadd.f32 %v465_v37, %v291_v36 }
 0x170   :  { %v467_v38 = vpop.f32.mrf.mxu0  ;;  %v508_v47 = vpop.f32.mrf.mxu1 }
 0x171   :  { %v468_v39 = vadd.f32 %v467_v38, %v295_v35  ;;  %v517_v45 = vmul.f32 %v5855_v43, %v5850_v40  ;;  %v634_v57 = vmul.f32 %v5874_v56, %v5850_v40  ;;  %v5894_v63 = vadd.f32 %v508_v47, %v299_v62 }
 0x172   :  { %v469_v41 = vpop.f32.mrf.mxu0  ;;  %v4741_v51 = vpop.f32.mrf.mxu1 }
 0x173   :  { %v5852_v42 = vpack.c.bf16 %v468_v39, %v468_v39  ;;  %v5861_v48 = vadd.f32 %v469_v41, %v291_v36  ;;  %v519_v49 = vpack.c.bf16 %v517_v45, %v517_v45  ;;  %v636_v58 = vpack.c.bf16 %v634_v57, %v634_v57 }
 0x174   :  { %v471_v44 = vpop.f32.mrf.mxu0  ;;  %v511_v52 = vpop.f32.mrf.mxu1  ;;  %v744_v3 = vmul.f32 %v5874_v56, %v5894_v63 }
 0x175   :  { %4744 = vmatpush3.bf16.xpose.msra.mxu1 %v5852_v42  ;;  %v472_v46 = vadd.f32 %v471_v44, %v295_v35  ;;  %v518_v53 = vmul.f32 %v5855_v43, %v5861_v48  ;;  %v635_v59 = vmul.f32 %v5874_v56, %v5861_v48  ;;  %v5896_v2 = vadd.f32 %v511_v52, %v299_v62 }
 0x176   :  { %4749 = vmatprep.subr.bf16.mxu1 %v5653_v1  ;;  %v4742_v54 = vpop.f32.mrf.mxu1  ;;  %v746_v5 = vpack.c.bf16 %v744_v3, %v744_v3 }
 0x177   :  { %v5863_v50 = vpack.c.bf16 %v472_v46, %v472_v46  ;;  %v520_v55 = vpack.c.bf16 %v518_v53, %v518_v53  ;;  %v637_v60 = vpack.c.bf16 %v635_v59, %v635_v59  ;;  %v745_v4 = vmul.f32 %v5874_v56, %v5896_v2 }
 0x178   :  { %v755_v7 = vsel %vm753_vm5, %v746_v5, 0 }
 0x179   :  { %v747_v6 = vpack.c.bf16 %v745_v4, %v745_v4  ;;  %4768 = vmatpush3.bf16.msra.mxu0 %v755_v7 }
 0x17a   :  { %4779 = vmatprep.subr.bf16.mxu0 %v5653_v1 }
 0x17b   :  { %v801_v8 = vsel %vm753_vm5, %v747_v6, 0 }
 0x17c   :  { %4746 = vmatmul.mubr.bf16.vlgmr.msra.gmra.mxu1 %v519_v49 }
 0x17d   :  { %4750 = vmatpush3.bf16.xpose.msra.mxu1 %v5863_v50  ;;  %4751 = vmatprep.mubr.msk.bf16.mxu1 %vm5654_vm0, %v5653_v1 }
 0x17e   :  { %4755 = vmatprep.subr.bf16.mxu1 %v5653_v1 }
 0x184   :  { %4752 = vmatmul.mubr.bf16.vlgmr.msra.gmra.mxu1 %v520_v55 }
 0x185   :  { %4756 = vmatpush3.bf16.xpose.msra.mxu1 %v5852_v42  ;;  %4757 = vmatprep.mubr.msk.bf16.mxu1 %vm5654_vm0, %v5653_v1 }
 0x186   :  { %4761 = vmatprep.subr.bf16.mxu1 %v5653_v1 }
 0x18c   :  { %4758 = vmatmul.mubr.bf16.vlgmr.msra.gmra.mxu1 %v636_v58 }
 0x18d   :  { %4762 = vmatpush3.bf16.xpose.msra.mxu1 %v5863_v50  ;;  %4763 = vmatprep.mubr.msk.bf16.mxu1 %vm5654_vm0, %v5653_v1 }
 0x18e   :  { %4773 = vmatprep.subr.bf16.mxu1 %v5653_v1 }
 0x194   :  { %4764 = vmatmul.mubr.bf16.vlgmr.msra.gmra.mxu1 %v637_v60 }
 0x195   :  { %4775 = vmatprep.mubr.msk.bf16.mxu1 %vm5654_vm0, %v5653_v1  ;;  %4774 = vmatpush3.bf16.msra.mxu1 %v801_v8 }
 0x196   :  { %4785 = vmatprep.subr.bf16.mxu1 %v5653_v1 }
 0x23c   :  { %v555_v15 = vpop.f32.mrf.mxu1 }
 0x23d   :  { %v601_v16 = vmul.f32 0.17677669, %v555_v15 }
 0x23e   :  { %v4747_v17 = vpop.f32.mrf.mxu1 }
 0x23f   :  { %v603_v18 = vadd.f32 %v601_v16, %v5913_v13 }
 0x240   :  { %v558_v20 = vpop.f32.mrf.mxu1 }
 0x241   :  { %v606_v21 = vsel %vm605_vm6, %v603_v18, -inf  ;;  %v628_v20 = vmul.f32 %v5855_v43, %v5894_v63 }
 0x242   :  { %v4748_v22 = vpop.f32.mrf.mxu1  ;;  %607 = vmax.xlane.f32.xlu1 %v606_v21 }
 0x244   :  { %v595_v24 = vpop.f32.mrf.mxu1 }
 0x245   :  { %v602_v25 = vmul.f32 0.17677669, %v595_v24 }
 0x246   :  { %v4753_v26 = vpop.f32.mrf.mxu1 }
 0x247   :  { %v604_v27 = vadd.f32 %v602_v25, %v5918_v23  ;;  %v630_v25 = vpack.c.bf16 %v628_v20, %v628_v20 }
 0x248   :  { %v598_v28 = vpop.f32.mrf.mxu1 }
 0x249   :  { %v609_v29 = vsel %vm605_vm6, %v604_v27, -inf  ;;  %v847_v28 = vsel %vm753_vm5, %v630_v25, 0 }
 0x24a   :  { %v4754_v33 = vpop.f32.mrf.mxu1  ;;  %610 = vmax.xlane.f32.xlu1 %v609_v29  ;;  %v629_v29 = vmul.f32 %v5855_v43, %v5896_v2 }
 0x24c   :  { %v672_v35 = vpop.f32.mrf.mxu1 }
 0x24d   :  { %v718_v36 = vmul.f32 0.17677669, %v672_v35 }
 0x24e   :  { %v4759_v37 = vpop.f32.mrf.mxu1 }
 0x24f   :  { %v720_v38 = vadd.f32 %v718_v36, %v5913_v13  ;;  %v631_v37 = vpack.c.bf16 %v629_v29, %v629_v29 }
 0x250   :  { %v675_v39 = vpop.f32.mrf.mxu1 }
 0x251   :  { %v722_v41 = vsel %vm605_vm6, %v720_v38, -inf }
 0x252   :  { %v4760_v44 = vpop.f32.mrf.mxu1  ;;  %723 = vmax.xlane.f32.xlu0 %v722_v41 }
 0x253   :  { %v5942_v44 = vsel %vm243_vm9, 1.0, %v5653_v1 }
 0x254   :  { %v712_v45 = vpop.f32.mrf.mxu1 }
 0x255   :  { %v719_v46 = vmul.f32 0.17677669, %v712_v45  ;;  %v893_v45 = vsel %vm753_vm5, %v631_v37, 0 }
 0x256   :  { %v4765_v47 = vpop.f32.mrf.mxu1 }
 0x257   :  { %v721_v49 = vadd.f32 %v719_v46, %v5918_v23  ;;  %v1045_v46 = vmul.f32 %v5942_v44, %v5894_v63 }
 0x258   :  { %v715_v51 = vpop.f32.mrf.mxu1 }
 0x259   :  { %v725_v52 = vsel %vm605_vm6, %v721_v49, -inf  ;;  %v1047_v51 = vpack.c.bf16 %v1045_v46, %v1045_v46 }
 0x25a   :  { %v4766_v53 = vpop.f32.mrf.mxu1  ;;  %726 = vmax.xlane.f32.xlu0 %v725_v52 }
 0x2cb   :  { %v608_v54 = vpop.xlane.xlu1 %607 }
 0x2cc   :  { %v612_v55 = vsub.f32 %v603_v18, %v608_v54  ;;  %v1055_v54 = vsel %vm753_vm5, %v1047_v51, 0 }
 0x2ce   :  { %v614_v59 = vmul.f32 1.442695, %v612_v55  ;;  %v1046_v55 = vmul.f32 %v5942_v44, %v5896_v2 }
 0x2d3   :  { %v611_v62 = vpop.xlane.xlu1 %610 }
 0x2d4   :  { %v613_v3 = vsub.f32 %v604_v27, %v611_v62 }
 0x2d6   :  { %v616_v6 = vmul.f32 1.442695, %v613_v3 }
 0x2db   :  { %v724_v57 = vpop.xlane.xlu0 %723 }
 0x2dc   :  { %v728_v58 = vsub.f32 %v720_v38, %v724_v57  ;;  %v936_v57 = vmul.f32 %v5942_v44, %v5861_v48 }
 0x2de   :  { %v730_v60 = vmul.f32 1.442695, %v728_v58  ;;  %v1048_v58 = vpack.c.bf16 %v1046_v55, %v1046_v55 }
 0x2e0   :  { %5260 = vpow2.f32 %v730_v60  ;;  %v1101_v60 = vsel %vm753_vm5, %v1048_v58, 0 }
 0x2e1   :  { %5262 = vpow2.f32 %v614_v59  ;;  %v938_v59 = vpack.c.bf16 %v936_v57, %v936_v57 }
 0x2e3   :  { %v727_v4 = vpop.xlane.xlu0 %726 }
 0x2e4   :  { %v729_v5 = vsub.f32 %v721_v49, %v727_v4  ;;  %v935_v49 = vmul.f32 %v5942_v44, %v5850_v40 }
 0x2e6   :  { %v732_v7 = vmul.f32 1.442695, %v729_v5  ;;  %v937_v53 = vpack.c.bf16 %v935_v49, %v935_v49 }
 0x2e8   :  { %5264 = vpow2.f32 %v732_v7 }
 0x2e9   :  { %5266 = vpow2.f32 %v616_v6 }
 0x2ed   :  { %v5261_v8 = vpop.eup %5260 }
 0x2ee   :  { %v734_v9 = vsel %vm605_vm6, %v5261_v8, 0.0  ;;  %v5263_v10 = vpop.eup %5262 }
 0x2ef   :  { %735 = vadd.xlane.f32.xlu0 %v734_v9  ;;  %v618_v11 = vsel %vm605_vm6, %v5263_v10, 0.0 }
 0x2f3   :  { %619 = vadd.xlane.f32.xlu0 %v618_v11 }
 0x2f5   :  { %v5265_v12 = vpop.eup %5264 }
 0x2f6   :  { %v737_v14 = vsel %vm605_vm6, %v5265_v12, 0.0  ;;  %v5267_v15 = vpop.eup %5266 }
 0x2f7   :  { %738 = vadd.xlane.f32.xlu1 %v737_v14  ;;  %v621_v16 = vsel %vm605_vm6, %v5267_v15, 0.0 }
 0x2fb   :  { %622 = vadd.xlane.f32.xlu1 %v621_v16 }
 0x378   :  { %v736_v17 = vpop.xlane.xlu0 %735 }
 0x379   :  { %5268 = vrcp.f32 %v736_v17 }
 0x37c   :  { %v620_v18 = vpop.xlane.xlu0 %619 }
 0x37d   :  { %5270 = vrcp.f32 %v620_v18 }
 0x380   :  { %v739_v19 = vpop.xlane.xlu1 %738 }
 0x381   :  { %5272 = vrcp.f32 %v739_v19 }
 0x384   :  { %v623_v21 = vpop.xlane.xlu1 %622 }
 0x385   :  { %5274 = vrcp.f32 %v623_v21 }
 0x386   :  { %v5269_v22 = vpop.eup %5268 }
 0x387   :  { %v742_v24 = vmul.f32 %v5269_v22, %v5261_v8 }
 0x389   :  { %v748_v26 = vpack.c.bf16 %v742_v24, %v742_v24 }
 0x38a   :  { %v5271_v27 = vpop.eup %5270 }
 0x38b   :  { %4770 = vmatmul.mubr.msk.bf16.vlgmr.msra.gmra.mxu0 %vm605_vm6, %v748_v26  ;;  %v626_v33 = vmul.f32 %v5271_v27, %v5263_v10 }
 0x38c   :  { %4780 = vmatpush3.bf16.msra.mxu0 %v847_v28  ;;  %4781 = vmatprep.mubr.msk.bf16.mxu0 %vm5654_vm0, %v5653_v1 }
 0x38d   :  { %4791 = vmatprep.subr.bf16.mxu0 %v5653_v1  ;;  %v632_v39 = vpack.c.bf16 %v626_v33, %v626_v33 }
 0x38e   :  { %v5273_v35 = vpop.eup %5272 }
 0x38f   :  { %v743_v36 = vmul.f32 %v5273_v35, %v5265_v12 }
 0x391   :  { %v749_v38 = vpack.c.bf16 %v743_v36, %v743_v36 }
 0x392   :  { %v5275_v41 = vpop.eup %5274 }
 0x393   :  { %4776 = vmatmul.mubr.msk.bf16.vlgmr.msra.gmra.mxu1 %vm605_vm6, %v749_v38  ;;  %4782 = vmatmul.mubr.msk.bf16.vlgmr.msra.gmra.mxu0 %vm605_vm6, %v632_v39  ;;  %v627_v47 = vmul.f32 %v5275_v41, %v5267_v15 }
 0x394   :  { %4786 = vmatpush3.bf16.msra.mxu1 %v893_v45  ;;  %4792 = vmatpush3.bf16.xpose.msra.mxu0 %v5852_v42 }
 0x395   :  { %4787 = vmatprep.mubr.msk.bf16.mxu1 %vm5654_vm0, %v5653_v1  ;;  %4793 = vmatprep.mubr.msk.bf16.mxu0 %vm5654_vm0, %v5653_v1  ;;  %v633_v52 = vpack.c.bf16 %v627_v47, %v627_v47 }
 0x396   :  { %4797 = vmatprep.subr.bf16.mxu1 %v5653_v1  ;;  %4803 = vmatprep.subr.bf16.mxu0 %v5653_v1 }
 0x39b   :  { %4788 = vmatmul.mubr.msk.bf16.vlgmr.msra.gmra.mxu1 %vm605_vm6, %v633_v52  ;;  %4794 = vmatmul.mubr.bf16.vlgmr.msra.gmra.mxu0 %v937_v53 }
 0x39c   :  { %4798 = vmatpush3.bf16.xpose.msra.mxu1 %v5863_v50  ;;  %4804 = vmatpush3.bf16.msra.mxu0 %v1055_v54 }
 0x39d   :  { %4799 = vmatprep.mubr.msk.bf16.mxu1 %vm5654_vm0, %v5653_v1  ;;  %4809 = vmatprep.subr.bf16.mxu1 %v5653_v1 }
 0x39e   :  { %4805 = vmatprep.mubr.msk.bf16.mxu0 %vm5654_vm0, %v5653_v1  ;;  %4815 = vmatprep.subr.bf16.mxu0 %v5653_v1 }
 0x3a3   :  { %4800 = vmatmul.mubr.bf16.vlgmr.msra.gmra.mxu1 %v938_v59 }
 0x3a4   :  { %4810 = vmatpush3.bf16.msra.mxu1 %v1101_v60  ;;  %4811 = vmatprep.mubr.msk.bf16.mxu1 %vm5654_vm0, %v5653_v1 }
 0x3a5   :  { %4821 = vmatprep.subr.bf16.mxu1 %v5653_v1 }
 0x44b   :  { %v791_v62 = vpop.f32.mrf.mxu0 }
 0x44d   :  { %v4771_v3 = vpop.f32.mrf.mxu0 }
 0x44e   :  { %v5987_v3 = vsel %vm246_vm10, 1.0, %v5653_v1 }
 0x44f   :  { %v794_v4 = vpop.f32.mrf.mxu0 }
 0x450   :  { %v1255_v4 = vmul.f32 %v5987_v3, %v5894_v63 }
 0x451   :  { %v4772_v5 = vpop.f32.mrf.mxu0 }
 0x452   :  { %v1145_v5 = vmul.f32 %v5987_v3, %v5850_v40  ;;  %v1146_v40 = vmul.f32 %v5987_v3, %v5861_v48 }
 0x453   :  { %v837_v6 = vpop.f32.mrf.mxu1  ;;  %v883_v7 = vpop.f32.mrf.mxu0 }
 0x454   :  { %v5975_v8 = vadd.f32 %v883_v7, %v791_v62  ;;  %v1257_v7 = vpack.c.bf16 %v1255_v4, %v1255_v4 }
 0x455   :  { %v4777_v9 = vpop.f32.mrf.mxu1  ;;  %v4783_v10 = vpop.f32.mrf.mxu0 }
 0x456   :  { %v1147_v10 = vpack.c.bf16 %v1145_v5, %v1145_v5  ;;  %v1265_v63 = vsel %vm753_vm5, %v1257_v7, 0  ;;  %v5053_v5 = vld [vmem:[#allocation5 + $0x30] sm:$0xff]   ;;  %v5054_v7 = vld [vmem:[#allocation5 + $0x28] sm:$0xff]  }
 0x457   :  { %v840_v11 = vpop.f32.mrf.mxu1  ;;  %v886_v12 = vpop.f32.mrf.mxu0 }
 0x458   :  { %v1148_v12 = vpack.c.bf16 %v1146_v40, %v1146_v40  ;;  %v5058_v40 = vld [vmem:[#allocation5 + $0x8] sm:$0xff]  }
 0x459   :  { %v4778_v14 = vpop.f32.mrf.mxu1  ;;  %v4784_v15 = vpop.f32.mrf.mxu0 }
 0x45b   :  { %v929_v16 = vpop.f32.mrf.mxu1  ;;  %v973_v17 = vpop.f32.mrf.mxu0 }
 0x45c   :  { %v5977_v18 = vadd.f32 %v929_v16, %v837_v6  ;;  %v1019_v19 = vmul.f32 0.17677669, %v973_v17 }
 0x45d   :  { %v4789_v20 = vpop.f32.mrf.mxu1  ;;  %v4795_v21 = vpop.f32.mrf.mxu0 }
 0x45e   :  { %v1021_v22 = vadd.f32 %v1019_v19, %v5913_v13 }
 0x45f   :  { %v932_v24 = vpop.f32.mrf.mxu1  ;;  %v976_v25 = vpop.f32.mrf.mxu0 }
 0x460   :  { %v1023_v26 = vsel %vm605_vm6, %v1021_v22, -inf }
 0x461   :  { %1024 = vmax.xlane.f32.xlu0 %v1023_v26  ;;  %v4790_v27 = vpop.f32.mrf.mxu1  ;;  %v4796_v28 = vpop.f32.mrf.mxu0 }
 0x463   :  { %v1013_v29 = vpop.f32.mrf.mxu1 }
 0x464   :  { %v1020_v33 = vmul.f32 0.17677669, %v1013_v29 }
 0x465   :  { %v4801_v35 = vpop.f32.mrf.mxu1 }
 0x466   :  { %v1022_v36 = vadd.f32 %v1020_v33, %v5918_v23 }
 0x467   :  { %v1016_v37 = vpop.f32.mrf.mxu1 }
 0x468   :  { %v1026_v38 = vsel %vm605_vm6, %v1022_v36, -inf }
 0x469   :  { %1027 = vmax.xlane.f32.xlu1 %v1026_v38  ;;  %v4802_v39 = vpop.f32.mrf.mxu1 }
 0x4ea   :  { %v1025_v41 = vpop.xlane.xlu0 %1024 }
 0x4eb   :  { %v1029_v45 = vsub.f32 %v1021_v22, %v1025_v41 }
 0x4ed   :  { %v1031_v46 = vmul.f32 1.442695, %v1029_v45 }
 0x4ef   :  { %5276 = vpow2.f32 %v1031_v46 }
 0x4f2   :  { %v1028_v47 = vpop.xlane.xlu1 %1027 }
 0x4f3   :  { %v1030_v49 = vsub.f32 %v1022_v36, %v1028_v47 }
 0x4f5   :  { %v1033_v51 = vmul.f32 1.442695, %v1030_v49 }
 0x4f7   :  { %5278 = vpow2.f32 %v1033_v51 }
 0x4fc   :  { %v5277_v52 = vpop.eup %5276 }
 0x4fd   :  { %v1035_v53 = vsel %vm605_vm6, %v5277_v52, 0.0 }
 0x4fe   :  { %1036 = vadd.xlane.f32.xlu0 %v1035_v53 }
 0x504   :  { %v5279_v54 = vpop.eup %5278 }
 0x505   :  { %v1038_v55 = vsel %vm605_vm6, %v5279_v54, 0.0 }
 0x506   :  { %1039 = vadd.xlane.f32.xlu1 %v1038_v55 }
 0x587   :  { %v1037_v57 = vpop.xlane.xlu0 %1036 }
 0x588   :  { %5280 = vrcp.f32 %v1037_v57 }
 0x58f   :  { %v1040_v58 = vpop.xlane.xlu1 %1039 }
 0x590   :  { %5282 = vrcp.f32 %v1040_v58 }
 0x595   :  { %v5281_v59 = vpop.eup %5280 }
 0x596   :  { %v1043_v60 = vmul.f32 %v5281_v59, %v5277_v52 }
 0x598   :  { %v1049_v62 = vpack.c.bf16 %v1043_v60, %v1043_v60 }
 0x59a   :  { %4806 = vmatmul.mubr.msk.bf16.vlgmr.msra.gmra.mxu0 %vm605_vm6, %v1049_v62  ;;  %v5052_v62 = vld [vmem:[#allocation5 + $0x38] sm:$0xff]  }
 0x59b   :  { %4816 = vmatpush3.bf16.xpose.msra.mxu0 %v5852_v42  ;;  %4817 = vmatprep.mubr.msk.bf16.mxu0 %vm5654_vm0, %v5653_v1  ;;  %v1256_v42 = vmul.f32 %v5987_v3, %v5896_v2 }
 0x59c   :  { %4827 = vmatprep.subr.bf16.mxu0 %v5653_v1 }
 0x59d   :  { %v5283_v34 = vpop.eup %5282  ;;  %v1258_v11 = vpack.c.bf16 %v1256_v42, %v1256_v42  ;;  %v5057_v42 = vld [vmem:[#allocation5 + $0x10] sm:$0xff]  }
 0x59e   :  { %v1044_v6 = vmul.f32 %v5283_v34, %v5279_v54 }
 0x59f   :  { %v1311_v2 = vsel %vm753_vm5, %v1258_v11, 0  ;;  %v5059_v11 = vld [vmem:[#allocation5] sm:$0xff]  }
 0x5a0   :  { %v1050_v9 = vpack.c.bf16 %v1044_v6, %v1044_v6 }
 0x5a2   :  { %4812 = vmatmul.mubr.msk.bf16.vlgmr.msra.gmra.mxu1 %vm605_vm6, %v1050_v9  ;;  %4818 = vmatmul.mubr.bf16.vlgmr.msra.gmra.mxu0 %v1147_v10  ;;  %v5055_v10 = vld [vmem:[#allocation5 + $0x20] sm:$0xff]  }
 0x5a3   :  { %4822 = vmatpush3.bf16.xpose.msra.mxu1 %v5863_v50  ;;  %4828 = vmatpush3.bf16.msra.mxu0 %v1265_v63  ;;  %v5056_v63 = vld [vmem:[#allocation5 + $0x18] sm:$0xff]  }
 0x5a4   :  { %4823 = vmatprep.mubr.msk.bf16.mxu1 %vm5654_vm0, %v5653_v1  ;;  %4833 = vmatprep.subr.bf16.mxu1 %v5653_v1 }
 0x5a5   :  { %4829 = vmatprep.mubr.msk.bf16.mxu0 %vm5654_vm0, %v5653_v1  ;;  %4839 = vmatprep.subr.bf16.mxu0 %v5653_v1 }
 0x5aa   :  { %4824 = vmatmul.mubr.bf16.vlgmr.msra.gmra.mxu1 %v1148_v12 }
 0x5ab   :  { %4834 = vmatpush3.bf16.msra.mxu1 %v1311_v2  ;;  %4835 = vmatprep.mubr.msk.bf16.mxu1 %vm5654_vm0, %v5653_v1 }
 0x65a   :  { %v1091_v50 = vpop.f32.mrf.mxu0 }
 0x65b   :  { %v6015_v14 = vadd.f32 %v1091_v50, %v5975_v8 }
 0x65c   :  { %v4807_v15 = vpop.f32.mrf.mxu0 }
 0x65e   :  { %v1094_v48 = vpop.f32.mrf.mxu0 }
 0x660   :  { %v4808_v16 = vpop.f32.mrf.mxu0 }
 0x662   :  { %v1137_v17 = vpop.f32.mrf.mxu1  ;;  %v1183_v19 = vpop.f32.mrf.mxu0 }
 0x663   :  { %v6018_v20 = vadd.f32 %v1137_v17, %v5977_v18  ;;  %v1229_v21 = vmul.f32 0.17677669, %v1183_v19 }
 0x664   :  { %v4813_v22 = vpop.f32.mrf.mxu1  ;;  %v4819_v24 = vpop.f32.mrf.mxu0 }
 0x665   :  { %v1231_v25 = vadd.f32 %v1229_v21, %v5913_v13 }
 0x666   :  { %v1140_v26 = vpop.f32.mrf.mxu1  ;;  %v1186_v27 = vpop.f32.mrf.mxu0 }
 0x667   :  { %v1233_v28 = vsel %vm605_vm6, %v1231_v25, -inf }
 0x668   :  { %1234 = vmax.xlane.f32.xlu0 %v1233_v28  ;;  %v4814_v8 = vpop.f32.mrf.mxu1  ;;  %v4820_v29 = vpop.f32.mrf.mxu0 }
 0x669   :  { %v5356_v8 = vld [vmem:[%s6515_s27] sm:$0xff] }
 0x66a   :  { %v1223_v33 = vpop.f32.mrf.mxu1 }
 0x66b   :  { %v1230_v35 = vmul.f32 0.17677669, %v1223_v33 }
 0x66c   :  { %v4825_v36 = vpop.f32.mrf.mxu1 }
 0x66d   :  { %v1232_v37 = vadd.f32 %v1230_v35, %v5918_v23 }
 0x66e   :  { %v1226_v38 = vpop.f32.mrf.mxu1 }
 0x66f   :  { %v1236_v18 = vsel %vm605_vm6, %v1232_v37, -inf  ;;  %v5062_v38 = vld [vmem:[%s6495_s8 + $0x74] ss:$8 sps:$4 sm:$0xff]  }
 0x670   :  { %1237 = vmax.xlane.f32.xlu1 %v1236_v18  ;;  %v4826_v39 = vpop.f32.mrf.mxu1  ;;  %1620 = vmatprep.subr.bf16.mxu1 %v5062_v38  ;;  %v5096_v38 = vld [vmem:[#allocation11 + $0x48] sm:$0xff]  }
 0x6f1   :  { %v1235_v41 = vpop.xlane.xlu0 %1234 }
 0x6f2   :  { %v1239_v45 = vsub.f32 %v1231_v25, %v1235_v41  ;;  %v4328_v25 = vld [vmem:[#allocation7] ss:$0 sm:$0xff] }
 0x6f4   :  { %v1241_v46 = vmul.f32 1.442695, %v1239_v45 }
 0x6f6   :  { %5284 = vpow2.f32 %v1241_v46 }
 0x6f9   :  { %v1238_v47 = vpop.xlane.xlu1 %1237 }
 0x6fa   :  { %v1240_v49 = vsub.f32 %v1232_v37, %v1238_v47  ;;  %v5060_v37 = vld [vmem:[%s6495_s8 + $0x70] ss:$8 sps:$4 sm:$0xff]  }
 0x6fc   :  { %v1243_v51 = vmul.f32 1.442695, %v1240_v49 }
 0x6fe   :  { %5286 = vpow2.f32 %v1243_v51 }
 0x703   :  { %v5285_v52 = vpop.eup %5284 }
 0x704   :  { %v1245_v53 = vsel %vm605_vm6, %v5285_v52, 0.0 }
 0x705   :  { %1246 = vadd.xlane.f32.xlu0 %v1245_v53  ;;  %v5063_v53 = vld [vmem:[%s6495_s8 + $0x60] ss:$8 sps:$4 sm:$0xff]  }
 0x70b   :  { %v5287_v54 = vpop.eup %5286 }
 0x70c   :  { %v1248_v55 = vsel %vm605_vm6, %v5287_v54, 0.0 }
 0x70d   :  { %1249 = vadd.xlane.f32.xlu1 %v1248_v55  ;;  %v5066_v55 = vld [vmem:[%s6495_s8 + $0x50] ss:$8 sps:$4 sm:$0xff]  }
 0x78e   :  { %v1247_v57 = vpop.xlane.xlu0 %1246 }
 0x78f   :  { %5288 = vrcp.f32 %v1247_v57  ;;  %v5069_v57 = vld [vmem:[%s6495_s8 + $0x40] ss:$8 sps:$4 sm:$0xff]  }
 0x796   :  { %v1250_v58 = vpop.xlane.xlu1 %1249 }
 0x797   :  { %5290 = vrcp.f32 %v1250_v58  ;;  %v5071_v58 = vld [vmem:[%s6495_s8 + $0x44] ss:$8 sps:$4 sm:$0xff]  }
 0x79c   :  { %v5289_v59 = vpop.eup %5288 }
 0x79d   :  { %v1253_v60 = vmul.f32 %v5289_v59, %v5285_v52  ;;  %v5065_v52 = vld [vmem:[%s6495_s8 + $0x64] ss:$8 sps:$4 sm:$0xff]   ;;  %v5074_v59 = vld [vmem:[%s6495_s8 + $0x34] ss:$8 sps:$4 sm:$0xff]  }
 0x79f   :  { %v1259_v4 = vpack.c.bf16 %v1253_v60, %v1253_v60  ;;  %v5072_v60 = vld [vmem:[%s6495_s8 + $0x30] ss:$8 sps:$4 sm:$0xff]  }
 0x7a1   :  { %4830 = vmatmul.mubr.msk.bf16.vlgmr.msra.gmra.mxu0 %vm605_vm6, %v1259_v4  ;;  %v5075_v4 = vld [vmem:[%s6495_s8 + $0x20] ss:$8 sps:$4 sm:$0xff]  }
 0x7a2   :  { %4840 = vmatpush3.bf16.msra.mxu0 %v5052_v62  ;;  %4855 = vmatprep.mubr.msk.bf16.mxu0 %vm5654_vm0, %v5653_v1  ;;  %v5077_v62 = vld [vmem:[%s6495_s8 + $0x24] ss:$8 sps:$4 sm:$0xff]  }
 0x7a3   :  { %4841 = vmatprep.subr.bf16.mxu0 %v5653_v1 }
 0x7a4   :  { %v5291_v34 = vpop.eup %5290 }
 0x7a5   :  { %v1254_v6 = vmul.f32 %v5291_v34, %v5287_v54  ;;  %v5068_v54 = vld [vmem:[%s6495_s8 + $0x54] ss:$8 sps:$4 sm:$0xff]   ;;  %v5078_v34 = vld [vmem:[%s6495_s8 + $0x10] ss:$8 sps:$4 sm:$0xff]  }
 0x7a6   :  { %4842 = vmatpush3.bf16.msra.mxu0 %v5053_v5  ;;  %v5080_v5 = vld [vmem:[%s6495_s8 + $0x14] ss:$8 sps:$4 sm:$0xff]  }
 0x7a7   :  { %v1260_v9 = vpack.c.bf16 %v1254_v6, %v1254_v6  ;;  %4843 = vmatprep.subr.bf16.mxu0 %v5653_v1  ;;  %v5083_v6 = vld [vmem:[%s6495_s8 + $0x4] ss:$8 sps:$4 sm:$0xff]  }
 0x7a9   :  { %4836 = vmatmul.mubr.msk.bf16.vlgmr.msra.gmra.mxu1 %vm605_vm6, %v1260_v9 }
 0x7aa   :  { %4844 = vmatpush3.bf16.msra.mxu0 %v5054_v7  ;;  %1652 = vmatprep.mubr.bf16.mxu1 %v5652_v0  ;;  %v5081_v7 = vld [vmem:[%s6495_s8] ss:$8 sps:$4 sm:$0xff]  }
 0x7ab   :  { %4845 = vmatprep.subr.bf16.mxu0 %v5653_v1  ;;  %1621 = vmatpush1.bf16.msra.mxu1 %v5060_v37  ;;  %v5095_v37 = vld [vmem:[#allocation11 + $0x10] sm:$0xff]  }
 0x7ac   :  { %1622 = vmatprep.subr.bf16.mxu1 %v5065_v52 }
 0x7ae   :  { %4846 = vmatpush3.bf16.msra.mxu0 %v5055_v10 }
 0x7af   :  { %4847 = vmatprep.subr.bf16.mxu0 %v5653_v1  ;;  %1623 = vmatpush1.bf16.msra.mxu1 %v5063_v53 }
 0x7b0   :  { %1624 = vmatprep.subr.bf16.mxu1 %v5068_v54 }
 0x7b2   :  { %4848 = vmatpush3.bf16.msra.mxu0 %v5056_v63 }
 0x7b3   :  { %4849 = vmatprep.subr.bf16.mxu0 %v5653_v1  ;;  %1625 = vmatpush1.bf16.msra.mxu1 %v5066_v55 }
 0x7b4   :  { %1626 = vmatprep.subr.bf16.mxu1 %v5071_v58 }
 0x7b6   :  { %4850 = vmatpush3.bf16.msra.mxu0 %v5057_v42 }
 0x7b7   :  { %4851 = vmatprep.subr.bf16.mxu0 %v5653_v1  ;;  %1627 = vmatpush1.bf16.msra.mxu1 %v5069_v57 }
 0x7b8   :  { %1628 = vmatprep.subr.bf16.mxu1 %v5074_v59 }
 0x7ba   :  { %4852 = vmatpush3.bf16.msra.mxu0 %v5058_v40 }
 0x7bb   :  { %4853 = vmatprep.subr.bf16.mxu0 %v5653_v1  ;;  %1629 = vmatpush1.bf16.msra.mxu1 %v5072_v60 }
 0x7bc   :  { %1630 = vmatprep.subr.bf16.mxu1 %v5077_v62 }
 0x7be   :  { %4854 = vmatpush3.bf16.msra.mxu0 %v5059_v11 }
 0x7bf   :  { %1631 = vmatpush1.bf16.msra.mxu1 %v5075_v4 }
 0x7c0   :  { %1632 = vmatprep.subr.bf16.mxu1 %v5080_v5 }
 0x7c3   :  { %1633 = vmatpush1.bf16.msra.mxu1 %v5078_v34 }
 0x7c4   :  { %1634 = vmatprep.subr.bf16.mxu1 %v5083_v6 }
 0x7c7   :  { %1635 = vmatpush1.bf16.msra.mxu1 %v5081_v7 }
 0x861   :  { %v1301_v12 = vpop.f32.mrf.mxu0 }
 0x862   :  { %v1353_v16 = vadd.f32 %v1301_v12, %v6015_v14 }
 0x863   :  { %v4831_v2 = vpop.f32.mrf.mxu0 }
 0x865   :  { %v1304_v50 = vpop.f32.mrf.mxu0 }
 0x866   :  { %v4337_v50 = vld [vmem:[#allocation8] ss:$0 sm:$0xff] }
 0x867   :  { %v4832_v15 = vpop.f32.mrf.mxu0 }
 0x869   :  { %v1347_v48 = vpop.f32.mrf.mxu1 }
 0x86a   :  { %v1354_v17 = vadd.f32 %v1347_v48, %v6018_v20  ;;  %v5357_v20 = vld [vmem:[%s6515_s27 + $0x8] sm:$0xff] }
 0x86b   :  { %v4837_v19 = vpop.f32.mrf.mxu1 }
 0x86c   :  { %v1355_v21 = vpack.c.bf16 %v1354_v17, %v1353_v16  ;;  %v4338_v17 = vld [vmem:[#allocation10] ss:$0 sm:$0xff] }
 0x86d   :  { %v1350_v22 = vpop.f32.mrf.mxu1 }
 0x86e   :  { %4856 = vmatmul.mubr.bf16.vlgmr.msra.gmra.mxu0 %v1355_v21 }
 0x86f   :  { %v4838_v24 = vpop.f32.mrf.mxu1 }
 0x92e   :  { %v1461_v26 = vpop.f32.mrf.mxu0 }
 0x92f   :  { %v1462_v27 = vadd.f32 %v4328_v25, %v1461_v26  ;;  %v5085_v26 = vld [vmem:[#allocation11 + $0x38] sm:$0xff]  }
 0x930   :  { %v4857_v28 = vpop.f32.mrf.mxu0 }
 0x931   :  { %v1468_v29 = vadd.f32 %v5356_v8, %v1462_v27  ;;  %v5086_v27 = vld [vmem:[#allocation11 + $0x70] sm:$0xff]   ;;  %v5088_v8 = vld [vmem:[#allocation11 + $0x68] sm:$0xff]  }
 0x932   :  { %v1464_v33 = vpop.f32.mrf.mxu0  ;;  %v5087_v28 = vld [vmem:[#allocation11 + $0x30] sm:$0xff]  }
 0x933   :  { %v1465_v35 = vadd.f32 %v4328_v25, %v1464_v33  ;;  %1472 = vadd.xlane.f32.xlu0 %v1468_v29  ;;  %v5084_v25 = vld [vmem:[#allocation11 + $0x78] sm:$0xff]   ;;  %v5090_v33 = vld [vmem:[#allocation11 + $0x60] sm:$0xff]  }
 0x934   :  { %v4858_v14 = vpop.f32.mrf.mxu0  ;;  %4585 = vmatprep.subr.bf16.mxu0 %v5084_v25 }
 0x935   :  { %v1469_v36 = vadd.f32 %v5357_v20, %v1465_v35  ;;  %4586 = vmatpush3.bf16.msra.mxu0 %v5085_v26  ;;  %v5091_v35 = vld [vmem:[#allocation11 + $0x20] sm:$0xff]   ;;  %v5092_v14 = vld [vmem:[#allocation11 + $0x58] sm:$0xff]  }
 0x936   :  { %4587 = vmatprep.subr.bf16.mxu0 %v5086_v27  ;;  %v5093_v20 = vld [vmem:[#allocation11 + $0x18] sm:$0xff]  }
 0x937   :  { %1474 = vadd.xlane.f32.xlu1 %v1469_v36 }
 0x939   :  { %4588 = vmatpush3.bf16.msra.mxu0 %v5087_v28 }
 0x93a   :  { %4589 = vmatprep.subr.bf16.mxu0 %v5088_v8 }
 0x9bc   :  { %v1473_v18 = vpop.xlane.xlu0 %1472 }
 0x9bd   :  { %v1477_v39 = vmul.f32 0.0078125, %v1473_v18  ;;  %v5097_v18 = vld [vmem:[#allocation11 + $0x8] sm:$0xff]  }
 0x9bf   :  { %v1479_v41 = vsub.f32 %v1468_v29, %v1477_v39  ;;  %v5089_v29 = vld [vmem:[#allocation11 + $0x28] sm:$0xff]   ;;  %v5098_v39 = vld [vmem:[#allocation11 + $0x40] sm:$0xff]  }
 0x9c0   :  { %v1475_v45 = vpop.xlane.xlu1 %1474  ;;  %4590 = vmatpush3.bf16.msra.mxu0 %v5089_v29 }
 0x9c1   :  { %v1478_v46 = vmul.f32 0.0078125, %v1475_v45  ;;  %v1481_v47 = vmul.f32 %v1479_v41, %v1479_v41  ;;  %4591 = vmatprep.subr.bf16.mxu0 %v5090_v33  ;;  %v1528_v45 = vld [vmem:[%s6496_s9] sm:$0x3] }
 0x9c3   :  { %v1480_v49 = vsub.f32 %v1469_v36, %v1478_v46  ;;  %1483 = vadd.xlane.f32.xlu0 %v1481_v47  ;;  %v5094_v36 = vld [vmem:[#allocation11 + $0x50] sm:$0xff]   ;;  %v1533_v46 = vrot.slane %v1528_v45, %v5840_v32  ;;  %v1537_v47 = vrot.slane %v1528_v45, %v5837_v31  ;;  %v4355_v45 = vld [vmem:[#allocation13] ss:$0 sm:$0xff] }
 0x9c4   :  { %4592 = vmatpush3.bf16.msra.mxu0 %v5091_v35 }
 0x9c5   :  { %v1482_v51 = vmul.f32 %v1480_v49, %v1480_v49  ;;  %4593 = vmatprep.subr.bf16.mxu0 %v5092_v14 }
 0x9c7   :  { %1485 = vadd.xlane.f32.xlu1 %v1482_v51 }
 0x9c8   :  { %4594 = vmatpush3.bf16.msra.mxu0 %v5093_v20 }
 0x9c9   :  { %4595 = vmatprep.subr.bf16.mxu0 %v5094_v36 }
 0x9cc   :  { %4596 = vmatpush3.bf16.msra.mxu0 %v5095_v37 }
 0x9cd   :  { %4597 = vmatprep.subr.bf16.mxu0 %v5096_v38 }
 0x9d0   :  { %4598 = vmatpush3.bf16.msra.mxu0 %v5097_v18 }
 0x9d1   :  { %4599 = vmatprep.subr.bf16.mxu0 %v5098_v39 }
 0xa4c   :  { %v1484_v9 = vpop.xlane.xlu0 %1483 }
 0xa4d   :  { %v1487_v10 = vmul.f32 0.0078125, %v1484_v9 }
 0xa4f   :  { %v1489_v63 = vadd.f32 1e-05, %v1487_v10 }
 0xa50   :  { %v1486_v42 = vpop.xlane.xlu1 %1485 }
 0xa51   :  { %5292 = vrsqrt.f32 %v1489_v63  ;;  %v1488_v40 = vmul.f32 0.0078125, %v1486_v42 }
 0xa53   :  { %v1490_v11 = vadd.f32 1e-05, %v1488_v40 }
 0xa55   :  { %5294 = vrsqrt.f32 %v1490_v11 }
 0xa5e   :  { %v5293_v12 = vpop.eup %5292 }
 0xa5f   :  { %v1493_v2 = vmul.f32 %v5293_v12, %v1479_v41  ;;  %v5099_v41 = vld [vmem:[#allocation11] sm:$0xff]  }
 0xa60   :  { %4600 = vmatpush3.bf16.msra.mxu0 %v5099_v41 }
 0xa61   :  { %v1501_v16 = vmul.f32 %v4337_v50, %v1493_v2  ;;  %4859 = vmatprep.subr.bf16.mxu0 %v5653_v1 }
 0xa62   :  { %v5295_v15 = vpop.eup %5294 }
 0xa63   :  { %v1494_v48 = vmul.f32 %v5295_v15, %v1480_v49  ;;  %v6094_v21 = vadd.f32 %v4338_v17, %v1501_v16 }
 0xa65   :  { %v1502_v19 = vmul.f32 %v4337_v50, %v1494_v48 }
 0xa67   :  { %v6096_v22 = vadd.f32 %v4338_v17, %v1502_v19 }
 0xa69   :  { %v1511_v24 = vpack.c.bf16 %v6096_v22, %v6094_v21 }
 0xa6b   :  { %1653 = vmatmul.mubr.bf16.vlgmr.msra.gmra.mxu1 %v1511_v24 }
 0xa6c   :  { %2131 = vmatprep.mubr.bf16.mxu1 %v5652_v0 }
 0xb2b   :  { %v1654_v49 = vpop.f32.mrf.mxu1 }
 0xb2c   :  { %v1655_v51 = vadd.f32 %v1654_v49, %v1533_v46 }
 0xb2d   :  { %v1656_v52 = vpop.f32.mrf.mxu1 }
 0xb2e   :  { %v1663_v53 = vmul.f32 %v1655_v51, %v1655_v51  ;;  %v1657_v54 = vadd.f32 %v1656_v52, %v1537_v47 }
 0xb2f   :  { %v1658_v55 = vpop.f32.mrf.mxu1 }
 0xb30   :  { %v1667_v57 = vmul.f32 %v1663_v53, %v1655_v51  ;;  %v1664_v58 = vmul.f32 %v1657_v54, %v1657_v54  ;;  %v1659_v59 = vadd.f32 %v1658_v55, %v1533_v46 }
 0xb31   :  { %v1660_v60 = vpop.f32.mrf.mxu1 }
 0xb32   :  { %v1671_v62 = vmul.f32 0.044715, %v1667_v57  ;;  %v1668_v4 = vmul.f32 %v1664_v58, %v1657_v54  ;;  %v1665_v5 = vmul.f32 %v1659_v59, %v1659_v59  ;;  %v1661_v34 = vadd.f32 %v1660_v60, %v1537_v47  ;;  %v5100_v58 = vld [vmem:[#allocation2 + $0x168] ss:$12 sps:$4 sm:$0xff]   ;;  %v5103_v60 = vld [vmem:[#allocation2 + $0x170] ss:$12 sps:$4 sm:$0xff]  }
 0xb34   :  { %v1675_v6 = vadd.f32 %v1671_v62, %v1655_v51  ;;  %v1672_v7 = vmul.f32 0.044715, %v1668_v4  ;;  %v1669_v9 = vmul.f32 %v1665_v5, %v1659_v59  ;;  %v1666_v10 = vmul.f32 %v1661_v34, %v1661_v34 }
 0xb36   :  { %v1679_v63 = vmul.f32 0.7978846, %v1675_v6  ;;  %v1676_v42 = vadd.f32 %v1672_v7, %v1657_v54  ;;  %v1673_v40 = vmul.f32 0.044715, %v1669_v9  ;;  %v1670_v11 = vmul.f32 %v1666_v10, %v1661_v34  ;;  %v5106_v9 = vld [vmem:[#allocation2 + $0x154] ss:$12 sps:$4 sm:$0xff]  }
 0xb37   :  { %v5104_v10 = vld [vmem:[#allocation2 + $0x150] ss:$12 sps:$4 sm:$0xff]  }
 0xb38   :  { %v1680_v12 = vmul.f32 0.7978846, %v1676_v42  ;;  %v1677_v2 = vadd.f32 %v1673_v40, %v1659_v59  ;;  %v1674_v50 = vmul.f32 0.044715, %v1670_v11  ;;  %5296 = vtanh.f32 %v1679_v63  ;;  %v5107_v63 = vld [vmem:[#allocation2 + $0x158] ss:$12 sps:$4 sm:$0xff]  }
 0xb39   :  { %v5110_v42 = vld [vmem:[#allocation2 + $0x13c] ss:$12 sps:$4 sm:$0xff]   ;;  %v5108_v40 = vld [vmem:[#allocation2 + $0x138] ss:$12 sps:$4 sm:$0xff]   ;;  %v5111_v11 = vld [vmem:[#allocation2 + $0x140] ss:$12 sps:$4 sm:$0xff]  }
 0xb3a   :  { %5298 = vtanh.f32 %v1680_v12  ;;  %v1681_v15 = vmul.f32 0.7978846, %v1677_v2  ;;  %v1678_v48 = vadd.f32 %v1674_v50, %v1661_v34  ;;  %v5112_v12 = vld [vmem:[#allocation2 + $0x120] ss:$12 sps:$4 sm:$0xff]   ;;  %v5114_v2 = vld [vmem:[#allocation2 + $0x124] ss:$12 sps:$4 sm:$0xff]  }
 0xb3b   :  { %v5115_v50 = vld [vmem:[#allocation2 + $0x128] ss:$12 sps:$4 sm:$0xff]  }
 0xb3c   :  { %5300 = vtanh.f32 %v1681_v15  ;;  %v1682_v16 = vmul.f32 0.7978846, %v1678_v48  ;;  %v5118_v15 = vld [vmem:[#allocation2 + $0x10c] ss:$12 sps:$4 sm:$0xff]   ;;  %v5116_v48 = vld [vmem:[#allocation2 + $0x108] ss:$12 sps:$4 sm:$0xff]  }
 0xb3e   :  { %5302 = vtanh.f32 %v1682_v16  ;;  %v5119_v16 = vld [vmem:[#allocation2 + $0x110] ss:$12 sps:$4 sm:$0xff]  }
 0xb45   :  { %v5297_v17 = vpop.eup %5296 }
 0xb46   :  { %v1687_v26 = vadd.f32 1.0, %v5297_v17  ;;  %v5122_v17 = vld [vmem:[#allocation2 + $0xf4] ss:$12 sps:$4 sm:$0xff]  }
 0xb47   :  { %v5299_v19 = vpop.eup %5298 }
 0xb48   :  { %v1688_v24 = vadd.f32 1.0, %v5299_v19  ;;  %v1691_v35 = vmul.f32 0.5, %v1687_v26  ;;  %v5120_v19 = vld [vmem:[#allocation2 + $0xf0] ss:$12 sps:$4 sm:$0xff]   ;;  %v5124_v26 = vld [vmem:[#allocation2 + $0xd8] ss:$12 sps:$4 sm:$0xff]  }
 0xb49   :  { %v5301_v25 = vpop.eup %5300 }
 0xb4a   :  { %v1689_v27 = vadd.f32 1.0, %v5301_v25  ;;  %v1692_v33 = vmul.f32 0.5, %v1688_v24  ;;  %v1695_v38 = vmul.f32 %v1691_v35, %v1655_v51  ;;  %v5123_v24 = vld [vmem:[#allocation2 + $0xf8] ss:$12 sps:$4 sm:$0xff]   ;;  %v5126_v25 = vld [vmem:[#allocation2 + $0xdc] ss:$12 sps:$4 sm:$0xff]  }
 0xb4b   :  { %v5303_v28 = vpop.eup %5302 }
 0xb4c   :  { %v1693_v8 = vmul.f32 0.5, %v1689_v27  ;;  %v1690_v29 = vadd.f32 1.0, %v5303_v28  ;;  %v1696_v36 = vmul.f32 %v1692_v33, %v1657_v54  ;;  %v5127_v27 = vld [vmem:[#allocation2 + $0xe0] ss:$12 sps:$4 sm:$0xff]   ;;  %v5130_v28 = vld [vmem:[#allocation2 + $0xc4] ss:$12 sps:$4 sm:$0xff]  }
 0xb4e   :  { %v1694_v14 = vmul.f32 0.5, %v1690_v29  ;;  %v1697_v20 = vmul.f32 %v1693_v8, %v1659_v59  ;;  %v5102_v59 = vld [vmem:[#allocation2 + $0x16c] ss:$12 sps:$4 sm:$0xff]   ;;  %v5131_v29 = vld [vmem:[#allocation2 + $0xc8] ss:$12 sps:$4 sm:$0xff]  }
 0xb4f   :  { %2099 = vmatprep.subr.bf16.mxu1 %v5102_v59  ;;  %v5128_v8 = vld [vmem:[#allocation2 + $0xc0] ss:$12 sps:$4 sm:$0xff]  }
 0xb50   :  { %v1698_v37 = vmul.f32 %v1694_v14, %v1661_v34  ;;  %v1699_v39 = vpack.c.bf16 %v1697_v20, %v1695_v38  ;;  %2100 = vmatpush1.bf16.msra.mxu1 %v5100_v58 }
 0xb51   :  { %2101 = vmatprep.subr.bf16.mxu1 %v5106_v9 }
 0xb52   :  { %v1700_v18 = vpack.c.bf16 %v1698_v37, %v1696_v36 }
 0xb54   :  { %1868 = vmatprep.mubr.bf16.mxu0 %v1700_v18  ;;  %2102 = vmatpush1.bf16.msra.mxu1 %v5104_v10 }
 0xb55   :  { %1869 = vmatmul.mubr.bf16.vlgmr.msra.gmra.mxu0 %v1699_v39  ;;  %2103 = vmatprep.subr.bf16.mxu1 %v5110_v42  ;;  %v4372_v39 = vld [vmem:[#allocation14] ss:$0 sm:$0xff] }
 0xb56   :  { %4875 = vmatprep.mubr.msk.bf16.mxu0 %vm5654_vm0, %v5653_v1  ;;  %4860 = vmatpush3.bf16.msra.mxu0 %v5103_v60 }
 0xb57   :  { %4861 = vmatprep.subr.bf16.mxu0 %v5653_v1 }
 0xb58   :  { %2104 = vmatpush1.bf16.msra.mxu1 %v5108_v40 }
 0xb59   :  { %2105 = vmatprep.subr.bf16.mxu1 %v5114_v2 }
 0xb5a   :  { %4862 = vmatpush3.bf16.msra.mxu0 %v5107_v63 }
 0xb5b   :  { %4863 = vmatprep.subr.bf16.mxu0 %v5653_v1 }
 0xb5c   :  { %2106 = vmatpush1.bf16.msra.mxu1 %v5112_v12 }
 0xb5d   :  { %2107 = vmatprep.subr.bf16.mxu1 %v5118_v15 }
 0xb5e   :  { %4864 = vmatpush3.bf16.msra.mxu0 %v5111_v11 }
 0xb5f   :  { %4865 = vmatprep.subr.bf16.mxu0 %v5653_v1 }
 0xb60   :  { %2108 = vmatpush1.bf16.msra.mxu1 %v5116_v48 }
 0xb61   :  { %2109 = vmatprep.subr.bf16.mxu1 %v5122_v17 }
 0xb62   :  { %4866 = vmatpush3.bf16.msra.mxu0 %v5115_v50 }
 0xb63   :  { %4867 = vmatprep.subr.bf16.mxu0 %v5653_v1 }
 0xb64   :  { %2110 = vmatpush1.bf16.msra.mxu1 %v5120_v19 }
 0xb65   :  { %2111 = vmatprep.subr.bf16.mxu1 %v5126_v25 }
 0xb66   :  { %4868 = vmatpush3.bf16.msra.mxu0 %v5119_v16 }
 0xb67   :  { %4869 = vmatprep.subr.bf16.mxu0 %v5653_v1 }
 0xb68   :  { %2112 = vmatpush1.bf16.msra.mxu1 %v5124_v26 }
 0xb69   :  { %2113 = vmatprep.subr.bf16.mxu1 %v5130_v28 }
 0xb6a   :  { %4870 = vmatpush3.bf16.msra.mxu0 %v5123_v24 }
 0xb6b   :  { %4871 = vmatprep.subr.bf16.mxu0 %v5653_v1 }
 0xb6c   :  { %2114 = vmatpush1.bf16.msra.mxu1 %v5128_v8 }
 0xb6d   :  { %4879 = vmatprep.subr.bf16.mxu1 %v5653_v1 }
 0xb6e   :  { %4872 = vmatpush3.bf16.msra.mxu0 %v5127_v27 }
 0xb6f   :  { %4873 = vmatprep.subr.bf16.mxu0 %v5653_v1 }
 0xb72   :  { %4874 = vmatpush3.bf16.msra.mxu0 %v5131_v29 }
 0xb73   :  { %4903 = vmatprep.subr.bf16.mxu0 %v5653_v1 }
 0xc15   :  { %v4601_v41 = vpop.f32.mrf.mxu0 }
 0xc17   :  { %v4602_v46 = vpop.f32.mrf.mxu0 }
 0xc18   :  { %v4603_v47 = vadd.f32 %v4602_v46, %v4601_v41 }
 0xc19   :  { %v4604_v49 = vpop.f32.mrf.mxu0 }
 0xc1a   :  { %v1871_v52 = vadd.f32 %v4603_v47, %v4355_v45  ;;  %v4373_v47 = vld [vmem:[#allocation16] ss:$0 sm:$0xff] }
 0xc1b   :  { %v4605_v53 = vpop.f32.mrf.mxu0 }
 0xc1c   :  { %v4606_v55 = vadd.f32 %v4605_v53, %v4604_v49  ;;  %v1877_v57 = vadd.f32 %v1871_v52, %v6094_v21 }
 0xc1e   :  { %v1874_v54 = vadd.f32 %v4606_v55, %v4355_v45  ;;  %1881 = vadd.xlane.f32.xlu0 %v1877_v57 }
 0xc20   :  { %v1878_v51 = vadd.f32 %v1874_v54, %v6096_v22 }
 0xc22   :  { %1883 = vadd.xlane.f32.xlu1 %v1878_v51 }
 0xca7   :  { %v1882_v62 = vpop.xlane.xlu0 %1881 }
 0xca8   :  { %v1885_v4 = vmul.f32 0.0078125, %v1882_v62 }
 0xcaa   :  { %v6112_v5 = vsub.f32 %v1877_v57, %v1885_v4  ;;  %v4374_v57 = vld [vmem:[%s6516_s21 + $0x3] sm:$0x7] }
 0xcab   :  { %v1884_v34 = vpop.xlane.xlu1 %1883  ;;  %v1967_v54 = vrot.slane %v4374_v57, %v5891_v61  ;;  %v1959_v58 = vrot.slane %v4374_v57, %v5840_v32 }
 0xcac   :  { %v1886_v6 = vmul.f32 0.0078125, %v1884_v34  ;;  %v1889_v21 = vmul.f32 %v6112_v5, %v6112_v5 }
 0xcae   :  { %v6116_v7 = vsub.f32 %v1878_v51, %v1886_v6  ;;  %1891 = vadd.xlane.f32.xlu0 %v1889_v21  ;;  %v1963_v51 = vrot.slane %v4374_v57, %v5837_v31 }
 0xcb0   :  { %v1890_v22 = vmul.f32 %v6116_v7, %v6116_v7 }
 0xcb2   :  { %1893 = vadd.xlane.f32.xlu1 %v1890_v22 }
 0xd37   :  { %v1892_v33 = vpop.xlane.xlu0 %1891 }
 0xd38   :  { %v1895_v35 = vmul.f32 0.0078125, %v1892_v33 }
 0xd3a   :  { %v1897_v14 = vadd.f32 1e-05, %v1895_v35 }
 0xd3b   :  { %v1894_v20 = vpop.xlane.xlu1 %1893 }
 0xd3c   :  { %5304 = vrsqrt.f32 %v1897_v14  ;;  %v1896_v36 = vmul.f32 0.0078125, %v1894_v20 }
 0xd3e   :  { %v1898_v37 = vadd.f32 1e-05, %v1896_v36 }
 0xd40   :  { %5306 = vrsqrt.f32 %v1898_v37 }
 0xd49   :  { %v5305_v38 = vpop.eup %5304 }
 0xd4a   :  { %v1901_v18 = vmul.f32 %v5305_v38, %v6112_v5 }
 0xd4c   :  { %v1909_v46 = vmul.f32 %v4372_v39, %v1901_v18 }
 0xd4d   :  { %v5307_v41 = vpop.eup %5306 }
 0xd4e   :  { %v1902_v45 = vmul.f32 %v5307_v41, %v6116_v7  ;;  %v6130_v52 = vadd.f32 %v4373_v47, %v1909_v46 }
 0xd50   :  { %v1910_v49 = vmul.f32 %v4372_v39, %v1902_v45 }
 0xd52   :  { %v6132_v53 = vadd.f32 %v4373_v47, %v1910_v49 }
 0xd54   :  { %v1919_v55 = vpack.c.bf16 %v6132_v53, %v6130_v52 }
 0xd56   :  { %2132 = vmatmul.mubr.bf16.vlgmr.msra.gmra.mxu1 %v1919_v55  ;;  %4876 = vmatmul.mubr.bf16.vlgmr.msra.gmra.mxu0 %v1919_v55 }
 0xd57   :  { %4881 = vmatprep.mubr.msk.bf16.mxu1 %vm5654_vm0, %v5653_v1  ;;  %4905 = vmatprep.mubr.msk.bf16.mxu0 %vm5654_vm0, %v5653_v1 }
 0xe16   :  { %v2133_v59 = vpop.f32.mrf.mxu1  ;;  %v2176_v60 = vpop.f32.mrf.mxu0 }
 0xe17   :  { %v6146_v62 = vadd.f32 %v2176_v60, %v1967_v54  ;;  %v6150_v21 = vadd.f32 %v2133_v59, %v1959_v58 }
 0xe18   :  { %v2135_v4 = vpop.f32.mrf.mxu1  ;;  %v4877_v5 = vpop.f32.mrf.mxu0 }
 0xe19   :  { %v2136_v34 = vadd.f32 %v2135_v4, %v1963_v51  ;;  %v2411_v6 = vmul.f32 %v5874_v56, %v6146_v62  ;;  %v2185_v11 = vmul.f32 %v5855_v43, %v6150_v21  ;;  %v2301_v17 = vmul.f32 %v5874_v56, %v6150_v21 }
 0xe1a   :  { %v2137_v7 = vpop.f32.mrf.mxu1  ;;  %v2179_v22 = vpop.f32.mrf.mxu0 }
 0xe1b   :  { %v6152_v9 = vpack.c.bf16 %v2136_v34, %v2136_v34  ;;  %v2413_v10 = vpack.c.bf16 %v2411_v6, %v2411_v6  ;;  %v6160_v2 = vadd.f32 %v2137_v7, %v1959_v58  ;;  %v2187_v50 = vpack.c.bf16 %v2185_v11, %v2185_v11 }
 0xe1c   :  { %v2139_v63 = vpop.f32.mrf.mxu1  ;;  %v4878_v42 = vpop.f32.mrf.mxu0  ;;  %v6176_v19 = vadd.f32 %v2179_v22, %v1967_v54  ;;  %v2303_v24 = vpack.c.bf16 %v2301_v17, %v2301_v17 }
 0xe1d   :  { %4880 = vmatpush3.bf16.xpose.msra.mxu1 %v6152_v9  ;;  %v2421_v40 = vsel %vm753_vm5, %v2413_v10, 0  ;;  %v2140_v12 = vadd.f32 %v2139_v63, %v1963_v51  ;;  %v2186_v48 = vmul.f32 %v5855_v43, %v6160_v2  ;;  %v2302_v26 = vmul.f32 %v5874_v56, %v6160_v2 }
 0xe1e   :  { %4904 = vmatpush3.bf16.msra.mxu0 %v2421_v40  ;;  %4885 = vmatprep.subr.bf16.mxu1 %v5653_v1  ;;  %v2412_v25 = vmul.f32 %v5874_v56, %v6176_v19 }
 0xe1f   :  { %4915 = vmatprep.subr.bf16.mxu0 %v5653_v1  ;;  %v6162_v15 = vpack.c.bf16 %v2140_v12, %v2140_v12  ;;  %v2188_v16 = vpack.c.bf16 %v2186_v48, %v2186_v48  ;;  %v2304_v28 = vpack.c.bf16 %v2302_v26, %v2302_v26 }
 0xe20   :  { %v2414_v27 = vpack.c.bf16 %v2412_v25, %v2412_v25 }
 0xe22   :  { %v2467_v8 = vsel %vm753_vm5, %v2414_v27, 0 }
 0xe24   :  { %4882 = vmatmul.mubr.bf16.vlgmr.msra.gmra.mxu1 %v2187_v50 }
 0xe25   :  { %4886 = vmatpush3.bf16.xpose.msra.mxu1 %v6162_v15  ;;  %4887 = vmatprep.mubr.msk.bf16.mxu1 %vm5654_vm0, %v5653_v1 }
 0xe26   :  { %4891 = vmatprep.subr.bf16.mxu1 %v5653_v1 }
 0xe2c   :  { %4888 = vmatmul.mubr.bf16.vlgmr.msra.gmra.mxu1 %v2188_v16 }
 0xe2d   :  { %4892 = vmatpush3.bf16.xpose.msra.mxu1 %v6152_v9  ;;  %4893 = vmatprep.mubr.msk.bf16.mxu1 %vm5654_vm0, %v5653_v1 }
 0xe2e   :  { %4897 = vmatprep.subr.bf16.mxu1 %v5653_v1 }
 0xe34   :  { %4894 = vmatmul.mubr.bf16.vlgmr.msra.gmra.mxu1 %v2303_v24 }
 0xe35   :  { %4898 = vmatpush3.bf16.xpose.msra.mxu1 %v6162_v15  ;;  %4899 = vmatprep.mubr.msk.bf16.mxu1 %vm5654_vm0, %v5653_v1 }
 0xe36   :  { %4909 = vmatprep.subr.bf16.mxu1 %v5653_v1 }
 0xe3c   :  { %4900 = vmatmul.mubr.bf16.vlgmr.msra.gmra.mxu1 %v2304_v28 }
 0xe3d   :  { %4910 = vmatpush3.bf16.msra.mxu1 %v2467_v8  ;;  %4911 = vmatprep.mubr.msk.bf16.mxu1 %vm5654_vm0, %v5653_v1 }
 0xe3e   :  { %4921 = vmatprep.subr.bf16.mxu1 %v5653_v1 }
 0xee4   :  { %v2223_v29 = vpop.f32.mrf.mxu1 }
 0xee5   :  { %v2269_v18 = vmul.f32 0.17677669, %v2223_v29 }
 0xee6   :  { %v4883_v33 = vpop.f32.mrf.mxu1 }
 0xee7   :  { %v2271_v49 = vadd.f32 %v2269_v18, %v5913_v13 }
 0xee8   :  { %v2226_v35 = vpop.f32.mrf.mxu1 }
 0xee9   :  { %v2273_v58 = vsel %vm605_vm6, %v2271_v49, -inf }
 0xeea   :  { %v4884_v14 = vpop.f32.mrf.mxu1 }
 0xeec   :  { %v2263_v20 = vpop.f32.mrf.mxu1 }
 0xeed   :  { %v2270_v54 = vmul.f32 0.17677669, %v2263_v20 }
 0xeee   :  { %v4889_v36 = vpop.f32.mrf.mxu1 }
 0xeef   :  { %v2272_v34 = vadd.f32 %v2270_v54, %v5918_v23 }
 0xef0   :  { %v2266_v56 = vpop.f32.mrf.mxu1 }
 0xef1   :  { %v2276_v7 = vsel %vm605_vm6, %v2272_v34, -inf  ;;  %v2295_v56 = vmul.f32 %v5855_v43, %v6146_v62 }
 0xef2   :  { %v4890_v37 = vpop.f32.mrf.mxu1 }
 0xef4   :  { %v2339_v38 = vpop.f32.mrf.mxu1 }
 0xef5   :  { %v2385_v39 = vmul.f32 0.17677669, %v2339_v38 }
 0xef6   :  { %v4895_v41 = vpop.f32.mrf.mxu1 }
 0xef7   :  { %v2387_v45 = vadd.f32 %v2385_v39, %v5913_v13  ;;  %v2297_v39 = vpack.c.bf16 %v2295_v56, %v2295_v56 }
 0xef8   :  { %v2342_v46 = vpop.f32.mrf.mxu1 }
 0xef9   :  { %v2389_v47 = vsel %vm605_vm6, %v2387_v45, -inf  ;;  %v2513_v46 = vsel %vm753_vm5, %v2297_v39, 0 }
 0xefa   :  { %2390 = vmax.xlane.f32.xlu0 %v2389_v47  ;;  %v4896_v55 = vpop.f32.mrf.mxu1  ;;  %v2296_v47 = vmul.f32 %v5855_v43, %v6176_v19  ;;  %v2711_v43 = vmul.f32 %v5942_v44, %v6146_v62 }
 0xefc   :  { %v2379_v57 = vpop.f32.mrf.mxu1  ;;  %v2298_v54 = vpack.c.bf16 %v2296_v47, %v2296_v47 }
 0xefd   :  { %v2386_v51 = vmul.f32 0.17677669, %v2379_v57 }
 0xefe   :  { %2274 = vmax.xlane.f32.xlu0 %v2273_v58  ;;  %v4901_v59 = vpop.f32.mrf.mxu1 }
 0xeff   :  { %v2388_v60 = vadd.f32 %v2386_v51, %v5918_v23 }
 0xf00   :  { %v2382_v4 = vpop.f32.mrf.mxu1 }
 0xf01   :  { %v2392_v5 = vsel %vm605_vm6, %v2388_v60, -inf }
 0xf02   :  { %2393 = vmax.xlane.f32.xlu1 %v2392_v5  ;;  %v4902_v6 = vpop.f32.mrf.mxu1  ;;  %v2601_v5 = vmul.f32 %v5942_v44, %v6150_v21 }
 0xf06   :  { %2277 = vmax.xlane.f32.xlu1 %v2276_v7  ;;  %v2603_v7 = vpack.c.bf16 %v2601_v5, %v2601_v5 }
 0xf83   :  { %v2391_v22 = vpop.xlane.xlu0 %2390 }
 0xf84   :  { %v2395_v10 = vsub.f32 %v2387_v45, %v2391_v22 }
 0xf86   :  { %v2397_v63 = vmul.f32 1.442695, %v2395_v10  ;;  %v2712_v10 = vmul.f32 %v5942_v44, %v6176_v19 }
 0xf87   :  { %v2275_v42 = vpop.xlane.xlu0 %2274 }
 0xf88   :  { %5308 = vpow2.f32 %v2397_v63  ;;  %v2279_v40 = vsub.f32 %v2271_v49, %v2275_v42  ;;  %v2602_v63 = vmul.f32 %v5942_v44, %v6160_v2  ;;  %v2714_v42 = vpack.c.bf16 %v2712_v10, %v2712_v10 }
 0xf8a   :  { %v2281_v11 = vmul.f32 1.442695, %v2279_v40  ;;  %v2604_v40 = vpack.c.bf16 %v2602_v63, %v2602_v63 }
 0xf8b   :  { %v2394_v12 = vpop.xlane.xlu1 %2393 }
 0xf8c   :  { %5310 = vpow2.f32 %v2281_v11  ;;  %v2396_v50 = vsub.f32 %v2388_v60, %v2394_v12  ;;  %v2559_v60 = vsel %vm753_vm5, %v2298_v54, 0  ;;  %v2767_v11 = vsel %vm753_vm5, %v2714_v42, 0 }
 0xf8e   :  { %v2399_v48 = vmul.f32 1.442695, %v2396_v50 }
 0xf8f   :  { %v2278_v16 = vpop.xlane.xlu1 %2277 }
 0xf90   :  { %5312 = vpow2.f32 %v2399_v48  ;;  %v2280_v17 = vsub.f32 %v2272_v34, %v2278_v16  ;;  %v2713_v34 = vpack.c.bf16 %v2711_v43, %v2711_v43 }
 0xf92   :  { %v2283_v24 = vmul.f32 1.442695, %v2280_v17  ;;  %v2721_v22 = vsel %vm753_vm5, %v2713_v34, 0 }
 0xf94   :  { %5314 = vpow2.f32 %v2283_v24 }
 0xf95   :  { %v5309_v25 = vpop.eup %5308 }
 0xf96   :  { %v2401_v26 = vsel %vm605_vm6, %v5309_v25, 0.0 }
 0xf97   :  { %2402 = vadd.xlane.f32.xlu0 %v2401_v26 }
 0xf99   :  { %v5311_v27 = vpop.eup %5310 }
 0xf9a   :  { %v2285_v28 = vsel %vm605_vm6, %v5311_v27, 0.0 }
 0xf9b   :  { %2286 = vadd.xlane.f32.xlu0 %v2285_v28 }
 0xf9d   :  { %v5313_v8 = vpop.eup %5312 }
 0xf9e   :  { %v2404_v29 = vsel %vm605_vm6, %v5313_v8, 0.0 }
 0xf9f   :  { %2405 = vadd.xlane.f32.xlu1 %v2404_v29 }
 0xfa1   :  { %v5315_v33 = vpop.eup %5314 }
 0xfa2   :  { %v2288_v35 = vsel %vm605_vm6, %v5315_v33, 0.0 }
 0xfa3   :  { %2289 = vadd.xlane.f32.xlu1 %v2288_v35 }
0x1020   :  { %v2403_v14 = vpop.xlane.xlu0 %2402 }
0x1021   :  { %5316 = vrcp.f32 %v2403_v14 }
0x1024   :  { %v2287_v20 = vpop.xlane.xlu0 %2286 }
0x1025   :  { %5318 = vrcp.f32 %v2287_v20 }
0x1028   :  { %v2406_v36 = vpop.xlane.xlu1 %2405 }
0x1029   :  { %5320 = vrcp.f32 %v2406_v36 }
0x102c   :  { %v2290_v37 = vpop.xlane.xlu1 %2289 }
0x102d   :  { %5322 = vrcp.f32 %v2290_v37 }
0x102e   :  { %v5317_v38 = vpop.eup %5316 }
0x102f   :  { %v2409_v18 = vmul.f32 %v5317_v38, %v5309_v25 }
0x1031   :  { %v2415_v41 = vpack.c.bf16 %v2409_v18, %v2409_v18 }
0x1032   :  { %v5319_v45 = vpop.eup %5318 }
0x1033   :  { %4906 = vmatmul.mubr.msk.bf16.vlgmr.msra.gmra.mxu0 %vm605_vm6, %v2415_v41  ;;  %v2293_v49 = vmul.f32 %v5319_v45, %v5311_v27 }
0x1034   :  { %4916 = vmatpush3.bf16.msra.mxu0 %v2513_v46  ;;  %4917 = vmatprep.mubr.msk.bf16.mxu0 %vm5654_vm0, %v5653_v1 }
0x1035   :  { %4927 = vmatprep.subr.bf16.mxu0 %v5653_v1  ;;  %v2299_v58 = vpack.c.bf16 %v2293_v49, %v2293_v49 }
0x1036   :  { %v5321_v55 = vpop.eup %5320 }
0x1037   :  { %v2410_v57 = vmul.f32 %v5321_v55, %v5313_v8 }
0x1039   :  { %v2416_v51 = vpack.c.bf16 %v2410_v57, %v2410_v57 }
0x103a   :  { %v5323_v59 = vpop.eup %5322 }
0x103b   :  { %4912 = vmatmul.mubr.msk.bf16.vlgmr.msra.gmra.mxu1 %vm605_vm6, %v2416_v51  ;;  %4918 = vmatmul.mubr.msk.bf16.vlgmr.msra.gmra.mxu0 %vm605_vm6, %v2299_v58  ;;  %v2294_v4 = vmul.f32 %v5323_v59, %v5315_v33 }
0x103c   :  { %4922 = vmatpush3.bf16.msra.mxu1 %v2559_v60  ;;  %4928 = vmatpush3.bf16.xpose.msra.mxu0 %v6152_v9 }
0x103d   :  { %4923 = vmatprep.mubr.msk.bf16.mxu1 %vm5654_vm0, %v5653_v1  ;;  %4929 = vmatprep.mubr.msk.bf16.mxu0 %vm5654_vm0, %v5653_v1  ;;  %v2300_v6 = vpack.c.bf16 %v2294_v4, %v2294_v4 }
0x103e   :  { %4933 = vmatprep.subr.bf16.mxu1 %v5653_v1  ;;  %4939 = vmatprep.subr.bf16.mxu0 %v5653_v1 }
0x1043   :  { %4924 = vmatmul.mubr.msk.bf16.vlgmr.msra.gmra.mxu1 %vm605_vm6, %v2300_v6  ;;  %4930 = vmatmul.mubr.bf16.vlgmr.msra.gmra.mxu0 %v2603_v7 }
0x1044   :  { %4934 = vmatpush3.bf16.xpose.msra.mxu1 %v6162_v15  ;;  %4940 = vmatpush3.bf16.msra.mxu0 %v2721_v22 }
0x1045   :  { %4935 = vmatprep.mubr.msk.bf16.mxu1 %vm5654_vm0, %v5653_v1  ;;  %4945 = vmatprep.subr.bf16.mxu1 %v5653_v1 }
0x1046   :  { %4941 = vmatprep.mubr.msk.bf16.mxu0 %vm5654_vm0, %v5653_v1  ;;  %4951 = vmatprep.subr.bf16.mxu0 %v5653_v1 }
0x104b   :  { %4936 = vmatmul.mubr.bf16.vlgmr.msra.gmra.mxu1 %v2604_v40 }
0x104c   :  { %4946 = vmatpush3.bf16.msra.mxu1 %v2767_v11  ;;  %4947 = vmatprep.mubr.msk.bf16.mxu1 %vm5654_vm0, %v5653_v1 }
0x104d   :  { %4957 = vmatprep.subr.bf16.mxu1 %v5653_v1 }
0x10f3   :  { %v2457_v12 = vpop.f32.mrf.mxu0 }
0x10f5   :  { %v4907_v50 = vpop.f32.mrf.mxu0 }
0x10f6   :  { %v2811_v50 = vmul.f32 %v5987_v3, %v6150_v21  ;;  %v2812_v21 = vmul.f32 %v5987_v3, %v6160_v2 }
0x10f7   :  { %v2460_v48 = vpop.f32.mrf.mxu0 }
0x10f9   :  { %v4908_v44 = vpop.f32.mrf.mxu0 }
0x10fb   :  { %v2503_v16 = vpop.f32.mrf.mxu1  ;;  %v2549_v17 = vpop.f32.mrf.mxu0 }
0x10fc   :  { %v6242_v24 = vadd.f32 %v2549_v17, %v2457_v12  ;;  %v2921_v12 = vmul.f32 %v5987_v3, %v6146_v62 }
0x10fd   :  { %v4913_v25 = vpop.f32.mrf.mxu1  ;;  %v4919_v26 = vpop.f32.mrf.mxu0 }
0x10fe   :  { %v2813_v25 = vpack.c.bf16 %v2811_v50, %v2811_v50 }
0x10ff   :  { %v2506_v27 = vpop.f32.mrf.mxu1  ;;  %v2552_v28 = vpop.f32.mrf.mxu0 }
0x1100   :  { %v2814_v27 = vpack.c.bf16 %v2812_v21, %v2812_v21 }
0x1101   :  { %v4914_v8 = vpop.f32.mrf.mxu1  ;;  %v4920_v29 = vpop.f32.mrf.mxu0 }
0x1103   :  { %v2595_v33 = vpop.f32.mrf.mxu1  ;;  %v2639_v35 = vpop.f32.mrf.mxu0 }
0x1104   :  { %v6244_v14 = vadd.f32 %v2595_v33, %v2503_v16  ;;  %v2685_v20 = vmul.f32 0.17677669, %v2639_v35  ;;  %v2923_v16 = vpack.c.bf16 %v2921_v12, %v2921_v12  ;;  %v5134_v12 = vld [vmem:[#allocation5 + $0x68] sm:$0xff]  }
0x1105   :  { %v4925_v36 = vpop.f32.mrf.mxu1  ;;  %v4931_v56 = vpop.f32.mrf.mxu0 }
0x1106   :  { %v2687_v37 = vadd.f32 %v2685_v20, %v5913_v13  ;;  %v2931_v62 = vsel %vm753_vm5, %v2923_v16, 0  ;;  %v5137_v16 = vld [vmem:[#allocation5 + $0x50] sm:$0xff]  }
0x1107   :  { %v2598_v38 = vpop.f32.mrf.mxu1  ;;  %v2642_v18 = vpop.f32.mrf.mxu0 }
0x1108   :  { %v2689_v39 = vsel %vm605_vm6, %v2687_v37, -inf }
0x1109   :  { %2690 = vmax.xlane.f32.xlu0 %v2689_v39  ;;  %v4926_v41 = vpop.f32.mrf.mxu1  ;;  %v4932_v45 = vpop.f32.mrf.mxu0 }
0x110b   :  { %v2679_v46 = vpop.f32.mrf.mxu1 }
0x110c   :  { %v2686_v47 = vmul.f32 0.17677669, %v2679_v46 }
0x110d   :  { %v4937_v49 = vpop.f32.mrf.mxu1 }
0x110e   :  { %v2688_v55 = vadd.f32 %v2686_v47, %v5918_v23 }
0x110f   :  { %v2682_v57 = vpop.f32.mrf.mxu1 }
0x1110   :  { %v2692_v54 = vsel %vm605_vm6, %v2688_v55, -inf }
0x1111   :  { %2693 = vmax.xlane.f32.xlu1 %v2692_v54  ;;  %v4938_v51 = vpop.f32.mrf.mxu1 }
0x1192   :  { %v2691_v58 = vpop.xlane.xlu0 %2690 }
0x1193   :  { %v2695_v59 = vsub.f32 %v2687_v37, %v2691_v58 }
0x1195   :  { %v2697_v60 = vmul.f32 1.442695, %v2695_v59 }
0x1197   :  { %5324 = vpow2.f32 %v2697_v60 }
0x119a   :  { %v2694_v43 = vpop.xlane.xlu1 %2693 }
0x119b   :  { %v2696_v4 = vsub.f32 %v2688_v55, %v2694_v43 }
0x119d   :  { %v2699_v5 = vmul.f32 1.442695, %v2696_v4 }
0x119f   :  { %5326 = vpow2.f32 %v2699_v5 }
0x11a4   :  { %v5325_v34 = vpop.eup %5324 }
0x11a5   :  { %v2701_v6 = vsel %vm605_vm6, %v5325_v34, 0.0 }
0x11a6   :  { %2702 = vadd.xlane.f32.xlu0 %v2701_v6 }
0x11ac   :  { %v5327_v7 = vpop.eup %5326 }
0x11ad   :  { %v2704_v22 = vsel %vm605_vm6, %v5327_v7, 0.0 }
0x11ae   :  { %2705 = vadd.xlane.f32.xlu1 %v2704_v22 }
0x122f   :  { %v2703_v10 = vpop.xlane.xlu0 %2702 }
0x1230   :  { %5328 = vrcp.f32 %v2703_v10  ;;  %v5132_v10 = vld [vmem:[#allocation5 + $0x78] sm:$0xff]  }
0x1237   :  { %v2706_v63 = vpop.xlane.xlu1 %2705 }
0x1238   :  { %5330 = vrcp.f32 %v2706_v63 }
0x123d   :  { %v5329_v42 = vpop.eup %5328 }
0x123e   :  { %v2709_v40 = vmul.f32 %v5329_v42, %v5325_v34  ;;  %v5133_v42 = vld [vmem:[#allocation5 + $0x70] sm:$0xff]  }
0x1240   :  { %v2715_v11 = vpack.c.bf16 %v2709_v40, %v2709_v40 }
0x1242   :  { %4942 = vmatmul.mubr.msk.bf16.vlgmr.msra.gmra.mxu0 %vm605_vm6, %v2715_v11 }
0x1243   :  { %4952 = vmatpush3.bf16.xpose.msra.mxu0 %v6152_v9  ;;  %4953 = vmatprep.mubr.msk.bf16.mxu0 %vm5654_vm0, %v5653_v1  ;;  %v2922_v9 = vmul.f32 %v5987_v3, %v6176_v19 }
0x1244   :  { %4963 = vmatprep.subr.bf16.mxu0 %v5653_v1 }
0x1245   :  { %v5331_v48 = vpop.eup %5330  ;;  %v2924_v26 = vpack.c.bf16 %v2922_v9, %v2922_v9 }
0x1246   :  { %v2710_v44 = vmul.f32 %v5331_v48, %v5327_v7  ;;  %v5135_v48 = vld [vmem:[#allocation5 + $0x60] sm:$0xff]  }
0x1247   :  { %v2977_v19 = vsel %vm753_vm5, %v2924_v26, 0 }
0x1248   :  { %v2716_v17 = vpack.c.bf16 %v2710_v44, %v2710_v44  ;;  %v5136_v44 = vld [vmem:[#allocation5 + $0x58] sm:$0xff]  }
0x124a   :  { %4948 = vmatmul.mubr.msk.bf16.vlgmr.msra.gmra.mxu1 %vm605_vm6, %v2716_v17  ;;  %4954 = vmatmul.mubr.bf16.vlgmr.msra.gmra.mxu0 %v2813_v25  ;;  %v5138_v17 = vld [vmem:[#allocation5 + $0x48] sm:$0xff]   ;;  %v5139_v25 = vld [vmem:[#allocation5 + $0x40] sm:$0xff]  }
0x124b   :  { %4958 = vmatpush3.bf16.xpose.msra.mxu1 %v6162_v15  ;;  %4964 = vmatpush3.bf16.msra.mxu0 %v2931_v62 }
0x124c   :  { %4959 = vmatprep.mubr.msk.bf16.mxu1 %vm5654_vm0, %v5653_v1  ;;  %4969 = vmatprep.subr.bf16.mxu1 %v5653_v1 }
0x124d   :  { %4965 = vmatprep.mubr.msk.bf16.mxu0 %vm5654_vm0, %v5653_v1  ;;  %4975 = vmatprep.subr.bf16.mxu0 %v5653_v1 }
0x1252   :  { %4960 = vmatmul.mubr.bf16.vlgmr.msra.gmra.mxu1 %v2814_v27 }
0x1253   :  { %4970 = vmatpush3.bf16.msra.mxu1 %v2977_v19  ;;  %4971 = vmatprep.mubr.msk.bf16.mxu1 %vm5654_vm0, %v5653_v1 }
0x1302   :  { %v2757_v15 = vpop.f32.mrf.mxu0 }
0x1303   :  { %v6278_v28 = vadd.f32 %v2757_v15, %v6242_v24 }
0x1304   :  { %v4943_v8 = vpop.f32.mrf.mxu0 }
0x1306   :  { %v2760_v3 = vpop.f32.mrf.mxu0 }
0x1308   :  { %v4944_v2 = vpop.f32.mrf.mxu0 }
0x130a   :  { %v2803_v29 = vpop.f32.mrf.mxu1  ;;  %v2849_v33 = vpop.f32.mrf.mxu0 }
0x130b   :  { %v6281_v35 = vadd.f32 %v2803_v29, %v6244_v14  ;;  %v2895_v20 = vmul.f32 0.17677669, %v2849_v33  ;;  %v4407_v33 = vld [vmem:[#allocation7 + $0x1] ss:$0 sm:$0xff] }
0x130c   :  { %v4949_v36 = vpop.f32.mrf.mxu1  ;;  %v4955_v56 = vpop.f32.mrf.mxu0 }
0x130d   :  { %v2897_v37 = vadd.f32 %v2895_v20, %v5913_v13 }
0x130e   :  { %v2806_v38 = vpop.f32.mrf.mxu1  ;;  %v2852_v18 = vpop.f32.mrf.mxu0 }
0x130f   :  { %v2899_v39 = vsel %vm605_vm6, %v2897_v37, -inf }
0x1310   :  { %2900 = vmax.xlane.f32.xlu0 %v2899_v39  ;;  %v4950_v24 = vpop.f32.mrf.mxu1  ;;  %v4956_v41 = vpop.f32.mrf.mxu0 }
0x1312   :  { %v2889_v45 = vpop.f32.mrf.mxu1 }
0x1313   :  { %v2896_v46 = vmul.f32 0.17677669, %v2889_v45 }
0x1314   :  { %v4961_v47 = vpop.f32.mrf.mxu1 }
0x1315   :  { %v2898_v49 = vadd.f32 %v2896_v46, %v5918_v23 }
0x1316   :  { %v2892_v55 = vpop.f32.mrf.mxu1 }
0x1317   :  { %v2902_v14 = vsel %vm605_vm6, %v2898_v49, -inf  ;;  %v5143_v55 = vld [vmem:[%s6495_s8 + $0xe0] ss:$8 sps:$4 sm:$0xff]  }
0x1318   :  { %2903 = vmax.xlane.f32.xlu1 %v2902_v14  ;;  %v4962_v57 = vpop.f32.mrf.mxu1  ;;  %v5145_v14 = vld [vmem:[%s6495_s8 + $0xe4] ss:$8 sps:$4 sm:$0xff]  }
0x1319   :  { %v5146_v57 = vld [vmem:[%s6495_s8 + $0xd0] ss:$8 sps:$4 sm:$0xff]  }
0x1399   :  { %v2901_v54 = vpop.xlane.xlu0 %2900 }
0x139a   :  { %v2905_v51 = vsub.f32 %v2897_v37, %v2901_v54  ;;  %v5148_v54 = vld [vmem:[%s6495_s8 + $0xd4] ss:$8 sps:$4 sm:$0xff]  }
0x139c   :  { %v2907_v13 = vmul.f32 1.442695, %v2905_v51  ;;  %v5151_v51 = vld [vmem:[%s6495_s8 + $0xc4] ss:$8 sps:$4 sm:$0xff]  }
0x139e   :  { %5332 = vpow2.f32 %v2907_v13  ;;  %v5149_v13 = vld [vmem:[%s6495_s8 + $0xc0] ss:$8 sps:$4 sm:$0xff]  }
0x13a1   :  { %v2904_v58 = vpop.xlane.xlu1 %2903 }
0x13a2   :  { %v2906_v59 = vsub.f32 %v2898_v49, %v2904_v58  ;;  %v5154_v58 = vld [vmem:[%s6495_s8 + $0xb4] ss:$8 sps:$4 sm:$0xff]  }
0x13a4   :  { %v2909_v60 = vmul.f32 1.442695, %v2906_v59  ;;  %v5152_v59 = vld [vmem:[%s6495_s8 + $0xb0] ss:$8 sps:$4 sm:$0xff]  }
0x13a6   :  { %5334 = vpow2.f32 %v2909_v60  ;;  %v5157_v60 = vld [vmem:[%s6495_s8 + $0xa4] ss:$8 sps:$4 sm:$0xff]  }
0x13ab   :  { %v5333_v43 = vpop.eup %5332 }
0x13ac   :  { %v2911_v4 = vsel %vm605_vm6, %v5333_v43, 0.0 }
0x13ad   :  { %2912 = vadd.xlane.f32.xlu0 %v2911_v4  ;;  %v5160_v4 = vld [vmem:[%s6495_s8 + $0x94] ss:$8 sps:$4 sm:$0xff]  }
0x13b3   :  { %v5335_v5 = vpop.eup %5334 }
0x13b4   :  { %v2914_v23 = vsel %vm605_vm6, %v5335_v5, 0.0 }
0x13b5   :  { %2915 = vadd.xlane.f32.xlu1 %v2914_v23  ;;  %v5163_v23 = vld [vmem:[%s6495_s8 + $0x84] ss:$8 sps:$4 sm:$0xff]  }
0x1436   :  { %v2913_v34 = vpop.xlane.xlu0 %2912 }
0x1437   :  { %5336 = vrcp.f32 %v2913_v34  ;;  %v5161_v34 = vld [vmem:[%s6495_s8 + $0x80] ss:$8 sps:$4 sm:$0xff]  }
0x143e   :  { %v2916_v6 = vpop.xlane.xlu1 %2915 }
0x143f   :  { %5338 = vrcp.f32 %v2916_v6 }
0x1444   :  { %v5337_v7 = vpop.eup %5336 }
0x1445   :  { %v2919_v22 = vmul.f32 %v5337_v7, %v5333_v43  ;;  %v5155_v43 = vld [vmem:[%s6495_s8 + $0xa0] ss:$8 sps:$4 sm:$0xff]  }
0x1447   :  { %v2925_v63 = vpack.c.bf16 %v2919_v22, %v2919_v22 }
0x1449   :  { %4966 = vmatmul.mubr.msk.bf16.vlgmr.msra.gmra.mxu0 %vm605_vm6, %v2925_v63 }
0x144a   :  { %4976 = vmatpush3.bf16.msra.mxu0 %v5132_v10  ;;  %4991 = vmatprep.mubr.msk.bf16.mxu0 %vm5654_vm0, %v5653_v1 }
0x144b   :  { %4977 = vmatprep.subr.bf16.mxu0 %v5653_v1 }
0x144c   :  { %v5339_v40 = vpop.eup %5338 }
0x144d   :  { %v2920_v11 = vmul.f32 %v5339_v40, %v5335_v5  ;;  %v5158_v5 = vld [vmem:[%s6495_s8 + $0x90] ss:$8 sps:$4 sm:$0xff]  }
0x144e   :  { %4978 = vmatpush3.bf16.msra.mxu0 %v5133_v42 }
0x144f   :  { %v2926_v50 = vpack.c.bf16 %v2920_v11, %v2920_v11  ;;  %4979 = vmatprep.subr.bf16.mxu0 %v5653_v1 }
0x1451   :  { %4972 = vmatmul.mubr.msk.bf16.vlgmr.msra.gmra.mxu1 %vm605_vm6, %v2926_v50 }
0x1452   :  { %4980 = vmatpush3.bf16.msra.mxu0 %v5134_v12  ;;  %3323 = vmatprep.mubr.bf16.mxu1 %v5652_v0  ;;  %v4416_v12 = vld [vmem:[#allocation8 + $0x1] ss:$0 sm:$0xff] }
0x1453   :  { %4981 = vmatprep.subr.bf16.mxu0 %v5653_v1 }
0x1456   :  { %4982 = vmatpush3.bf16.msra.mxu0 %v5135_v48 }
0x1457   :  { %4983 = vmatprep.subr.bf16.mxu0 %v5653_v1 }
0x145a   :  { %4984 = vmatpush3.bf16.msra.mxu0 %v5136_v44 }
0x145b   :  { %4985 = vmatprep.subr.bf16.mxu0 %v5653_v1 }
0x145e   :  { %4986 = vmatpush3.bf16.msra.mxu0 %v5137_v16  ;;  %v4417_v16 = vld [vmem:[#allocation10 + $0x1] ss:$0 sm:$0xff] }
0x145f   :  { %4987 = vmatprep.subr.bf16.mxu0 %v5653_v1 }
0x1462   :  { %4988 = vmatpush3.bf16.msra.mxu0 %v5138_v17 }
0x1463   :  { %4989 = vmatprep.subr.bf16.mxu0 %v5653_v1 }
0x1466   :  { %4990 = vmatpush3.bf16.msra.mxu0 %v5139_v25 }
0x1509   :  { %v2967_v62 = vpop.f32.mrf.mxu0 }
0x150a   :  { %v3019_v19 = vadd.f32 %v2967_v62, %v6278_v28  ;;  %v5140_v28 = vld [vmem:[%s6495_s8 + $0xf0] ss:$8 sps:$4 sm:$0xff]  }
0x150b   :  { %v4967_v9 = vpop.f32.mrf.mxu0 }
0x150d   :  { %v2970_v21 = vpop.f32.mrf.mxu0 }
0x150e   :  { %v5164_v21 = vld [vmem:[#allocation11 + $0xf8] sm:$0xff]  }
0x150f   :  { %v4968_v26 = vpop.f32.mrf.mxu0  ;;  %4657 = vmatprep.subr.bf16.mxu0 %v5164_v21 }
0x1510   :  { %v5165_v26 = vld [vmem:[#allocation11 + $0xb8] sm:$0xff]  }
0x1511   :  { %v3013_v27 = vpop.f32.mrf.mxu1 }
0x1512   :  { %v3020_v15 = vadd.f32 %v3013_v27, %v6281_v35  ;;  %v5142_v35 = vld [vmem:[%s6495_s8 + $0xf4] ss:$8 sps:$4 sm:$0xff]  }
0x1513   :  { %v4973_v8 = vpop.f32.mrf.mxu1  ;;  %3291 = vmatprep.subr.bf16.mxu1 %v5142_v35  ;;  %v5166_v27 = vld [vmem:[#allocation11 + $0xf0] sm:$0xff]  }
0x1514   :  { %v3021_v3 = vpack.c.bf16 %v3020_v15, %v3019_v19  ;;  %3292 = vmatpush1.bf16.msra.mxu1 %v5140_v28  ;;  %v5167_v19 = vld [vmem:[#allocation11 + $0xb0] sm:$0xff]   ;;  %v5168_v15 = vld [vmem:[#allocation11 + $0xe8] sm:$0xff]  }
0x1515   :  { %v3016_v2 = vpop.f32.mrf.mxu1  ;;  %3293 = vmatprep.subr.bf16.mxu1 %v5145_v14  ;;  %v5169_v8 = vld [vmem:[#allocation11 + $0xa8] sm:$0xff]  }
0x1516   :  { %4992 = vmatmul.mubr.bf16.vlgmr.msra.gmra.mxu0 %v3021_v3  ;;  %v5170_v3 = vld [vmem:[#allocation11 + $0xe0] sm:$0xff]  }
0x1517   :  { %v4974_v29 = vpop.f32.mrf.mxu1  ;;  %4658 = vmatpush3.bf16.msra.mxu0 %v5165_v26  ;;  %v5171_v2 = vld [vmem:[#allocation11 + $0xa0] sm:$0xff]  }
0x1518   :  { %3294 = vmatpush1.bf16.msra.mxu1 %v5143_v55  ;;  %4659 = vmatprep.subr.bf16.mxu0 %v5166_v27  ;;  %v5172_v29 = vld [vmem:[#allocation11 + $0xd8] sm:$0xff]  }
0x1519   :  { %3295 = vmatprep.subr.bf16.mxu1 %v5148_v54 }
0x151b   :  { %4660 = vmatpush3.bf16.msra.mxu0 %v5167_v19 }
0x151c   :  { %3296 = vmatpush1.bf16.msra.mxu1 %v5146_v57  ;;  %4661 = vmatprep.subr.bf16.mxu0 %v5168_v15 }
0x151d   :  { %3297 = vmatprep.subr.bf16.mxu1 %v5151_v51 }
0x151f   :  { %4662 = vmatpush3.bf16.msra.mxu0 %v5169_v8 }
0x1520   :  { %3298 = vmatpush1.bf16.msra.mxu1 %v5149_v13  ;;  %4663 = vmatprep.subr.bf16.mxu0 %v5170_v3 }
0x1521   :  { %3299 = vmatprep.subr.bf16.mxu1 %v5154_v58 }
0x1523   :  { %4664 = vmatpush3.bf16.msra.mxu0 %v5171_v2 }
0x1524   :  { %3300 = vmatpush1.bf16.msra.mxu1 %v5152_v59  ;;  %4665 = vmatprep.subr.bf16.mxu0 %v5172_v29 }
0x1525   :  { %3301 = vmatprep.subr.bf16.mxu1 %v5157_v60 }
0x1528   :  { %3302 = vmatpush1.bf16.msra.mxu1 %v5155_v43 }
0x1529   :  { %3303 = vmatprep.subr.bf16.mxu1 %v5160_v4 }
0x152c   :  { %3304 = vmatpush1.bf16.msra.mxu1 %v5158_v5 }
0x152d   :  { %3305 = vmatprep.subr.bf16.mxu1 %v5163_v23 }
0x1530   :  { %3306 = vmatpush1.bf16.msra.mxu1 %v5161_v34 }
0x15d6   :  { %v3129_v20 = vpop.f32.mrf.mxu0 }
0x15d7   :  { %v3130_v36 = vadd.f32 %v4407_v33, %v3129_v20  ;;  %v5174_v20 = vld [vmem:[#allocation11 + $0xd0] sm:$0xff]  }
0x15d8   :  { %v4993_v1 = vpop.f32.mrf.mxu0 }
0x15d9   :  { %v3136_v56 = vadd.f32 %v3130_v36, %v6130_v52  ;;  %v5175_v36 = vld [vmem:[#allocation11 + $0x90] sm:$0xff]   ;;  %v5176_v1 = vld [vmem:[#allocation11 + $0xc8] sm:$0xff]  }
0x15da   :  { %v3132_v37 = vpop.f32.mrf.mxu0 }
0x15db   :  { %v3133_v38 = vadd.f32 %v4407_v33, %v3132_v37  ;;  %3142 = vadd.xlane.f32.xlu0 %v3136_v56  ;;  %v5173_v33 = vld [vmem:[#allocation11 + $0x98] sm:$0xff]   ;;  %v5178_v37 = vld [vmem:[#allocation11 + $0xc0] sm:$0xff]  }
0x15dc   :  { %v4994_v18 = vpop.f32.mrf.mxu0  ;;  %4666 = vmatpush3.bf16.msra.mxu0 %v5173_v33  ;;  %v4451_v33 = vld [vmem:[#allocation13 + $0x1] ss:$0 sm:$0xff] }
0x15dd   :  { %v3137_v39 = vadd.f32 %v3133_v38, %v6132_v53  ;;  %4667 = vmatprep.subr.bf16.mxu0 %v5174_v20  ;;  %v5179_v38 = vld [vmem:[#allocation11 + $0x80] sm:$0xff]   ;;  %v4434_v18 = vld [vmem:[%s6496_s9 + $0x2] sm:$0x3] }
0x15de   :  { %v3208_v28 = vrot.slane %v4434_v18, %v5837_v31 }
0x15df   :  { %3144 = vadd.xlane.f32.xlu1 %v3137_v39 }
0x15e0   :  { %4668 = vmatpush3.bf16.msra.mxu0 %v5175_v36 }
0x15e1   :  { %4669 = vmatprep.subr.bf16.mxu0 %v5176_v1 }
0x1664   :  { %v3143_v24 = vpop.xlane.xlu0 %3142 }
0x1665   :  { %v3146_v41 = vmul.f32 0.0078125, %v3143_v24 }
0x1667   :  { %v3148_v52 = vsub.f32 %v3136_v56, %v3146_v41  ;;  %v5177_v56 = vld [vmem:[#allocation11 + $0x88] sm:$0xff]  }
0x1668   :  { %v3145_v45 = vpop.xlane.xlu1 %3144  ;;  %4670 = vmatpush3.bf16.msra.mxu0 %v5177_v56 }
0x1669   :  { %v3147_v46 = vmul.f32 0.0078125, %v3145_v45  ;;  %v3150_v47 = vmul.f32 %v3148_v52, %v3148_v52  ;;  %4671 = vmatprep.subr.bf16.mxu0 %v5178_v37 }
0x166b   :  { %v3149_v49 = vsub.f32 %v3137_v39, %v3147_v46  ;;  %3152 = vadd.xlane.f32.xlu0 %v3150_v47  ;;  %v3204_v39 = vrot.slane %v4434_v18, %v5840_v32 }
0x166c   :  { %4672 = vmatpush3.bf16.msra.mxu0 %v5179_v38 }
0x166d   :  { %v3151_v53 = vmul.f32 %v3149_v49, %v3149_v49 }
0x166f   :  { %3154 = vadd.xlane.f32.xlu1 %v3151_v53 }
0x16f4   :  { %v3153_v6 = vpop.xlane.xlu0 %3152 }
0x16f5   :  { %v3156_v7 = vmul.f32 0.0078125, %v3153_v6 }
0x16f7   :  { %v3158_v22 = vadd.f32 1e-05, %v3156_v7 }
0x16f8   :  { %v3155_v10 = vpop.xlane.xlu1 %3154 }
0x16f9   :  { %5340 = vrsqrt.f32 %v3158_v22  ;;  %v3157_v63 = vmul.f32 0.0078125, %v3155_v10 }
0x16fb   :  { %v3159_v42 = vadd.f32 1e-05, %v3157_v63 }
0x16fd   :  { %5342 = vrsqrt.f32 %v3159_v42 }
0x1706   :  { %v5341_v40 = vpop.eup %5340 }
0x1707   :  { %v3162_v11 = vmul.f32 %v5341_v40, %v3148_v52 }
0x1709   :  { %v3170_v44 = vmul.f32 %v4416_v12, %v3162_v11 }
0x170a   :  { %v5343_v50 = vpop.eup %5342 }
0x170b   :  { %v3163_v48 = vmul.f32 %v5343_v50, %v3149_v49  ;;  %v6353_v25 = vadd.f32 %v4417_v16, %v3170_v44 }
0x170d   :  { %v3171_v17 = vmul.f32 %v4416_v12, %v3163_v48 }
0x170f   :  { %v6355_v62 = vadd.f32 %v4417_v16, %v3171_v17 }
0x1711   :  { %v3180_v9 = vpack.c.bf16 %v6355_v62, %v6353_v25 }
0x1713   :  { %3324 = vmatmul.mubr.bf16.vlgmr.msra.gmra.mxu1 %v3180_v9 }
0x1714   :  { %3853 = vmatprep.mubr.bf16.mxu1 %v5652_v0 }
0x17d3   :  { %v3325_v35 = vpop.f32.mrf.mxu1 }
0x17d4   :  { %v3326_v24 = vadd.f32 %v3325_v35, %v3204_v39 }
0x17d5   :  { %v3327_v41 = vpop.f32.mrf.mxu1 }
0x17d6   :  { %v3334_v52 = vmul.f32 %v3326_v24, %v3326_v24  ;;  %v3328_v45 = vadd.f32 %v3327_v41, %v3208_v28 }
0x17d7   :  { %v3329_v46 = vpop.f32.mrf.mxu1 }
0x17d8   :  { %v3338_v47 = vmul.f32 %v3334_v52, %v3326_v24  ;;  %v3335_v49 = vmul.f32 %v3328_v45, %v3328_v45  ;;  %v3330_v53 = vadd.f32 %v3329_v46, %v3204_v39 }
0x17d9   :  { %v3331_v55 = vpop.f32.mrf.mxu1 }
0x17da   :  { %v3342_v14 = vmul.f32 0.044715, %v3338_v47  ;;  %v3339_v57 = vmul.f32 %v3335_v49, %v3328_v45  ;;  %v3336_v54 = vmul.f32 %v3330_v53, %v3330_v53  ;;  %v3332_v51 = vadd.f32 %v3331_v55, %v3208_v28  ;;  %v5182_v47 = vld [vmem:[#allocation17 + $0xe4] ss:$16 sps:$4 sm:$0xff]   ;;  %v5185_v49 = vld [vmem:[#allocation17 + $0xec] ss:$16 sps:$4 sm:$0xff]  }
0x17db   :  { %3821 = vmatprep.subr.bf16.mxu1 %v5182_v47  ;;  %3862 = vmatprep.subr.bf16.mxu0 %v5185_v49  ;;  %v5188_v55 = vld [vmem:[#allocation17 + $0xc4] ss:$16 sps:$4 sm:$0xff]  }
0x17dc   :  { %v3346_v13 = vadd.f32 %v3342_v14, %v3326_v24  ;;  %v3343_v58 = vmul.f32 0.044715, %v3339_v57  ;;  %v3340_v59 = vmul.f32 %v3336_v54, %v3330_v53  ;;  %v3337_v60 = vmul.f32 %v3332_v51, %v3332_v51  ;;  %v5191_v14 = vld [vmem:[#allocation17 + $0xcc] ss:$16 sps:$4 sm:$0xff]   ;;  %v5186_v57 = vld [vmem:[#allocation17 + $0xc0] ss:$16 sps:$4 sm:$0xff]  }
0x17dd   :  { %v5189_v54 = vld [vmem:[#allocation17 + $0xc8] ss:$16 sps:$4 sm:$0xff]  }
0x17de   :  { %v3350_v43 = vmul.f32 0.7978846, %v3346_v13  ;;  %v3347_v4 = vadd.f32 %v3343_v58, %v3328_v45  ;;  %v3344_v5 = vmul.f32 0.044715, %v3340_v59  ;;  %v3341_v23 = vmul.f32 %v3337_v60, %v3332_v51  ;;  %v5197_v13 = vld [vmem:[#allocation17 + $0xac] ss:$16 sps:$4 sm:$0xff]  }
0x17df   :  { %v5192_v58 = vld [vmem:[#allocation17 + $0xa0] ss:$16 sps:$4 sm:$0xff]   ;;  %v5195_v59 = vld [vmem:[#allocation17 + $0xa8] ss:$16 sps:$4 sm:$0xff]   ;;  %v5200_v60 = vld [vmem:[#allocation17 + $0x84] ss:$16 sps:$4 sm:$0xff]  }
0x17e0   :  { %v3351_v34 = vmul.f32 0.7978846, %v3347_v4  ;;  %v3348_v6 = vadd.f32 %v3344_v5, %v3330_v53  ;;  %v3345_v7 = vmul.f32 0.044715, %v3341_v23  ;;  %5344 = vtanh.f32 %v3350_v43  ;;  %v5203_v43 = vld [vmem:[#allocation17 + $0x8c] ss:$16 sps:$4 sm:$0xff]  }
0x17e1   :  { %v5198_v4 = vld [vmem:[#allocation17 + $0x80] ss:$16 sps:$4 sm:$0xff]   ;;  %v5201_v5 = vld [vmem:[#allocation17 + $0x88] ss:$16 sps:$4 sm:$0xff]   ;;  %v5206_v23 = vld [vmem:[#allocation17 + $0x64] ss:$16 sps:$4 sm:$0xff]  }
0x17e2   :  { %5346 = vtanh.f32 %v3351_v34  ;;  %v3352_v22 = vmul.f32 0.7978846, %v3348_v6  ;;  %v3349_v10 = vadd.f32 %v3345_v7, %v3332_v51  ;;  %v5209_v34 = vld [vmem:[#allocation17 + $0x6c] ss:$16 sps:$4 sm:$0xff]   ;;  %v5204_v6 = vld [vmem:[#allocation17 + $0x60] ss:$16 sps:$4 sm:$0xff]  }
0x17e3   :  { %v5207_v7 = vld [vmem:[#allocation17 + $0x68] ss:$16 sps:$4 sm:$0xff]  }
0x17e4   :  { %5348 = vtanh.f32 %v3352_v22  ;;  %v3353_v63 = vmul.f32 0.7978846, %v3349_v10  ;;  %v5212_v22 = vld [vmem:[#allocation17 + $0x44] ss:$16 sps:$4 sm:$0xff]   ;;  %v5215_v10 = vld [vmem:[#allocation17 + $0x4c] ss:$16 sps:$4 sm:$0xff]  }
0x17e5   :  { %v5233_v47 = vld [vmem:[%s6503_s16 + $0xf0] sm:$0xff]  }
0x17e6   :  { %5350 = vtanh.f32 %v3353_v63  ;;  %v5210_v63 = vld [vmem:[#allocation17 + $0x40] ss:$16 sps:$4 sm:$0xff]   ;;  %v5234_v49 = vld [vmem:[%s6503_s16 + $0x30] sm:$0xff]  }
0x17ed   :  { %v5345_v42 = vpop.eup %5344 }
0x17ee   :  { %v3358_v50 = vadd.f32 1.0, %v5345_v42  ;;  %v5213_v42 = vld [vmem:[#allocation17 + $0x48] ss:$16 sps:$4 sm:$0xff]  }
0x17ef   :  { %v5347_v40 = vpop.eup %5346 }
0x17f0   :  { %v3359_v11 = vadd.f32 1.0, %v5347_v40  ;;  %v3362_v21 = vmul.f32 0.5, %v3358_v50  ;;  %v5218_v40 = vld [vmem:[#allocation17 + $0x24] ss:$16 sps:$4 sm:$0xff]   ;;  %v5219_v50 = vld [vmem:[#allocation17 + $0x28] ss:$16 sps:$4 sm:$0xff]  }
0x17f1   :  { %v5349_v12 = vpop.eup %5348 }
0x17f2   :  { %v3360_v48 = vadd.f32 1.0, %v5349_v12  ;;  %v3363_v9 = vmul.f32 0.5, %v3359_v11  ;;  %v3366_v8 = vmul.f32 %v3362_v21, %v3326_v24  ;;  %v5221_v11 = vld [vmem:[#allocation17 + $0x2c] ss:$16 sps:$4 sm:$0xff]   ;;  %v5216_v12 = vld [vmem:[#allocation17 + $0x20] ss:$16 sps:$4 sm:$0xff]  }
0x17f3   :  { %v5351_v44 = vpop.eup %5350  ;;  %v5229_v21 = vld [vmem:[%s6503_s16 + $0xf8] sm:$0xff]  }
0x17f4   :  { %v3364_v16 = vmul.f32 0.5, %v3360_v48  ;;  %v3361_v17 = vadd.f32 1.0, %v5351_v44  ;;  %v3367_v19 = vmul.f32 %v3363_v9, %v3328_v45  ;;  %v5224_v48 = vld [vmem:[#allocation17 + $0x4] ss:$16 sps:$4 sm:$0xff]   ;;  %v5227_v44 = vld [vmem:[#allocation17 + $0xc] ss:$16 sps:$4 sm:$0xff]  }
0x17f5   :  { %v5228_v9 = vld [vmem:[%s6503_s16 + $0x78] sm:$0xff]  }
0x17f6   :  { %v3365_v26 = vmul.f32 0.5, %v3361_v17  ;;  %v3368_v27 = vmul.f32 %v3364_v16, %v3330_v53  ;;  %v5183_v53 = vld [vmem:[#allocation17 + $0xe8] ss:$16 sps:$4 sm:$0xff]   ;;  %v5222_v16 = vld [vmem:[#allocation17] ss:$16 sps:$4 sm:$0xff]  }
0x17f7   :  { %v5225_v17 = vld [vmem:[#allocation17 + $0x8] ss:$16 sps:$4 sm:$0xff]  }
0x17f8   :  { %v3369_v15 = vmul.f32 %v3365_v26, %v3332_v51  ;;  %v3370_v2 = vpack.c.bf16 %v3368_v27, %v3366_v8  ;;  %v5194_v51 = vld [vmem:[#allocation17 + $0xa4] ss:$16 sps:$4 sm:$0xff]  }
0x17fa   :  { %v3371_v3 = vpack.c.bf16 %v3369_v15, %v3367_v19 }
0x17fc   :  { %3541 = vmatprep.mubr.bf16.mxu0 %v3371_v3 }
0x17fd   :  { %3542 = vmatmul.mubr.bf16.vlgmr.msra.gmra.mxu0 %v3370_v2 }
0x17fe   :  { %3894 = vmatprep.mubr.bf16.mxu0 %v5652_v0  ;;  %3863 = vmatpush1.bf16.msra.mxu0 %v5183_v53  ;;  %v5236_v53 = vld [vmem:[%s6503_s16 + $0x68] sm:$0xff]  }
0x17ff   :  { %3864 = vmatprep.subr.bf16.mxu0 %v5191_v14  ;;  %v5238_v14 = vld [vmem:[%s6503_s16 + $0x28] sm:$0xff]  }
0x1802   :  { %3865 = vmatpush1.bf16.msra.mxu0 %v5189_v54  ;;  %v5240_v54 = vld [vmem:[%s6503_s16 + $0x60] sm:$0xff]  }
0x1803   :  { %3866 = vmatprep.subr.bf16.mxu0 %v5197_v13  ;;  %v5242_v13 = vld [vmem:[%s6503_s16 + $0x20] sm:$0xff]  }
0x1806   :  { %3867 = vmatpush1.bf16.msra.mxu0 %v5195_v59  ;;  %v5244_v59 = vld [vmem:[%s6503_s16 + $0x58] sm:$0xff]  }
0x1807   :  { %3868 = vmatprep.subr.bf16.mxu0 %v5203_v43  ;;  %v5246_v43 = vld [vmem:[%s6503_s16 + $0x18] sm:$0xff]  }
0x180a   :  { %3869 = vmatpush1.bf16.msra.mxu0 %v5201_v5  ;;  %v5248_v5 = vld [vmem:[%s6503_s16 + $0x50] sm:$0xff]  }
0x180b   :  { %3870 = vmatprep.subr.bf16.mxu0 %v5209_v34  ;;  %v5250_v34 = vld [vmem:[%s6503_s16 + $0x10] sm:$0xff]  }
0x180e   :  { %3871 = vmatpush1.bf16.msra.mxu0 %v5207_v7  ;;  %v5252_v7 = vld [vmem:[%s6503_s16 + $0x48] sm:$0xff]  }
0x180f   :  { %3872 = vmatprep.subr.bf16.mxu0 %v5215_v10  ;;  %v5254_v10 = vld [vmem:[%s6503_s16 + $0x8] sm:$0xff]  }
0x1812   :  { %3873 = vmatpush1.bf16.msra.mxu0 %v5213_v42  ;;  %v5256_v42 = vld [vmem:[%s6503_s16 + $0x40] sm:$0xff]  }
0x1813   :  { %3874 = vmatprep.subr.bf16.mxu0 %v5221_v11  ;;  %v5258_v11 = vld [vmem:[%s6503_s16] sm:$0xff]  }
0x1816   :  { %3875 = vmatpush1.bf16.msra.mxu0 %v5219_v50  ;;  %v3630_v50 = vld [vmem:[#allocation19] sm:$0xf] }
0x1817   :  { %3876 = vmatprep.subr.bf16.mxu0 %v5227_v44  ;;  %v3635_v44 = vrot.slane %v3630_v50, %v5840_v32 }
0x181a   :  { %3877 = vmatpush1.bf16.msra.mxu0 %v5225_v17  ;;  %v3639_v17 = vrot.slane %v3630_v50, %v5837_v31 }
0x181b   :  { %4701 = vmatprep.subr.bf16.mxu0 %v5229_v21 }
0x18bd   :  { %v4673_v29 = vpop.f32.mrf.mxu0 }
0x18bf   :  { %v4674_v20 = vpop.f32.mrf.mxu0 }
0x18c0   :  { %v4675_v36 = vadd.f32 %v4674_v20, %v4673_v29  ;;  %v4468_v29 = vld [vmem:[#allocation14 + $0x1] ss:$0 sm:$0xff]  ;;  %v4469_v20 = vld [vmem:[#allocation16 + $0x1] ss:$0 sm:$0xff] }
0x18c1   :  { %v4676_v1 = vpop.f32.mrf.mxu0 }
0x18c2   :  { %v3544_v56 = vadd.f32 %v4675_v36, %v4451_v33 }
0x18c3   :  { %v4677_v37 = vpop.f32.mrf.mxu0 }
0x18c4   :  { %v4678_v38 = vadd.f32 %v4677_v37, %v4676_v1  ;;  %v3550_v18 = vadd.f32 %v3544_v56, %v6353_v25 }
0x18c6   :  { %v3547_v39 = vadd.f32 %v4678_v38, %v4451_v33  ;;  %3556 = vadd.xlane.f32.xlu1 %v3550_v18 }
0x18c8   :  { %v3551_v28 = vadd.f32 %v3547_v39, %v6355_v62  ;;  %v5180_v62 = vld [vmem:[#allocation17 + $0xe0] ss:$16 sps:$4 sm:$0xff]  }
0x18c9   :  { %3822 = vmatpush1.bf16.msra.mxu1 %v5180_v62  ;;  %v5235_v62 = vld [vmem:[%s6503_s16 + $0xb0] sm:$0xff]  }
0x18ca   :  { %3558 = vadd.xlane.f32.xlu0 %v3551_v28  ;;  %3823 = vmatprep.subr.bf16.mxu1 %v5188_v55  ;;  %v5237_v55 = vld [vmem:[%s6503_s16 + $0xe8] sm:$0xff]  }
0x18cd   :  { %3824 = vmatpush1.bf16.msra.mxu1 %v5186_v57  ;;  %v5239_v57 = vld [vmem:[%s6503_s16 + $0xa8] sm:$0xff]  }
0x18ce   :  { %3825 = vmatprep.subr.bf16.mxu1 %v5194_v51  ;;  %v5241_v51 = vld [vmem:[%s6503_s16 + $0xe0] sm:$0xff]  }
0x18d1   :  { %3826 = vmatpush1.bf16.msra.mxu1 %v5192_v58  ;;  %v5243_v58 = vld [vmem:[%s6503_s16 + $0xa0] sm:$0xff]  }
0x18d2   :  { %3827 = vmatprep.subr.bf16.mxu1 %v5200_v60  ;;  %v5245_v60 = vld [vmem:[%s6503_s16 + $0xd8] sm:$0xff]  }
0x18d5   :  { %3828 = vmatpush1.bf16.msra.mxu1 %v5198_v4  ;;  %v5247_v4 = vld [vmem:[%s6503_s16 + $0x98] sm:$0xff]  }
0x18d6   :  { %3829 = vmatprep.subr.bf16.mxu1 %v5206_v23  ;;  %v5249_v23 = vld [vmem:[%s6503_s16 + $0xd0] sm:$0xff]  }
0x18d9   :  { %3830 = vmatpush1.bf16.msra.mxu1 %v5204_v6  ;;  %v5251_v6 = vld [vmem:[%s6503_s16 + $0x90] sm:$0xff]  }
0x18da   :  { %3831 = vmatprep.subr.bf16.mxu1 %v5212_v22  ;;  %v5253_v22 = vld [vmem:[%s6503_s16 + $0xc8] sm:$0xff]  }
0x18dd   :  { %3832 = vmatpush1.bf16.msra.mxu1 %v5210_v63  ;;  %v5255_v63 = vld [vmem:[%s6503_s16 + $0x88] sm:$0xff]  }
0x18de   :  { %3833 = vmatprep.subr.bf16.mxu1 %v5218_v40  ;;  %v5257_v40 = vld [vmem:[%s6503_s16 + $0xc0] sm:$0xff]  }
0x18e1   :  { %3834 = vmatpush1.bf16.msra.mxu1 %v5216_v12  ;;  %v5259_v12 = vld [vmem:[%s6503_s16 + $0x80] sm:$0xff]  }
0x18e2   :  { %3835 = vmatprep.subr.bf16.mxu1 %v5224_v48  ;;  %v3646_v48 = vsub.s32 3, %v5834_v30 }
0x18e5   :  { %3836 = vmatpush1.bf16.msra.mxu1 %v5222_v16  ;;  %v3643_v16 = vrot.slane %v3630_v50, %v5891_v61 }
0x18e6   :  { %4679 = vmatprep.subr.bf16.mxu1 %v5228_v9  ;;  %v3647_v9 = vrot.slane %v3630_v50, %v3646_v48 }
0x194f   :  { %v3557_v35 = vpop.xlane.xlu1 %3556 }
0x1950   :  { %v3560_v24 = vmul.f32 0.0078125, %v3557_v35 }
0x1952   :  { %v6368_v41 = vsub.f32 %v3550_v18, %v3560_v24 }
0x1953   :  { %v3559_v0 = vpop.xlane.xlu0 %3558 }
0x1954   :  { %v3561_v52 = vmul.f32 0.0078125, %v3559_v0  ;;  %v3564_v45 = vmul.f32 %v6368_v41, %v6368_v41 }
0x1956   :  { %v6372_v46 = vsub.f32 %v3551_v28, %v3561_v52  ;;  %3566 = vadd.xlane.f32.xlu1 %v3564_v45  ;;  %v5231_v45 = vld [vmem:[%s6503_s16 + $0xb8] sm:$0xff]  }
0x1958   :  { %v3565_v25 = vmul.f32 %v6372_v46, %v6372_v46 }
0x195a   :  { %3568 = vadd.xlane.f32.xlu0 %v3565_v25  ;;  %v5232_v25 = vld [vmem:[%s6503_s16 + $0x70] sm:$0xff]  }
0x19df   :  { %v3567_v26 = vpop.xlane.xlu1 %3566 }
0x19e0   :  { %v3570_v27 = vmul.f32 0.0078125, %v3567_v26 }
0x19e2   :  { %v3572_v19 = vadd.f32 1e-05, %v3570_v27 }
0x19e3   :  { %v3569_v15 = vpop.xlane.xlu0 %3568 }
0x19e4   :  { %5352 = vrsqrt.f32 %v3572_v19  ;;  %v3571_v8 = vmul.f32 0.0078125, %v3569_v15 }
0x19e6   :  { %v3573_v3 = vadd.f32 1e-05, %v3571_v8 }
0x19e8   :  { %5354 = vrsqrt.f32 %v3573_v3 }
0x19f1   :  { %v5353_v2 = vpop.eup %5352 }
0x19f2   :  { %v3576_v33 = vmul.f32 %v5353_v2, %v6368_v41  ;;  %v5230_v41 = vld [vmem:[%s6503_s16 + $0x38] sm:$0xff]   ;;  %s5655_s16 = smov [#allocation20]  }
0x19f3   :  { %s4261_s26 = sshll.u32 %s5655_s16, 4  ;;  %s4262_s26 = int_to_ptr.vmem [resolvable:$true] %s4261_s26 }
0x19f4   :  { %v3584_v36 = vmul.f32 %v4468_v29, %v3576_v33  ;;  %s5578_s14 = scalar_lea.vmem %s4262_s26, 256  ;;  %p5583_p0 = scmp.lt.s32.totalorder %s4262_s26, %s4262_s26 }
0x19f5   :  { %v5355_v1 = vpop.eup %5354  ;;  %p5579_p13 = scmp.ne.s32.totalorder %s4262_s26, %s5578_s14  ;;  %p5584_p1 = scmp.lt.s32.totalorder %s5578_s14, %s5578_s14 }
0x19f6   :  { %v3577_v56 = vmul.f32 %v5355_v1, %v6372_v46  ;;  %v3592_v37 = vadd.f32 %v4469_v20, %v3584_v36 }
0x19f7   :  { %p5585_p2 = por %p5584_p1, %p5583_p0 }
0x19f8   :  { %v3585_v38 = vmul.f32 %v4468_v29, %v3577_v56  ;;  %3594 = vst [vmem:[#allocation20] sm:$0xff] %v3592_v37  ;;  %v3596_v39 = vpack.c.bf16 %v3592_v37, %v3592_v37 }
0x19f9   :  { %p5586_p3 = pnand %p5585_p2, %p5579_p13 }
0x19fa   :  { %v3593_v18 = vadd.f32 %v4469_v20, %v3585_v38  ;;  %v3654_v24 = vunpack.c.l.b16 %v3596_v39 }
0x19fc   :  { %v3597_v28 = vpack.c.bf16 %v3593_v18, %v3593_v18  ;;  %3595 = vst [vmem:[#allocation20 + $0x8] sm:$0xff] %v3593_v18 }
0x19fe   :  { %v3655_v35 = vunpack.c.l.b16 %v3597_v28 }
0x1a00   :  { %v3656_v0 = vrot.slane %v3655_v35, 7 }
0x1a02   :  { %v3658_v52 = vsel %vm3657_vm11, %v3656_v0, %v3654_v24 }
0x1a03   :  { %v3659_v46 = vpack.c.b16 %v3658_v52, %v3658_v52 }
0x1a05   :  { %3854 = vmatmul.mubr.bf16.vlgmr.msra.gmra.mxu1 %v3659_v46  ;;  %3895 = vmatmul.mubr.bf16.vlgmr.msra.gmra.mxu0 %v3659_v46 }
0x1a06   :  { %4680 = vmatpush3.bf16.msra.mxu1 %v5230_v41  ;;  %4702 = vmatpush3.bf16.msra.mxu0 %v5231_v45 }
0x1a07   :  { %4681 = vmatprep.subr.bf16.mxu1 %v5232_v25  ;;  %4703 = vmatprep.subr.bf16.mxu0 %v5233_v47 }
0x1a0a   :  { %4682 = vmatpush3.bf16.msra.mxu1 %v5234_v49  ;;  %4704 = vmatpush3.bf16.msra.mxu0 %v5235_v62 }
0x1a0b   :  { %4683 = vmatprep.subr.bf16.mxu1 %v5236_v53  ;;  %4705 = vmatprep.subr.bf16.mxu0 %v5237_v55 }
0x1a0e   :  { %4684 = vmatpush3.bf16.msra.mxu1 %v5238_v14  ;;  %4706 = vmatpush3.bf16.msra.mxu0 %v5239_v57 }
0x1a0f   :  { %4685 = vmatprep.subr.bf16.mxu1 %v5240_v54  ;;  %4707 = vmatprep.subr.bf16.mxu0 %v5241_v51 }
0x1a12   :  { %4686 = vmatpush3.bf16.msra.mxu1 %v5242_v13  ;;  %4708 = vmatpush3.bf16.msra.mxu0 %v5243_v58 }
0x1a13   :  { %4687 = vmatprep.subr.bf16.mxu1 %v5244_v59  ;;  %4709 = vmatprep.subr.bf16.mxu0 %v5245_v60 }
0x1a16   :  { %4688 = vmatpush3.bf16.msra.mxu1 %v5246_v43  ;;  %4710 = vmatpush3.bf16.msra.mxu0 %v5247_v4 }
0x1a17   :  { %4689 = vmatprep.subr.bf16.mxu1 %v5248_v5  ;;  %4711 = vmatprep.subr.bf16.mxu0 %v5249_v23 }
0x1a1a   :  { %4690 = vmatpush3.bf16.msra.mxu1 %v5250_v34  ;;  %4712 = vmatpush3.bf16.msra.mxu0 %v5251_v6 }
0x1a1b   :  { %4691 = vmatprep.subr.bf16.mxu1 %v5252_v7  ;;  %4713 = vmatprep.subr.bf16.mxu0 %v5253_v22 }
0x1a1e   :  { %4692 = vmatpush3.bf16.msra.mxu1 %v5254_v10  ;;  %4714 = vmatpush3.bf16.msra.mxu0 %v5255_v63 }
0x1a1f   :  { %4693 = vmatprep.subr.bf16.mxu1 %v5256_v42  ;;  %4715 = vmatprep.subr.bf16.mxu0 %v5257_v40 }
0x1a22   :  { %4694 = vmatpush3.bf16.msra.mxu1 %v5258_v11  ;;  %4716 = vmatpush3.bf16.msra.mxu0 %v5259_v12 }
0x1ac5   :  { %v3855_v21 = vpop.f32.mrf.mxu1  ;;  %v3896_v26 = vpop.f32.mrf.mxu0 }
0x1ac6   :  { %v3856_v27 = vadd.f32 %v3855_v21, %v3635_v44  ;;  %v3897_v19 = vadd.f32 %v3896_v26, %v3643_v16 }
0x1ac7   :  { %v3857_v15 = vpop.f32.mrf.mxu1  ;;  %v3898_v8 = vpop.f32.mrf.mxu0 }
0x1ac8   :  { %v3858_v3 = vadd.f32 %v3857_v15, %v3639_v17  ;;  %v3899_v2 = vadd.f32 %v3898_v8, %v3647_v9  ;;  %v3903_v29 = vmax.f32 %v3856_v27, 0.0  ;;  %v3905_v33 = vmax.f32 %v3897_v19, 0.0 }
0x1ac9   :  { %v3859_v20 = vpop.f32.mrf.mxu1  ;;  %v3900_v36 = vpop.f32.mrf.mxu0 }
0x1aca   :  { %v3904_v30 = vmax.f32 %v3858_v3, 0.0  ;;  %v3906_v1 = vmax.f32 %v3899_v2, 0.0  ;;  %v3907_v31 = vpack.c.bf16 %v3903_v29, %v3903_v29  ;;  %v3909_v38 = vpack.c.bf16 %v3905_v33, %v3905_v33 }
0x1acb   :  { %v3860_v32 = vpop.f32.mrf.mxu1  ;;  %v3901_v56 = vpop.f32.mrf.mxu0 }
0x1acc   :  { %v3908_v61 = vpack.c.bf16 %v3904_v30, %v3904_v30  ;;  %v3910_v37 = vpack.c.bf16 %v3906_v1, %v3906_v1 }
0x1ace   :  { %4206 = vmatprep.mubr.bf16.mxu1 %v3908_v61  ;;  %4246 = vmatprep.mubr.bf16.mxu0 %v3910_v37 }
0x1acf   :  { %4207 = vmatmul.mubr.bf16.vlgmr.msra.gmra.mxu1 %v3907_v31  ;;  %4247 = vmatmul.mubr.bf16.vlgmr.msra.gmra.mxu0 %v3909_v38 }
0x1ad0   :  { %5589 = shalt.err (!%p5586_p3)
}
0x1ad1   :  { %s5656_s11 = smov 128   ;;  %s5657_s25 = smov 8   ;;  %v4502_v28 = vld [vmem:[%s6504_s17] ss:$0 sm:$0xff]  ;;  %vm4254_vm12 = vcmask 58368  }
0x1ad2   :  { %4267 = dma.vmem_to_hbm [thread:$0]  %s4262_s26, 256, %s6505_s18, [#allocation4], %s5656_s11, %s5656_s11, %s5657_s25  }
0x1ad3   :  { %s5658_s21 = smov [#allocation21]  }
0x1ad4   :  { %s4274_s6 = sshll.u32 %s5658_s21, 4  ;;  %s4275_s6 = int_to_ptr.vmem [resolvable:$true] %s4274_s6 }
0x1ad5   :  { %s5598_s18 = scalar_lea.vmem %s4275_s6, 32  ;;  %p5603_p5 = scmp.lt.s32.totalorder %s4275_s6, %s4275_s6 }
0x1ad6   :  { %p5599_p4 = scmp.ne.s32.totalorder %s4275_s6, %s5598_s18  ;;  %p5604_p6 = scmp.lt.s32.totalorder %s5598_s18, %s5598_s18 }
0x1ad8   :  { %p5605_p7 = por %p5604_p6, %p5603_p5 }
0x1ada   :  { %p5606_p8 = pnand %p5605_p7, %p5599_p4 }
0x1b8f   :  { %v4695_v18 = vpop.f32.mrf.mxu1  ;;  %v4717_v39 = vpop.f32.mrf.mxu0 }
0x1b91   :  { %v4696_v35 = vpop.f32.mrf.mxu1  ;;  %v4718_v24 = vpop.f32.mrf.mxu0 }
0x1b92   :  { %v4697_v0 = vadd.f32 %v4696_v35, %v4695_v18  ;;  %v4719_v46 = vadd.f32 %v4718_v24, %v4717_v39 }
0x1b93   :  { %v4698_v52 = vpop.f32.mrf.mxu1  ;;  %v4720_v41 = vpop.f32.mrf.mxu0 }
0x1b94   :  { %v4209_v45 = vadd.f32 %v4697_v0, %v4502_v28 }
0x1b95   :  { %v4699_v25 = vpop.f32.mrf.mxu1  ;;  %v4721_v47 = vpop.f32.mrf.mxu0 }
0x1b96   :  { %v4249_v49 = vadd.f32 %v4719_v46, %v4209_v45 }
0x1b98   :  { %4255 = vst.msk [vmem:[#allocation21] sm:$0x3] %vm4254_vm12, %v4249_v49 }
0x1b99   :  { %5609 = shalt.err (!%p5606_p8)
}
0x1b9a   :  { %4277 = dma.vmem_to_hbm [thread:$0]  %s4275_s6, 32, %s6506_s19, [#allocation22]  }
0x1b9b   :  { %5630 = dma.done.wait [#allocation4], 256  }
0x1b9c   :  { %5631 = vsyncadd [#allocation4], 4294967040 }
0x1b9d   :  { %5632 = dma.done.wait [#allocation22], 32  }
0x1b9e   :  { %5633 = vsyncadd [#allocation22], 4294967264 }
0x1b9f   :  { %4284 = vsyncpa [#allocation3], 1 }
0x1ba0   :  { %4285 = vsyncpa [#allocation6], 1 }
0x1ba1   :  { %4286 = vsyncpa [#allocation9], 1 }
0x1ba2   :  { %4287 = vsyncpa [#allocation12], 1 }
0x1ba3   :  { %4288 = vsyncpa [#allocation15], 1 }
0x1ba4   :  { %4289 = vsyncpa [#allocation18], 1 }
0x1ba5   :  { %4290 = vsyncpa [#allocation4], 1 }
0x1ba6   :  { %4291 = vsyncpa [#allocation22], 1 }

</bundles_post_ra>
